<compile_context>
chip_gen: v6e
topology: v6e:2x2x1
jax: 0.10.0
libtpu: 0.0.40
codegen_flags: <defaults>
</compile_context>

<pallas_src>
import functools

import jax
import jax.numpy as jnp
import numpy as np
from jax import lax
from jax.experimental import pallas as pl
from jax.experimental.pallas import tpu as pltpu

EPS = 1e-5          # PyTorch BatchNorm2d default eps
LANE = 128          # TPU lane width
_VMEM_CAP = 48 << 20


def _round_up(v, m):
    return ((v + m - 1) // m) * m


def _pad_channels(x, c):
    d = c - x.shape[-1]
    if d == 0:
        return x
    return jnp.pad(x, ((0, 0),) * (x.ndim - 1) + ((0, d),))


def _pick_tn(cout_p):
    # Prefer 256-wide lane tiles only when that still leaves >=2 Cout tiles
    # (keeps both v7x TensorCores busy); otherwise 128 (lane-dense, unmasked).
    if cout_p % 256 == 0 and cout_p > 256:
        return 256
    return min(cout_p, LANE)


def _pick_tm(m, cin_p, tn, budget=8 << 20):
    # Rows per M tile for the 1x1 path, bounded by a per-step VMEM budget
    # (double-buffered x tile + y tiles of both passes).
    per_row = 4 * 2 * (cin_p + 2 * tn)
    tm = max(8, min(512, (budget // per_row) // 8 * 8))
    m8 = _round_up(m, 8)
    tm = min(tm, m8)
    if m8 >= 16 and tm >= m8:          # keep >=2 M tiles whenever possible
        tm = _round_up(m8 // 2, 8)
    return tm


def _pick_th(ho, wo, n_phase, ws, cp, tn, halo, budget=6 << 20):
    # Output-row tile for the 3x3 path (must divide Ho); bounded by the VMEM
    # cost of the haloed input slab + the 9-tap concatenated LHS + y tile.
    cap = ho if ho < 4 else max(1, ho // 2)
    best = 1
    for th in range(1, cap + 1):
        if ho % th:
            continue
        x_b = 2 * n_phase * (th + halo) * ws * cp * 4
        lhs_b = 2 * th * wo * 9 * cp * 4
        y_b = 2 * _round_up(th * wo, 8) * tn * 4
        if x_b + lhs_b + y_b <= budget:
            best = th
    return best


def _cparams(dims, footprint_bytes):
    limit = int(min(max(2 * footprint_bytes + (4 << 20), 16 << 20), _VMEM_CAP))
    return pltpu.CompilerParams(dimension_semantics=dims,
                                vmem_limit_bytes=limit)


# ----------------------------------------------------------------------------
# Pallas kernels
# ----------------------------------------------------------------------------
def _matmul_stats_kernel(x_ref, w_ref, y_ref, stat_ref, acc_ref):
    # 1x1 conv tile: y = x @ w  (f32 MXU accumulate), plus per-channel
    # sum / sumsq accumulated across the M grid axis in a VMEM scratch.
    mi = pl.program_id(1)
    y = jnp.dot(x_ref[...], w_ref[...], preferred_element_type=jnp.float32)
    y_ref[...] = y
    part = jnp.concatenate([jnp.sum(y, axis=0, keepdims=True),
                            jnp.sum(y * y, axis=0, keepdims=True)], axis=0)

    @pl.when(mi == 0)
    def _():
        acc_ref[...] = jnp.zeros_like(acc_ref)

    acc_ref[...] += part

    @pl.when(mi == pl.num_programs(1) - 1)
    def _():
        stat_ref[...] = acc_ref[...]


def _conv3x3_stats_kernel(x_ref, w_ref, y_ref, stat_ref, acc_ref, *,
                          taps, th, wo, thh, rows_pad):
    # x_ref: (1, n_phase*thh, Ws, Cp) haloed row slab (phase-split if strided).
    # The 9 shifted taps are concatenated along K and fed to the MXU as ONE
    # dot against w_ref (9*Cp, TN) -- no im2col in HBM, MXU-internal accumulate.
    qi = pl.program_id(1)
    cp = x_ref.shape[-1]
    rows = th * wo
    cols = []
    for (p, r0, c0) in taps:                       # 9 static taps, unrolled
        base = p * thh + r0
        patch = x_ref[0, base:base + th, c0:c0 + wo, :]
        cols.append(patch.reshape(rows, cp))
    lhs = jnp.concatenate(cols, axis=-1)           # (rows, 9*Cp)
    y = jnp.dot(lhs, w_ref[...], preferred_element_type=jnp.float32)
    if rows_pad == rows:
        y_ref[...] = y
    else:
        y_ref[0:rows, :] = y
        y_ref[rows:rows_pad, :] = jnp.zeros((rows_pad - rows, y.shape[1]),
                                            jnp.float32)
    part = jnp.concatenate([jnp.sum(y, axis=0, keepdims=True),
                            jnp.sum(y * y, axis=0, keepdims=True)], axis=0)

    @pl.when(qi == 0)
    def _():
        acc_ref[...] = jnp.zeros_like(acc_ref)

    acc_ref[...] += part

    @pl.when(qi == pl.num_programs(1) - 1)
    def _():
        stat_ref[...] = acc_ref[...]


def _bn_apply_kernel(y_ref, stat_ref, g_ref, b_ref, o_ref, *, inv_rows, relu):
    mean = stat_ref[0:1, :] * inv_rows
    var = jnp.maximum(stat_ref[1:2, :] * inv_rows - mean * mean, 0.0)
    scale = g_ref[...] * lax.rsqrt(var + EPS)
    shift = b_ref[...] - mean * scale
    out = y_ref[...] * scale + shift
    if relu:
        out = jnp.maximum(out, 0.0)
    o_ref[...] = out


def _bn_apply_add_relu_kernel(y_ref, stat_ref, g_ref, b_ref, r_ref, o_ref, *,
                              inv_rows):
    mean = stat_ref[0:1, :] * inv_rows
    var = jnp.maximum(stat_ref[1:2, :] * inv_rows - mean * mean, 0.0)
    scale = g_ref[...] * lax.rsqrt(var + EPS)
    shift = b_ref[...] - mean * scale
    out = y_ref[...] * scale + shift + r_ref[...]
    o_ref[...] = jnp.maximum(out, 0.0)


# ----------------------------------------------------------------------------
# pallas_call wrappers
# ----------------------------------------------------------------------------
def _matmul_stats(x2d, w2d, *, tm, tn):
    mp, cin_p = x2d.shape
    cout_p = w2d.shape[1]
    grid = (cout_p // tn, mp // tm)
    fp = 4 * (2 * tm * cin_p + 2 * cin_p * tn + 2 * tm * tn + 4 * tn)
    flops = 2 * mp * cin_p * cout_p
    bytes_acc = 4 * (mp * cin_p + cin_p * cout_p + mp * cout_p + 2 * cout_p)
    return pl.pallas_call(
        _matmul_stats_kernel,
        out_shape=(jax.ShapeDtypeStruct((mp, cout_p), jnp.float32),
                   jax.ShapeDtypeStruct((2, cout_p), jnp.float32)),
        grid=grid,
        in_specs=[pl.BlockSpec((tm, cin_p), lambda j, i: (i, 0)),
                  pl.BlockSpec((cin_p, tn), lambda j, i: (0, j))],
        out_specs=(pl.BlockSpec((tm, tn), lambda j, i: (i, j)),
                   pl.BlockSpec((2, tn), lambda j, i: (0, j))),
        scratch_shapes=[pltpu.VMEM((2, tn), jnp.float32)],
        compiler_params=_cparams(("parallel", "arbitrary"), fp),
        cost_estimate=pl.CostEstimate(flops=int(flops), transcendentals=0,
                                      bytes_accessed=int(bytes_acc)),
    )(x2d, w2d)


def _conv3x3_stats(xt, w3, *, taps, th, wo, thh, rows_pad, tn):
    q, rt, ws, cp = xt.shape
    kcp, cout_p = w3.shape
    grid = (cout_p // tn, q)
    kernel = functools.partial(_conv3x3_stats_kernel, taps=taps, th=th, wo=wo,
                               thh=thh, rows_pad=rows_pad)
    fp = 4 * (2 * rt * ws * cp + 2 * kcp * tn + 2 * rows_pad * tn
              + 2 * th * wo * kcp)
    flops = 2 * q * th * wo * kcp * cout_p
    bytes_acc = 4 * (q * rt * ws * cp + kcp * cout_p + q * rows_pad * cout_p)
    return pl.pallas_call(
        kernel,
        out_shape=(jax.ShapeDtypeStruct((q * rows_pad, cout_p), jnp.float32),
                   jax.ShapeDtypeStruct((2, cout_p), jnp.float32)),
        grid=grid,
        in_specs=[pl.BlockSpec((1, rt, ws, cp), lambda j, i: (i, 0, 0, 0)),
                  pl.BlockSpec((kcp, tn), lambda j, i: (0, j))],
        out_specs=(pl.BlockSpec((rows_pad, tn), lambda j, i: (i, j)),
                   pl.BlockSpec((2, tn), lambda j, i: (0, j))),
        scratch_shapes=[pltpu.VMEM((2, tn), jnp.float32)],
        compiler_params=_cparams(("parallel", "arbitrary"), fp),
        cost_estimate=pl.CostEstimate(flops=int(flops), transcendentals=0,
                                      bytes_accessed=int(bytes_acc)),
    )(xt, w3)


def _bn_apply(y2d, stats, gamma, beta, *, tm, tn, inv_rows, relu, residual=None):
    mp, cout_p = y2d.shape
    grid = (cout_p // tn, mp // tm)
    n_t = 3 if residual is not None else 2
    fp = 4 * (2 * tm * tn * n_t + 8 * tn)
    bytes_acc = 4 * (mp * cout_p * n_t + 4 * cout_p)
    spec_stat = pl.BlockSpec((2, tn), lambda j, i: (0, j))
    spec_vec = pl.BlockSpec((1, tn), lambda j, i: (0, j))
    spec_tile = pl.BlockSpec((tm, tn), lambda j, i: (i, j))
    if residual is None:
        kernel = functools.partial(_bn_apply_kernel, inv_rows=inv_rows, relu=relu)
        in_specs = [spec_tile, spec_stat, spec_vec, spec_vec]
        args = (y2d, stats, gamma, beta)
    else:
        kernel = functools.partial(_bn_apply_add_relu_kernel, inv_rows=inv_rows)
        in_specs = [spec_tile, spec_stat, spec_vec, spec_vec, spec_tile]
        args = (y2d, stats, gamma, beta, residual)
    return pl.pallas_call(
        kernel,
        out_shape=jax.ShapeDtypeStruct((mp, cout_p), jnp.float32),
        grid=grid,
        in_specs=in_specs,
        out_specs=spec_tile,
        compiler_params=_cparams(("parallel", "parallel"), fp),
        cost_estimate=pl.CostEstimate(flops=int(4 * mp * cout_p),
                                      transcendentals=int(cout_p),
                                      bytes_accessed=int(bytes_acc)),
    )(*args)


# ----------------------------------------------------------------------------
# Per-conv wrappers (layout glue only; compute lives in the kernels)
# ----------------------------------------------------------------------------
def conv1x1_bn(x, p, *, stride, relu, residual=None):
    # x: (N, H, W, Cp) f32, channel-padded to a multiple of 128.
    n = x.shape[0]
    cp = x.shape[-1]
    if stride > 1:
        x = x[:, ::stride, ::stride, :]          # 1x1 conv, padding=0
    ho, wo = x.shape[1], x.shape[2]
    m = n * ho * wo
    cin, cout = p["w"].shape[2], p["w"].shape[3]
    cout_p = _round_up(cout, LANE)
    w2d = jnp.pad(p["w"][0, 0], ((0, cp - cin), (0, cout_p - cout)))
    gamma = jnp.pad(p["gamma"], ((0, 0), (0, cout_p - cout)), constant_values=1.0)
    beta = jnp.pad(p["beta"], ((0, 0), (0, cout_p - cout)))
    tn = _pick_tn(cout_p)
    tm = _pick_tm(m, cp, tn)
    m_pad = _round_up(m, tm)
    x2d = x.reshape(m, cp)
    if m_pad > m:
        x2d = jnp.pad(x2d, ((0, m_pad - m), (0, 0)))    # zero rows: no effect on stats
    y2d, stats = _matmul_stats(x2d, w2d, tm=tm, tn=tn)
    res2d = None
    if residual is not None:
        res2d = residual.reshape(m, cout_p)
        if m_pad > m:
            res2d = jnp.pad(res2d, ((0, m_pad - m), (0, 0)))
    out2d = _bn_apply(y2d, stats, gamma, beta, tm=tm, tn=tn,
                      inv_rows=1.0 / m, relu=relu, residual=res2d)
    return out2d[:m].reshape(n, ho, wo, cout_p)


def conv3x3_bn(x, p, *, stride, dilation):
    # x: (N, H, W, Cp) f32, channel-padded.  3x3 conv + BN + ReLU (cbr2).
    n = x.shape[0]
    cp = x.shape[-1]
    k, dil, s = 3, dilation, stride
    pad = dil if dil > 1 else 1
    assert not (s > 1 and dil > 1)      # module forces stride=1 when dilated
    xp = jnp.pad(x, ((0, 0), (pad, pad), (pad, pad), (0, 0)))
    hp, wp = xp.shape[1], xp.shape[2]
    ho = (hp - dil * (k - 1) - 1) // s + 1
    wo = (wp - dil * (k - 1) - 1) // s + 1
    if s == 1:
        x5 = xp[:, None]                              # (N, 1, Hp, Wp, Cp)
        taps = tuple((0, kh * dil, kw * dil) for kh in range(k) for kw in range(k))
        halo = (k - 1) * dil
    else:
        # space-to-depth phase split: strided taps become unstrided shifts.
        ph = [xp[:, a::s, b::s, :] for a in range(s) for b in range(s)]
        ph_h = max(t.shape[1] for t in ph)
        ph_w = max(t.shape[2] for t in ph)
        ph = [jnp.pad(t, ((0, 0), (0, ph_h - t.shape[1]),
                          (0, ph_w - t.shape[2]), (0, 0))) for t in ph]
        x5 = jnp.stack(ph, axis=1)                    # (N, s*s, ph_h, ph_w, Cp)
        taps = tuple(((kh % s) * s + (kw % s), kh // s, kw // s)
                     for kh in range(k) for kw in range(k))
        halo = (k - 1) // s
    n_phase, hs, ws = x5.shape[1], x5.shape[2], x5.shape[3]

    cin, cout = p["w"].shape[2], p["w"].shape[3]
    cout_p = _round_up(cout, LANE)
    w3 = jnp.pad(p["w"], ((0, 0), (0, 0), (0, cp - cin), (0, cout_p - cout)))
    w3 = w3.reshape(k * k * cp, cout_p)
    gamma = jnp.pad(p["gamma"], ((0, 0), (0, cout_p - cout)), constant_values=1.0)
    beta = jnp.pad(p["beta"], ((0, 0), (0, cout_p - cout)))
    tn = _pick_tn(cout_p)

    th = _pick_th(ho, wo, n_phase, ws, cp, tn, halo)
    n_h = ho // th
    thh = th + halo
    need = (n_h - 1) * th + thh
    if hs < need:
        x5 = jnp.pad(x5, ((0, 0), (0, 0), (0, need - hs), (0, 0), (0, 0)))
    # TODO(synk): move this halo-tile materialization into the kernel's
    # index_map (pl.Element rows) to avoid the extra HBM copy.
    tiles = [x5[:, :, i * th:i * th + thh] for i in range(n_h)]
    xt = jnp.stack(tiles, axis=1).reshape(n * n_h, n_phase * thh, ws, cp)

    rows = th * wo
    rows_pad = _round_up(rows, 8)
    m = n * ho * wo
    y2d, stats = _conv3x3_stats(xt, w3, taps=taps, th=th, wo=wo, thh=thh,
                                rows_pad=rows_pad, tn=tn)
    out2d = _bn_apply(y2d, stats, gamma, beta, tm=rows_pad, tn=tn,
                      inv_rows=1.0 / m, relu=True)
    out = out2d.reshape(n, n_h, rows_pad, cout_p)[:, :, :rows, :]
    return out.reshape(n, ho, wo, cout_p)


# ----------------------------------------------------------------------------
# residualBlockPSP forward (Pallas path)
# ----------------------------------------------------------------------------
def residual_block_psp_pallas(x, params, *, stride, dilation, out_channels):
    if dilation > 1:
        stride = 1
    h = _pad_channels(x, _round_up(x.shape[-1], LANE))

    # bottleNeckPSP
    p0 = params[0]
    # TODO(synk): fuse cbr1 + cb4 (both read h) into one pallas_call with two
    # outputs when their strides match; for now they share the padded h in HBM.
    a = conv1x1_bn(h, p0["cbr1"], stride=1, relu=True)
    a = conv3x3_bn(a, p0["cbr2"], stride=stride, dilation=dilation)
    res = conv1x1_bn(h, p0["cb4"], stride=stride, relu=False)
    out = conv1x1_bn(a, p0["cb3"], stride=1, relu=True, residual=res)

    # bottleNeckIdentifyPSP x (n_blocks - 1)
    for p in params[1:]:
        a = conv1x1_bn(out, p["cbr1"], stride=1, relu=True)
        a = conv3x3_bn(a, p["cbr2"], stride=1, dilation=dilation)
        out = conv1x1_bn(a, p["cb3"], stride=1, relu=True, residual=out)
    return out[..., :out_channels]


# ----------------------------------------------------------------------------
# Pure-JAX reference (correctness check; training-mode BN = batch stats)
# ----------------------------------------------------------------------------
def conv_bn_ref(x, p, k, stride, pad, dil, relu, residual=None):
    y = lax.conv_general_dilated(
        x, p["w"], window_strides=(stride, stride),
        padding=[(pad, pad), (pad, pad)], rhs_dilation=(dil, dil),
        dimension_numbers=("NHWC", "HWIO", "NHWC"),
        precision=lax.Precision.HIGHEST)
    mean = jnp.mean(y, axis=(0, 1, 2), keepdims=True)
    var = jnp.mean((y - mean) ** 2, axis=(0, 1, 2), keepdims=True)
    out = (p["gamma"].reshape(1, 1, 1, -1) * (y - mean) * lax.rsqrt(var + EPS)
           + p["beta"].reshape(1, 1, 1, -1))
    if residual is not None:
        out = out + residual
    if relu:
        out = jnp.maximum(out, 0.0)
    return out


def residual_block_psp_ref(x, params, stride, dilation):
    if dilation > 1:
        stride = 1
    pad2 = dilation if dilation > 1 else 1
    p0 = params[0]
    h = conv_bn_ref(x, p0["cbr1"], 1, 1, 0, 1, relu=True)
    h = conv_bn_ref(h, p0["cbr2"], 3, stride, pad2, dilation, relu=True)
    res = conv_bn_ref(x, p0["cb4"], 1, stride, 0, 1, relu=False)
    out = conv_bn_ref(h, p0["cb3"], 1, 1, 0, 1, relu=True, residual=res)
    for p in params[1:]:
        h = conv_bn_ref(out, p["cbr1"], 1, 1, 0, 1, relu=True)
        h = conv_bn_ref(h, p["cbr2"], 3, 1, pad2, dilation, relu=True)
        out = conv_bn_ref(h, p["cb3"], 1, 1, 0, 1, relu=True, residual=out)
    return out


# ----------------------------------------------------------------------------
# Deterministic synthetic parameters (shapes follow the module __init__)
# ----------------------------------------------------------------------------
def _conv_params(key, k, cin, cout):
    kw, kg, kb = jax.random.split(key, 3)
    return dict(
        w=0.1 * jax.random.normal(kw, (k, k, cin, cout), jnp.float32),     # HWIO
        gamma=1.0 + 0.1 * jax.random.normal(kg, (1, cout), jnp.float32),   # BN weight
        beta=0.1 * jax.random.normal(kb, (1, cout), jnp.float32),          # BN bias
    )


def make_residual_block_params(key, n_blocks, in_c, mid_c, out_c):
    keys = jax.random.split(key, 4 + 3 * max(n_blocks - 1, 0))
    blocks = [dict(
        cbr1=_conv_params(keys[0], 1, in_c, mid_c),
        cbr2=_conv_params(keys[1], 3, mid_c, mid_c),
        cb3=_conv_params(keys[2], 1, mid_c, out_c),
        cb4=_conv_params(keys[3], 1, in_c, out_c),
    )]
    idx = 4
    for _ in range(n_blocks - 1):
        blocks.append(dict(
            cbr1=_conv_params(keys[idx], 1, out_c, mid_c),
            cbr2=_conv_params(keys[idx + 1], 3, mid_c, mid_c),
            cb3=_conv_params(keys[idx + 2], 1, mid_c, out_c),
        ))
        idx += 3
    return blocks


def _run_case(key, n_blocks, in_c, mid_c, out_c, stride, dilation, batch, hw):
    kx, kp = jax.random.split(key)
    x_nchw = jax.random.normal(kx, (batch, in_c, hw, hw), jnp.float32)  # PyTorch NCHW
    x = jnp.transpose(x_nchw, (0, 2, 3, 1))                             # -> NHWC
    params = make_residual_block_params(kp, n_blocks, in_c, mid_c, out_c)
    fwd = jax.jit(functools.partial(residual_block_psp_pallas,
                                    stride=stride, dilation=dilation,
                                    out_channels=out_c))
    out = jax.block_until_ready(fwd(x, params))
    ref = residual_block_psp_ref(x, params, stride, dilation)
    assert out.shape == ref.shape, (out.shape, ref.shape)
    np.testing.assert_allclose(np.asarray(out), np.asarray(ref),
                               rtol=2e-2, atol=2e-2)


if __name__ == "__main__":
    key = jax.random.PRNGKey(0)

    cases = [
        # (n_blocks, in_c, mid_c, out_c, stride, dilation, batch, spatial)
        (2, 4, 4, 8, 2, 1, 2, 16),   # main: residualBlockPSP(2, 4, 4, 8, 2)
        (2, 8, 4, 8, 1, 2, 1, 9),    # dilated branch (dilation=2 -> stride 1)
        (1, 4, 4, 8, 2, 1, 1, 15),   # odd spatial + stride 2 (phase split)
    ]
    for case in cases:
        key, sub = jax.random.split(key)
        _run_case(sub, *case)

    print("KERNEL_OK")
</pallas_src>

<mosaic_0001>
module attributes {stable_mosaic.version = 11 : i64} {
  func.func @_matmul_stats_kernel(%arg0: i32, %arg1: i32, %arg2: memref<256x128xf32, #tpu.memory_space<vmem>>, %arg3: memref<128x128xf32, #tpu.memory_space<vmem>>, %arg4: memref<256x128xf32, #tpu.memory_space<vmem>>, %arg5: memref<2x128xf32, #tpu.memory_space<vmem>>, %arg6: memref<2x128xf32, #tpu.memory_space<vmem>>) attributes {dimension_semantics = [#tpu.dimension_semantics<parallel>, #tpu.dimension_semantics<arbitrary>], iteration_bounds = array<i64: 1, 2>, scalar_prefetch = 0 : i64, scratch_operands = 1 : i64, tpu.core_type = #tpu.core_type<tc>, window_params = [{transform_indices = @transform_0, window_bounds = array<i64: 256, 128>}, {transform_indices = @transform_1, window_bounds = array<i64: 128, 128>}, {transform_indices = @transform_2, window_bounds = array<i64: 256, 128>}, {transform_indices = @transform_3, window_bounds = array<i64: 2, 128>}]} {
    %c0 = arith.constant 0 : index
    %c0_0 = arith.constant 0 : index
    %0 = vector.load %arg2[%c0, %c0_0] : memref<256x128xf32, #tpu.memory_space<vmem>>, vector<256x128xf32>
    %c0_1 = arith.constant 0 : index
    %c0_2 = arith.constant 0 : index
    %1 = vector.load %arg3[%c0_1, %c0_2] : memref<128x128xf32, #tpu.memory_space<vmem>>, vector<128x128xf32>
    %cst = arith.constant dense<0.000000e+00> : vector<256x128xf32>
    %2 = tpu.matmul %0, %1, %cst {dimension_numbers = #tpu.dot_dimension_numbers<[1], [0], [0], [1], [0, 0, 1, 1], [], []>} : vector<256x128xf32>, vector<128x128xf32>, vector<256x128xf32> -> vector<256x128xf32>
    %c0_3 = arith.constant 0 : index
    %c0_4 = arith.constant 0 : index
    %3 = vector.load %arg4[%c0_3, %c0_4] : memref<256x128xf32, #tpu.memory_space<vmem>>, vector<256x128xf32>
    tpu.vector_store %arg4[%c0_3, %c0_4], %2 {strides = array<i32>} : memref<256x128xf32, #tpu.memory_space<vmem>>, vector<256x128xf32>,
    %cst_5 = arith.constant dense<0.000000e+00> : vector<128xf32>
    %4 = vector.multi_reduction <add>, %2, %cst_5 [0] : vector<256x128xf32> to vector<128xf32>
    %5 = vector.shape_cast %4 : vector<128xf32> to vector<1x128xf32>
    %6 = arith.mulf %2, %2 : vector<256x128xf32>
    %cst_6 = arith.constant dense<0.000000e+00> : vector<128xf32>
    %7 = vector.multi_reduction <add>, %6, %cst_6 [0] : vector<256x128xf32> to vector<128xf32>
    %8 = vector.shape_cast %7 : vector<128xf32> to vector<1x128xf32>
    %9 = tpu.concatenate %5, %8 in 0 : vector<1x128xf32>, vector<1x128xf32> -> vector<2x128xf32>
    %c0_i32 = arith.constant 0 : i32
    %10 = arith.cmpi eq, %arg1, %c0_i32 : i32
    %11 = arith.extui %10 : i1 to i32
    %c0_i32_7 = arith.constant 0 : i32
    %12 = arith.cmpi ne, %11, %c0_i32_7 : i32
    scf.if %12 {
      %cst_13 = arith.constant 0.000000e+00 : f32
      %19 = vector.broadcast %cst_13 : f32 to vector<2x128xf32>
      %c0_14 = arith.constant 0 : index
      %c0_15 = arith.constant 0 : index
      %20 = vector.load %arg6[%c0_14, %c0_15] : memref<2x128xf32, #tpu.memory_space<vmem>>, vector<2x128xf32>
      tpu.vector_store %arg6[%c0_14, %c0_15], %19 {strides = array<i32>} : memref<2x128xf32, #tpu.memory_space<vmem>>, vector<2x128xf32>,
    } else {
    }
    %c0_8 = arith.constant 0 : index
    %c0_9 = arith.constant 0 : index
    %13 = vector.load %arg6[%c0_8, %c0_9] : memref<2x128xf32, #tpu.memory_space<vmem>>, vector<2x128xf32>
    %14 = arith.addf %13, %9 : vector<2x128xf32>
    %c0_10 = arith.constant 0 : index
    %c0_11 = arith.constant 0 : index
    %15 = vector.load %arg6[%c0_10, %c0_11] : memref<2x128xf32, #tpu.memory_space<vmem>>, vector<2x128xf32>
    tpu.vector_store %arg6[%c0_10, %c0_11], %14 {strides = array<i32>} : memref<2x128xf32, #tpu.memory_space<vmem>>, vector<2x128xf32>,
    %c1_i32 = arith.constant 1 : i32
    %16 = arith.cmpi eq, %arg1, %c1_i32 : i32
    %17 = arith.extui %16 : i1 to i32
    %c0_i32_12 = arith.constant 0 : i32
    %18 = arith.cmpi ne, %17, %c0_i32_12 : i32
    scf.if %18 {
      %c0_13 = arith.constant 0 : index
      %c0_14 = arith.constant 0 : index
      %19 = vector.load %arg6[%c0_13, %c0_14] : memref<2x128xf32, #tpu.memory_space<vmem>>, vector<2x128xf32>
      %c0_15 = arith.constant 0 : index
      %c0_16 = arith.constant 0 : index
      %20 = vector.load %arg5[%c0_15, %c0_16] : memref<2x128xf32, #tpu.memory_space<vmem>>, vector<2x128xf32>
      tpu.vector_store %arg5[%c0_15, %c0_16], %19 {strides = array<i32>} : memref<2x128xf32, #tpu.memory_space<vmem>>, vector<2x128xf32>,
    } else {
    }
    return
  }
  func.func @transform_0(%arg0: i32, %arg1: i32) -> (i32, i32) {
    %c0_i32 = arith.constant 0 : i32
    %c0_i32_0 = arith.constant 0 : i32
    return %arg1, %c0_i32 : i32, i32
  }
  func.func @transform_1(%arg0: i32, %arg1: i32) -> (i32, i32) {
    %c0_i32 = arith.constant 0 : i32
    %c0_i32_0 = arith.constant 0 : i32
    return %c0_i32, %arg0 : i32, i32
  }
  func.func @transform_2(%arg0: i32, %arg1: i32) -> (i32, i32) {
    %c0_i32 = arith.constant 0 : i32
    return %arg1, %arg0 : i32, i32
  }
  func.func @transform_3(%arg0: i32, %arg1: i32) -> (i32, i32) {
    %c0_i32 = arith.constant 0 : i32
    %c0_i32_0 = arith.constant 0 : i32
    return %c0_i32, %arg0 : i32, i32
  }
}

module attributes {stable_mosaic.version = 11 : i64} {
  func.func @_bn_apply_kernel(%arg0: i32, %arg1: i32, %arg2: memref<256x128xf32, #tpu.memory_space<vmem>>, %arg3: memref<2x128xf32, #tpu.memory_space<vmem>>, %arg4: memref<1x128xf32, #tpu.memory_space<vmem>>, %arg5: memref<1x128xf32, #tpu.memory_space<vmem>>, %arg6: memref<256x128xf32, #tpu.memory_space<vmem>>) attributes {dimension_semantics = [#tpu.dimension_semantics<parallel>, #tpu.dimension_semantics<parallel>], iteration_bounds = array<i64: 1, 2>, scalar_prefetch = 0 : i64, scratch_operands = 0 : i64, tpu.core_type = #tpu.core_type<tc>, window_params = [{transform_indices = @transform_0, window_bounds = array<i64: 256, 128>}, {transform_indices = @transform_1, window_bounds = array<i64: 2, 128>}, {transform_indices = @transform_2, window_bounds = array<i64: 1, 128>}, {transform_indices = @transform_3, window_bounds = array<i64: 1, 128>}, {transform_indices = @transform_4, window_bounds = array<i64: 256, 128>}]} {
    %c0 = arith.constant 0 : index
    %c0_0 = arith.constant 0 : index
    %0 = vector.load %arg3[%c0, %c0_0] : memref<2x128xf32, #tpu.memory_space<vmem>>, vector<1x128xf32>
    %cst = arith.constant 0.001953125 : f32
    %1 = vector.broadcast %cst : f32 to vector<1x128xf32>
    %2 = arith.mulf %0, %1 : vector<1x128xf32>
    %c1 = arith.constant 1 : index
    %c0_1 = arith.constant 0 : index
    %3 = vector.load %arg3[%c1, %c0_1] : memref<2x128xf32, #tpu.memory_space<vmem>>, vector<1x128xf32>
    %cst_2 = arith.constant 0.001953125 : f32
    %4 = vector.broadcast %cst_2 : f32 to vector<1x128xf32>
    %5 = arith.mulf %3, %4 : vector<1x128xf32>
    %6 = arith.mulf %2, %2 : vector<1x128xf32>
    %7 = arith.subf %5, %6 : vector<1x128xf32>
    %cst_3 = arith.constant 0.000000e+00 : f32
    %8 = vector.broadcast %cst_3 : f32 to vector<1x128xf32>
    %9 = arith.maximumf %7, %8 : vector<1x128xf32>
    %c0_4 = arith.constant 0 : index
    %c0_5 = arith.constant 0 : index
    %10 = vector.load %arg4[%c0_4, %c0_5] : memref<1x128xf32, #tpu.memory_space<vmem>>, vector<1x128xf32>
    %cst_6 = arith.constant 9.99999974E-6 : f32
    %11 = vector.broadcast %cst_6 : f32 to vector<1x128xf32>
    %12 = arith.addf %9, %11 : vector<1x128xf32>
    %13 = math.rsqrt %12 : vector<1x128xf32>
    %14 = arith.mulf %10, %13 : vector<1x128xf32>
    %c0_7 = arith.constant 0 : index
    %c0_8 = arith.constant 0 : index
    %15 = vector.load %arg5[%c0_7, %c0_8] : memref<1x128xf32, #tpu.memory_space<vmem>>, vector<1x128xf32>
    %16 = arith.mulf %2, %14 : vector<1x128xf32>
    %17 = arith.subf %15, %16 : vector<1x128xf32>
    %c0_9 = arith.constant 0 : index
    %c0_10 = arith.constant 0 : index
    %18 = vector.load %arg2[%c0_9, %c0_10] : memref<256x128xf32, #tpu.memory_space<vmem>>, vector<256x128xf32>
    %19 = vector.broadcast %14 : vector<1x128xf32> to vector<256x128xf32>
    %20 = arith.mulf %18, %19 : vector<256x128xf32>
    %21 = vector.broadcast %17 : vector<1x128xf32> to vector<256x128xf32>
    %22 = arith.addf %20, %21 : vector<256x128xf32>
    %cst_11 = arith.constant 0.000000e+00 : f32
    %23 = vector.broadcast %cst_11 : f32 to vector<256x128xf32>
    %24 = arith.maximumf %22, %23 : vector<256x128xf32>
    %c0_12 = arith.constant 0 : index
    %c0_13 = arith.constant 0 : index
    %25 = vector.load %arg6[%c0_12, %c0_13] : memref<256x128xf32, #tpu.memory_space<vmem>>, vector<256x128xf32>
    tpu.vector_store %arg6[%c0_12, %c0_13], %24 {strides = array<i32>} : memref<256x128xf32, #tpu.memory_space<vmem>>, vector<256x128xf32>,
    return
  }
  func.func @transform_0(%arg0: i32, %arg1: i32) -> (i32, i32) {
    %c0_i32 = arith.constant 0 : i32
    return %arg1, %arg0 : i32, i32
  }
  func.func @transform_1(%arg0: i32, %arg1: i32) -> (i32, i32) {
    %c0_i32 = arith.constant 0 : i32
    %c0_i32_0 = arith.constant 0 : i32
    return %c0_i32, %arg0 : i32, i32
  }
  func.func @transform_2(%arg0: i32, %arg1: i32) -> (i32, i32) {
    %c0_i32 = arith.constant 0 : i32
    %c0_i32_0 = arith.constant 0 : i32
    return %c0_i32, %arg0 : i32, i32
  }
  func.func @transform_3(%arg0: i32, %arg1: i32) -> (i32, i32) {
    %c0_i32 = arith.constant 0 : i32
    %c0_i32_0 = arith.constant 0 : i32
    return %c0_i32, %arg0 : i32, i32
  }
  func.func @transform_4(%arg0: i32, %arg1: i32) -> (i32, i32) {
    %c0_i32 = arith.constant 0 : i32
    return %arg1, %arg0 : i32, i32
  }
}

module attributes {stable_mosaic.version = 11 : i64} {
  func.func @_conv3x3_stats_kernel(%arg0: i32, %arg1: i32, %arg2: memref<1x20x9x128xf32, #tpu.memory_space<vmem>>, %arg3: memref<1152x128xf32, #tpu.memory_space<vmem>>, %arg4: memref<32x128xf32, #tpu.memory_space<vmem>>, %arg5: memref<2x128xf32, #tpu.memory_space<vmem>>, %arg6: memref<2x128xf32, #tpu.memory_space<vmem>>) attributes {dimension_semantics = [#tpu.dimension_semantics<parallel>, #tpu.dimension_semantics<arbitrary>], iteration_bounds = array<i64: 1, 4>, scalar_prefetch = 0 : i64, scratch_operands = 1 : i64, tpu.core_type = #tpu.core_type<tc>, window_params = [{transform_indices = @transform_0, window_bounds = array<i64: 1, 20, 9, 128>}, {transform_indices = @transform_1, window_bounds = array<i64: 1152, 128>}, {transform_indices = @transform_2, window_bounds = array<i64: 32, 128>}, {transform_indices = @transform_3, window_bounds = array<i64: 2, 128>}]} {
    %c0 = arith.constant 0 : index
    %c0_0 = arith.constant 0 : index
    %c0_1 = arith.constant 0 : index
    %c0_2 = arith.constant 0 : index
    %0 = vector.load %arg2[%c0, %c0_0, %c0_1, %c0_2] : memref<1x20x9x128xf32, #tpu.memory_space<vmem>>, vector<1x4x8x128xf32>
    %1 = vector.shape_cast %0 : vector<1x4x8x128xf32> to vector<4x8x128xf32>
    %2 = vector.shape_cast %1 : vector<4x8x128xf32> to vector<32x128xf32>
    %c0_3 = arith.constant 0 : index
    %c5 = arith.constant 5 : index
    %c0_4 = arith.constant 0 : index
    %c0_5 = arith.constant 0 : index
    %3 = vector.load %arg2[%c0_3, %c5, %c0_4, %c0_5] : memref<1x20x9x128xf32, #tpu.memory_space<vmem>>, vector<1x4x8x128xf32>
    %4 = vector.shape_cast %3 : vector<1x4x8x128xf32> to vector<4x8x128xf32>
    %5 = vector.shape_cast %4 : vector<4x8x128xf32> to vector<32x128xf32>
    %c0_6 = arith.constant 0 : index
    %c0_7 = arith.constant 0 : index
    %c1 = arith.constant 1 : index
    %c0_8 = arith.constant 0 : index
    %6 = vector.load %arg2[%c0_6, %c0_7, %c1, %c0_8] : memref<1x20x9x128xf32, #tpu.memory_space<vmem>>, vector<1x4x8x128xf32>
    %7 = vector.shape_cast %6 : vector<1x4x8x128xf32> to vector<4x8x128xf32>
    %8 = vector.shape_cast %7 : vector<4x8x128xf32> to vector<32x128xf32>
    %c0_9 = arith.constant 0 : index
    %c10 = arith.constant 10 : index
    %c0_10 = arith.constant 0 : index
    %c0_11 = arith.constant 0 : index
    %9 = vector.load %arg2[%c0_9, %c10, %c0_10, %c0_11] : memref<1x20x9x128xf32, #tpu.memory_space<vmem>>, vector<1x4x8x128xf32>
    %10 = vector.shape_cast %9 : vector<1x4x8x128xf32> to vector<4x8x128xf32>
    %11 = vector.shape_cast %10 : vector<4x8x128xf32> to vector<32x128xf32>
    %c0_12 = arith.constant 0 : index
    %c15 = arith.constant 15 : index
    %c0_13 = arith.constant 0 : index
    %c0_14 = arith.constant 0 : index
    %12 = vector.load %arg2[%c0_12, %c15, %c0_13, %c0_14] : memref<1x20x9x128xf32, #tpu.memory_space<vmem>>, vector<1x4x8x128xf32>
    %13 = vector.shape_cast %12 : vector<1x4x8x128xf32> to vector<4x8x128xf32>
    %14 = vector.shape_cast %13 : vector<4x8x128xf32> to vector<32x128xf32>
    %c0_15 = arith.constant 0 : index
    %c10_16 = arith.constant 10 : index
    %c1_17 = arith.constant 1 : index
    %c0_18 = arith.constant 0 : index
    %15 = vector.load %arg2[%c0_15, %c10_16, %c1_17, %c0_18] : memref<1x20x9x128xf32, #tpu.memory_space<vmem>>, vector<1x4x8x128xf32>
    %16 = vector.shape_cast %15 : vector<1x4x8x128xf32> to vector<4x8x128xf32>
    %17 = vector.shape_cast %16 : vector<4x8x128xf32> to vector<32x128xf32>
    %c0_19 = arith.constant 0 : index
    %c1_20 = arith.constant 1 : index
    %c0_21 = arith.constant 0 : index
    %c0_22 = arith.constant 0 : index
    %18 = vector.load %arg2[%c0_19, %c1_20, %c0_21, %c0_22] : memref<1x20x9x128xf32, #tpu.memory_space<vmem>>, vector<1x4x8x128xf32>
    %19 = vector.shape_cast %18 : vector<1x4x8x128xf32> to vector<4x8x128xf32>
    %20 = vector.shape_cast %19 : vector<4x8x128xf32> to vector<32x128xf32>
    %c0_23 = arith.constant 0 : index
    %c6 = arith.constant 6 : index
    %c0_24 = arith.constant 0 : index
    %c0_25 = arith.constant 0 : index
    %21 = vector.load %arg2[%c0_23, %c6, %c0_24, %c0_25] : memref<1x20x9x128xf32, #tpu.memory_space<vmem>>, vector<1x4x8x128xf32>
    %22 = vector.shape_cast %21 : vector<1x4x8x128xf32> to vector<4x8x128xf32>
    %23 = vector.shape_cast %22 : vector<4x8x128xf32> to vector<32x128xf32>
    %c0_26 = arith.constant 0 : index
    %c1_27 = arith.constant 1 : index
    %c1_28 = arith.constant 1 : index
    %c0_29 = arith.constant 0 : index
    %24 = vector.load %arg2[%c0_26, %c1_27, %c1_28, %c0_29] : memref<1x20x9x128xf32, #tpu.memory_space<vmem>>, vector<1x4x8x128xf32>
    %25 = vector.shape_cast %24 : vector<1x4x8x128xf32> to vector<4x8x128xf32>
    %26 = vector.shape_cast %25 : vector<4x8x128xf32> to vector<32x128xf32>
    %27 = tpu.concatenate %2, %5, %8, %11, %14, %17, %20, %23, %26 in 1 : vector<32x128xf32>, vector<32x128xf32>, vector<32x128xf32>, vector<32x128xf32>, vector<32x128xf32>, vector<32x128xf32>, vector<32x128xf32>, vector<32x128xf32>, vector<32x128xf32> -> vector<32x1152xf32>
    %c0_30 = arith.constant 0 : index
    %c0_31 = arith.constant 0 : index
    %28 = vector.load %arg3[%c0_30, %c0_31] : memref<1152x128xf32, #tpu.memory_space<vmem>>, vector<1152x128xf32>
    %cst = arith.constant dense<0.000000e+00> : vector<32x128xf32>
    %29 = tpu.matmul %27, %28, %cst {dimension_numbers = #tpu.dot_dimension_numbers<[1], [0], [0], [1], [0, 0, 1, 1], [], []>} : vector<32x1152xf32>, vector<1152x128xf32>, vector<32x128xf32> -> vector<32x128xf32>
    %c0_32 = arith.constant 0 : index
    %c0_33 = arith.constant 0 : index
    %30 = vector.load %arg4[%c0_32, %c0_33] : memref<32x128xf32, #tpu.memory_space<vmem>>, vector<32x128xf32>
    tpu.vector_store %arg4[%c0_32, %c0_33], %29 {strides = array<i32>} : memref<32x128xf32, #tpu.memory_space<vmem>>, vector<32x128xf32>,
    %cst_34 = arith.constant dense<0.000000e+00> : vector<128xf32>
    %31 = vector.multi_reduction <add>, %29, %cst_34 [0] : vector<32x128xf32> to vector<128xf32>
    %32 = vector.shape_cast %31 : vector<128xf32> to vector<1x128xf32>
    %33 = arith.mulf %29, %29 : vector<32x128xf32>
    %cst_35 = arith.constant dense<0.000000e+00> : vector<128xf32>
    %34 = vector.multi_reduction <add>, %33, %cst_35 [0] : vector<32x128xf32> to vector<128xf32>
    %35 = vector.shape_cast %34 : vector<128xf32> to vector<1x128xf32>
    %36 = tpu.concatenate %32, %35 in 0 : vector<1x128xf32>, vector<1x128xf32> -> vector<2x128xf32>
    %c0_i32 = arith.constant 0 : i32
    %37 = arith.cmpi eq, %arg1, %c0_i32 : i32
    %38 = arith.extui %37 : i1 to i32
    %c0_i32_36 = arith.constant 0 : i32
    %39 = arith.cmpi ne, %38, %c0_i32_36 : i32
    scf.if %39 {
      %cst_42 = arith.constant 0.000000e+00 : f32
      %46 = vector.broadcast %cst_42 : f32 to vector<2x128xf32>
      %c0_43 = arith.constant 0 : index
      %c0_44 = arith.constant 0 : index
      %47 = vector.load %arg6[%c0_43, %c0_44] : memref<2x128xf32, #tpu.memory_space<vmem>>, vector<2x128xf32>
      tpu.vector_store %arg6[%c0_43, %c0_44], %46 {strides = array<i32>} : memref<2x128xf32, #tpu.memory_space<vmem>>, vector<2x128xf32>,
    } else {
    }
    %c0_37 = arith.constant 0 : index
    %c0_38 = arith.constant 0 : index
    %40 = vector.load %arg6[%c0_37, %c0_38] : memref<2x128xf32, #tpu.memory_space<vmem>>, vector<2x128xf32>
    %41 = arith.addf %40, %36 : vector<2x128xf32>
    %c0_39 = arith.constant 0 : index
    %c0_40 = arith.constant 0 : index
    %42 = vector.load %arg6[%c0_39, %c0_40] : memref<2x128xf32, #tpu.memory_space<vmem>>, vector<2x128xf32>
    tpu.vector_store %arg6[%c0_39, %c0_40], %41 {strides = array<i32>} : memref<2x128xf32, #tpu.memory_space<vmem>>, vector<2x128xf32>,
    %c3_i32 = arith.constant 3 : i32
    %43 = arith.cmpi eq, %arg1, %c3_i32 : i32
    %44 = arith.extui %43 : i1 to i32
    %c0_i32_41 = arith.constant 0 : i32
    %45 = arith.cmpi ne, %44, %c0_i32_41 : i32
    scf.if %45 {
      %c0_42 = arith.constant 0 : index
      %c0_43 = arith.constant 0 : index
      %46 = vector.load %arg6[%c0_42, %c0_43] : memref<2x128xf32, #tpu.memory_space<vmem>>, vector<2x128xf32>
      %c0_44 = arith.constant 0 : index
      %c0_45 = arith.constant 0 : index
      %47 = vector.load %arg5[%c0_44, %c0_45] : memref<2x128xf32, #tpu.memory_space<vmem>>, vector<2x128xf32>
      tpu.vector_store %arg5[%c0_44, %c0_45], %46 {strides = array<i32>} : memref<2x128xf32, #tpu.memory_space<vmem>>, vector<2x128xf32>,
    } else {
    }
    return
  }
  func.func @transform_0(%arg0: i32, %arg1: i32) -> (i32, i32, i32, i32) {
    %c0_i32 = arith.constant 0 : i32
    %c0_i32_0 = arith.constant 0 : i32
    %c0_i32_1 = arith.constant 0 : i32
    %c0_i32_2 = arith.constant 0 : i32
    return %arg1, %c0_i32, %c0_i32_0, %c0_i32_1 : i32, i32, i32, i32
  }
  func.func @transform_1(%arg0: i32, %arg1: i32) -> (i32, i32) {
    %c0_i32 = arith.constant 0 : i32
    %c0_i32_0 = arith.constant 0 : i32
    return %c0_i32, %arg0 : i32, i32
  }
  func.func @transform_2(%arg0: i32, %arg1: i32) -> (i32, i32) {
    %c0_i32 = arith.constant 0 : i32
    return %arg1, %arg0 : i32, i32
  }
  func.func @transform_3(%arg0: i32, %arg1: i32) -> (i32, i32) {
    %c0_i32 = arith.constant 0 : i32
    %c0_i32_0 = arith.constant 0 : i32
    return %c0_i32, %arg0 : i32, i32
  }
}

module attributes {stable_mosaic.version = 11 : i64} {
  func.func @_bn_apply_kernel(%arg0: i32, %arg1: i32, %arg2: memref<32x128xf32, #tpu.memory_space<vmem>>, %arg3: memref<2x128xf32, #tpu.memory_space<vmem>>, %arg4: memref<1x128xf32, #tpu.memory_space<vmem>>, %arg5: memref<1x128xf32, #tpu.memory_space<vmem>>, %arg6: memref<32x128xf32, #tpu.memory_space<vmem>>) attributes {dimension_semantics = [#tpu.dimension_semantics<parallel>, #tpu.dimension_semantics<parallel>], iteration_bounds = array<i64: 1, 4>, scalar_prefetch = 0 : i64, scratch_operands = 0 : i64, tpu.core_type = #tpu.core_type<tc>, window_params = [{transform_indices = @transform_0, window_bounds = array<i64: 32, 128>}, {transform_indices = @transform_1, window_bounds = array<i64: 2, 128>}, {transform_indices = @transform_2, window_bounds = array<i64: 1, 128>}, {transform_indices = @transform_3, window_bounds = array<i64: 1, 128>}, {transform_indices = @transform_4, window_bounds = array<i64: 32, 128>}]} {
    %c0 = arith.constant 0 : index
    %c0_0 = arith.constant 0 : index
    %0 = vector.load %arg3[%c0, %c0_0] : memref<2x128xf32, #tpu.memory_space<vmem>>, vector<1x128xf32>
    %cst = arith.constant 7.812500e-03 : f32
    %1 = vector.broadcast %cst : f32 to vector<1x128xf32>
    %2 = arith.mulf %0, %1 : vector<1x128xf32>
    %c1 = arith.constant 1 : index
    %c0_1 = arith.constant 0 : index
    %3 = vector.load %arg3[%c1, %c0_1] : memref<2x128xf32, #tpu.memory_space<vmem>>, vector<1x128xf32>
    %cst_2 = arith.constant 7.812500e-03 : f32
    %4 = vector.broadcast %cst_2 : f32 to vector<1x128xf32>
    %5 = arith.mulf %3, %4 : vector<1x128xf32>
    %6 = arith.mulf %2, %2 : vector<1x128xf32>
    %7 = arith.subf %5, %6 : vector<1x128xf32>
    %cst_3 = arith.constant 0.000000e+00 : f32
    %8 = vector.broadcast %cst_3 : f32 to vector<1x128xf32>
    %9 = arith.maximumf %7, %8 : vector<1x128xf32>
    %c0_4 = arith.constant 0 : index
    %c0_5 = arith.constant 0 : index
    %10 = vector.load %arg4[%c0_4, %c0_5] : memref<1x128xf32, #tpu.memory_space<vmem>>, vector<1x128xf32>
    %cst_6 = arith.constant 9.99999974E-6 : f32
    %11 = vector.broadcast %cst_6 : f32 to vector<1x128xf32>
    %12 = arith.addf %9, %11 : vector<1x128xf32>
    %13 = math.rsqrt %12 : vector<1x128xf32>
    %14 = arith.mulf %10, %13 : vector<1x128xf32>
    %c0_7 = arith.constant 0 : index
    %c0_8 = arith.constant 0 : index
    %15 = vector.load %arg5[%c0_7, %c0_8] : memref<1x128xf32, #tpu.memory_space<vmem>>, vector<1x128xf32>
    %16 = arith.mulf %2, %14 : vector<1x128xf32>
    %17 = arith.subf %15, %16 : vector<1x128xf32>
    %c0_9 = arith.constant 0 : index
    %c0_10 = arith.constant 0 : index
    %18 = vector.load %arg2[%c0_9, %c0_10] : memref<32x128xf32, #tpu.memory_space<vmem>>, vector<32x128xf32>
    %19 = vector.broadcast %14 : vector<1x128xf32> to vector<32x128xf32>
    %20 = arith.mulf %18, %19 : vector<32x128xf32>
    %21 = vector.broadcast %17 : vector<1x128xf32> to vector<32x128xf32>
    %22 = arith.addf %20, %21 : vector<32x128xf32>
    %cst_11 = arith.constant 0.000000e+00 : f32
    %23 = vector.broadcast %cst_11 : f32 to vector<32x128xf32>
    %24 = arith.maximumf %22, %23 : vector<32x128xf32>
    %c0_12 = arith.constant 0 : index
    %c0_13 = arith.constant 0 : index
    %25 = vector.load %arg6[%c0_12, %c0_13] : memref<32x128xf32, #tpu.memory_space<vmem>>, vector<32x128xf32>
    tpu.vector_store %arg6[%c0_12, %c0_13], %24 {strides = array<i32>} : memref<32x128xf32, #tpu.memory_space<vmem>>, vector<32x128xf32>,
    return
  }
  func.func @transform_0(%arg0: i32, %arg1: i32) -> (i32, i32) {
    %c0_i32 = arith.constant 0 : i32
    return %arg1, %arg0 : i32, i32
  }
  func.func @transform_1(%arg0: i32, %arg1: i32) -> (i32, i32) {
    %c0_i32 = arith.constant 0 : i32
    %c0_i32_0 = arith.constant 0 : i32
    return %c0_i32, %arg0 : i32, i32
  }
  func.func @transform_2(%arg0: i32, %arg1: i32) -> (i32, i32) {
    %c0_i32 = arith.constant 0 : i32
    %c0_i32_0 = arith.constant 0 : i32
    return %c0_i32, %arg0 : i32, i32
  }
  func.func @transform_3(%arg0: i32, %arg1: i32) -> (i32, i32) {
    %c0_i32 = arith.constant 0 : i32
    %c0_i32_0 = arith.constant 0 : i32
    return %c0_i32, %arg0 : i32, i32
  }
  func.func @transform_4(%arg0: i32, %arg1: i32) -> (i32, i32) {
    %c0_i32 = arith.constant 0 : i32
    return %arg1, %arg0 : i32, i32
  }
}

module attributes {stable_mosaic.version = 11 : i64} {
  func.func @_matmul_stats_kernel(%arg0: i32, %arg1: i32, %arg2: memref<64x128xf32, #tpu.memory_space<vmem>>, %arg3: memref<128x128xf32, #tpu.memory_space<vmem>>, %arg4: memref<64x128xf32, #tpu.memory_space<vmem>>, %arg5: memref<2x128xf32, #tpu.memory_space<vmem>>, %arg6: memref<2x128xf32, #tpu.memory_space<vmem>>) attributes {dimension_semantics = [#tpu.dimension_semantics<parallel>, #tpu.dimension_semantics<arbitrary>], iteration_bounds = array<i64: 1, 2>, scalar_prefetch = 0 : i64, scratch_operands = 1 : i64, tpu.core_type = #tpu.core_type<tc>, window_params = [{transform_indices = @transform_0, window_bounds = array<i64: 64, 128>}, {transform_indices = @transform_1, window_bounds = array<i64: 128, 128>}, {transform_indices = @transform_2, window_bounds = array<i64: 64, 128>}, {transform_indices = @transform_3, window_bounds = array<i64: 2, 128>}]} {
    %c0 = arith.constant 0 : index
    %c0_0 = arith.constant 0 : index
    %0 = vector.load %arg2[%c0, %c0_0] : memref<64x128xf32, #tpu.memory_space<vmem>>, vector<64x128xf32>
    %c0_1 = arith.constant 0 : index
    %c0_2 = arith.constant 0 : index
    %1 = vector.load %arg3[%c0_1, %c0_2] : memref<128x128xf32, #tpu.memory_space<vmem>>, vector<128x128xf32>
    %cst = arith.constant dense<0.000000e+00> : vector<64x128xf32>
    %2 = tpu.matmul %0, %1, %cst {dimension_numbers = #tpu.dot_dimension_numbers<[1], [0], [0], [1], [0, 0, 1, 1], [], []>} : vector<64x128xf32>, vector<128x128xf32>, vector<64x128xf32> -> vector<64x128xf32>
    %c0_3 = arith.constant 0 : index
    %c0_4 = arith.constant 0 : index
    %3 = vector.load %arg4[%c0_3, %c0_4] : memref<64x128xf32, #tpu.memory_space<vmem>>, vector<64x128xf32>
    tpu.vector_store %arg4[%c0_3, %c0_4], %2 {strides = array<i32>} : memref<64x128xf32, #tpu.memory_space<vmem>>, vector<64x128xf32>,
    %cst_5 = arith.constant dense<0.000000e+00> : vector<128xf32>
    %4 = vector.multi_reduction <add>, %2, %cst_5 [0] : vector<64x128xf32> to vector<128xf32>
    %5 = vector.shape_cast %4 : vector<128xf32> to vector<1x128xf32>
    %6 = arith.mulf %2, %2 : vector<64x128xf32>
    %cst_6 = arith.constant dense<0.000000e+00> : vector<128xf32>
    %7 = vector.multi_reduction <add>, %6, %cst_6 [0] : vector<64x128xf32> to vector<128xf32>
    %8 = vector.shape_cast %7 : vector<128xf32> to vector<1x128xf32>
    %9 = tpu.concatenate %5, %8 in 0 : vector<1x128xf32>, vector<1x128xf32> -> vector<2x128xf32>
    %c0_i32 = arith.constant 0 : i32
    %10 = arith.cmpi eq, %arg1, %c0_i32 : i32
    %11 = arith.extui %10 : i1 to i32
    %c0_i32_7 = arith.constant 0 : i32
    %12 = arith.cmpi ne, %11, %c0_i32_7 : i32
    scf.if %12 {
      %cst_13 = arith.constant 0.000000e+00 : f32
      %19 = vector.broadcast %cst_13 : f32 to vector<2x128xf32>
      %c0_14 = arith.constant 0 : index
      %c0_15 = arith.constant 0 : index
      %20 = vector.load %arg6[%c0_14, %c0_15] : memref<2x128xf32, #tpu.memory_space<vmem>>, vector<2x128xf32>
      tpu.vector_store %arg6[%c0_14, %c0_15], %19 {strides = array<i32>} : memref<2x128xf32, #tpu.memory_space<vmem>>, vector<2x128xf32>,
    } else {
    }
    %c0_8 = arith.constant 0 : index
    %c0_9 = arith.constant 0 : index
    %13 = vector.load %arg6[%c0_8, %c0_9] : memref<2x128xf32, #tpu.memory_space<vmem>>, vector<2x128xf32>
    %14 = arith.addf %13, %9 : vector<2x128xf32>
    %c0_10 = arith.constant 0 : index
    %c0_11 = arith.constant 0 : index
    %15 = vector.load %arg6[%c0_10, %c0_11] : memref<2x128xf32, #tpu.memory_space<vmem>>, vector<2x128xf32>
    tpu.vector_store %arg6[%c0_10, %c0_11], %14 {strides = array<i32>} : memref<2x128xf32, #tpu.memory_space<vmem>>, vector<2x128xf32>,
    %c1_i32 = arith.constant 1 : i32
    %16 = arith.cmpi eq, %arg1, %c1_i32 : i32
    %17 = arith.extui %16 : i1 to i32
    %c0_i32_12 = arith.constant 0 : i32
    %18 = arith.cmpi ne, %17, %c0_i32_12 : i32
    scf.if %18 {
      %c0_13 = arith.constant 0 : index
      %c0_14 = arith.constant 0 : index
      %19 = vector.load %arg6[%c0_13, %c0_14] : memref<2x128xf32, #tpu.memory_space<vmem>>, vector<2x128xf32>
      %c0_15 = arith.constant 0 : index
      %c0_16 = arith.constant 0 : index
      %20 = vector.load %arg5[%c0_15, %c0_16] : memref<2x128xf32, #tpu.memory_space<vmem>>, vector<2x128xf32>
      tpu.vector_store %arg5[%c0_15, %c0_16], %19 {strides = array<i32>} : memref<2x128xf32, #tpu.memory_space<vmem>>, vector<2x128xf32>,
    } else {
    }
    return
  }
  func.func @transform_0(%arg0: i32, %arg1: i32) -> (i32, i32) {
    %c0_i32 = arith.constant 0 : i32
    %c0_i32_0 = arith.constant 0 : i32
    return %arg1, %c0_i32 : i32, i32
  }
  func.func @transform_1(%arg0: i32, %arg1: i32) -> (i32, i32) {
    %c0_i32 = arith.constant 0 : i32
    %c0_i32_0 = arith.constant 0 : i32
    return %c0_i32, %arg0 : i32, i32
  }
  func.func @transform_2(%arg0: i32, %arg1: i32) -> (i32, i32) {
    %c0_i32 = arith.constant 0 : i32
    return %arg1, %arg0 : i32, i32
  }
  func.func @transform_3(%arg0: i32, %arg1: i32) -> (i32, i32) {
    %c0_i32 = arith.constant 0 : i32
    %c0_i32_0 = arith.constant 0 : i32
    return %c0_i32, %arg0 : i32, i32
  }
}

module attributes {stable_mosaic.version = 11 : i64} {
  func.func @_bn_apply_kernel(%arg0: i32, %arg1: i32, %arg2: memref<64x128xf32, #tpu.memory_space<vmem>>, %arg3: memref<2x128xf32, #tpu.memory_space<vmem>>, %arg4: memref<1x128xf32, #tpu.memory_space<vmem>>, %arg5: memref<1x128xf32, #tpu.memory_space<vmem>>, %arg6: memref<64x128xf32, #tpu.memory_space<vmem>>) attributes {dimension_semantics = [#tpu.dimension_semantics<parallel>, #tpu.dimension_semantics<parallel>], iteration_bounds = array<i64: 1, 2>, scalar_prefetch = 0 : i64, scratch_operands = 0 : i64, tpu.core_type = #tpu.core_type<tc>, window_params = [{transform_indices = @transform_0, window_bounds = array<i64: 64, 128>}, {transform_indices = @transform_1, window_bounds = array<i64: 2, 128>}, {transform_indices = @transform_2, window_bounds = array<i64: 1, 128>}, {transform_indices = @transform_3, window_bounds = array<i64: 1, 128>}, {transform_indices = @transform_4, window_bounds = array<i64: 64, 128>}]} {
    %c0 = arith.constant 0 : index
    %c0_0 = arith.constant 0 : index
    %0 = vector.load %arg3[%c0, %c0_0] : memref<2x128xf32, #tpu.memory_space<vmem>>, vector<1x128xf32>
    %cst = arith.constant 7.812500e-03 : f32
    %1 = vector.broadcast %cst : f32 to vector<1x128xf32>
    %2 = arith.mulf %0, %1 : vector<1x128xf32>
    %c1 = arith.constant 1 : index
    %c0_1 = arith.constant 0 : index
    %3 = vector.load %arg3[%c1, %c0_1] : memref<2x128xf32, #tpu.memory_space<vmem>>, vector<1x128xf32>
    %cst_2 = arith.constant 7.812500e-03 : f32
    %4 = vector.broadcast %cst_2 : f32 to vector<1x128xf32>
    %5 = arith.mulf %3, %4 : vector<1x128xf32>
    %6 = arith.mulf %2, %2 : vector<1x128xf32>
    %7 = arith.subf %5, %6 : vector<1x128xf32>
    %cst_3 = arith.constant 0.000000e+00 : f32
    %8 = vector.broadcast %cst_3 : f32 to vector<1x128xf32>
    %9 = arith.maximumf %7, %8 : vector<1x128xf32>
    %c0_4 = arith.constant 0 : index
    %c0_5 = arith.constant 0 : index
    %10 = vector.load %arg4[%c0_4, %c0_5] : memref<1x128xf32, #tpu.memory_space<vmem>>, vector<1x128xf32>
    %cst_6 = arith.constant 9.99999974E-6 : f32
    %11 = vector.broadcast %cst_6 : f32 to vector<1x128xf32>
    %12 = arith.addf %9, %11 : vector<1x128xf32>
    %13 = math.rsqrt %12 : vector<1x128xf32>
    %14 = arith.mulf %10, %13 : vector<1x128xf32>
    %c0_7 = arith.constant 0 : index
    %c0_8 = arith.constant 0 : index
    %15 = vector.load %arg5[%c0_7, %c0_8] : memref<1x128xf32, #tpu.memory_space<vmem>>, vector<1x128xf32>
    %16 = arith.mulf %2, %14 : vector<1x128xf32>
    %17 = arith.subf %15, %16 : vector<1x128xf32>
    %c0_9 = arith.constant 0 : index
    %c0_10 = arith.constant 0 : index
    %18 = vector.load %arg2[%c0_9, %c0_10] : memref<64x128xf32, #tpu.memory_space<vmem>>, vector<64x128xf32>
    %19 = vector.broadcast %14 : vector<1x128xf32> to vector<64x128xf32>
    %20 = arith.mulf %18, %19 : vector<64x128xf32>
    %21 = vector.broadcast %17 : vector<1x128xf32> to vector<64x128xf32>
    %22 = arith.addf %20, %21 : vector<64x128xf32>
    %c0_11 = arith.constant 0 : index
    %c0_12 = arith.constant 0 : index
    %23 = vector.load %arg6[%c0_11, %c0_12] : memref<64x128xf32, #tpu.memory_space<vmem>>, vector<64x128xf32>
    tpu.vector_store %arg6[%c0_11, %c0_12], %22 {strides = array<i32>} : memref<64x128xf32, #tpu.memory_space<vmem>>, vector<64x128xf32>,
    return
  }
  func.func @transform_0(%arg0: i32, %arg1: i32) -> (i32, i32) {
    %c0_i32 = arith.constant 0 : i32
    return %arg1, %arg0 : i32, i32
  }
  func.func @transform_1(%arg0: i32, %arg1: i32) -> (i32, i32) {
    %c0_i32 = arith.constant 0 : i32
    %c0_i32_0 = arith.constant 0 : i32
    return %c0_i32, %arg0 : i32, i32
  }
  func.func @transform_2(%arg0: i32, %arg1: i32) -> (i32, i32) {
    %c0_i32 = arith.constant 0 : i32
    %c0_i32_0 = arith.constant 0 : i32
    return %c0_i32, %arg0 : i32, i32
  }
  func.func @transform_3(%arg0: i32, %arg1: i32) -> (i32, i32) {
    %c0_i32 = arith.constant 0 : i32
    %c0_i32_0 = arith.constant 0 : i32
    return %c0_i32, %arg0 : i32, i32
  }
  func.func @transform_4(%arg0: i32, %arg1: i32) -> (i32, i32) {
    %c0_i32 = arith.constant 0 : i32
    return %arg1, %arg0 : i32, i32
  }
}

module attributes {stable_mosaic.version = 11 : i64} {
  func.func @_bn_apply_add_relu_kernel(%arg0: i32, %arg1: i32, %arg2: memref<64x128xf32, #tpu.memory_space<vmem>>, %arg3: memref<2x128xf32, #tpu.memory_space<vmem>>, %arg4: memref<1x128xf32, #tpu.memory_space<vmem>>, %arg5: memref<1x128xf32, #tpu.memory_space<vmem>>, %arg6: memref<64x128xf32, #tpu.memory_space<vmem>>, %arg7: memref<64x128xf32, #tpu.memory_space<vmem>>) attributes {dimension_semantics = [#tpu.dimension_semantics<parallel>, #tpu.dimension_semantics<parallel>], iteration_bounds = array<i64: 1, 2>, scalar_prefetch = 0 : i64, scratch_operands = 0 : i64, tpu.core_type = #tpu.core_type<tc>, window_params = [{transform_indices = @transform_0, window_bounds = array<i64: 64, 128>}, {transform_indices = @transform_1, window_bounds = array<i64: 2, 128>}, {transform_indices = @transform_2, window_bounds = array<i64: 1, 128>}, {transform_indices = @transform_3, window_bounds = array<i64: 1, 128>}, {transform_indices = @transform_4, window_bounds = array<i64: 64, 128>}, {transform_indices = @transform_5, window_bounds = array<i64: 64, 128>}]} {
    %c0 = arith.constant 0 : index
    %c0_0 = arith.constant 0 : index
    %0 = vector.load %arg3[%c0, %c0_0] : memref<2x128xf32, #tpu.memory_space<vmem>>, vector<1x128xf32>
    %cst = arith.constant 7.812500e-03 : f32
    %1 = vector.broadcast %cst : f32 to vector<1x128xf32>
    %2 = arith.mulf %0, %1 : vector<1x128xf32>
    %c1 = arith.constant 1 : index
    %c0_1 = arith.constant 0 : index
    %3 = vector.load %arg3[%c1, %c0_1] : memref<2x128xf32, #tpu.memory_space<vmem>>, vector<1x128xf32>
    %cst_2 = arith.constant 7.812500e-03 : f32
    %4 = vector.broadcast %cst_2 : f32 to vector<1x128xf32>
    %5 = arith.mulf %3, %4 : vector<1x128xf32>
    %6 = arith.mulf %2, %2 : vector<1x128xf32>
    %7 = arith.subf %5, %6 : vector<1x128xf32>
    %cst_3 = arith.constant 0.000000e+00 : f32
    %8 = vector.broadcast %cst_3 : f32 to vector<1x128xf32>
    %9 = arith.maximumf %7, %8 : vector<1x128xf32>
    %c0_4 = arith.constant 0 : index
    %c0_5 = arith.constant 0 : index
    %10 = vector.load %arg4[%c0_4, %c0_5] : memref<1x128xf32, #tpu.memory_space<vmem>>, vector<1x128xf32>
    %cst_6 = arith.constant 9.99999974E-6 : f32
    %11 = vector.broadcast %cst_6 : f32 to vector<1x128xf32>
    %12 = arith.addf %9, %11 : vector<1x128xf32>
    %13 = math.rsqrt %12 : vector<1x128xf32>
    %14 = arith.mulf %10, %13 : vector<1x128xf32>
    %c0_7 = arith.constant 0 : index
    %c0_8 = arith.constant 0 : index
    %15 = vector.load %arg5[%c0_7, %c0_8] : memref<1x128xf32, #tpu.memory_space<vmem>>, vector<1x128xf32>
    %16 = arith.mulf %2, %14 : vector<1x128xf32>
    %17 = arith.subf %15, %16 : vector<1x128xf32>
    %c0_9 = arith.constant 0 : index
    %c0_10 = arith.constant 0 : index
    %18 = vector.load %arg2[%c0_9, %c0_10] : memref<64x128xf32, #tpu.memory_space<vmem>>, vector<64x128xf32>
    %19 = vector.broadcast %14 : vector<1x128xf32> to vector<64x128xf32>
    %20 = arith.mulf %18, %19 : vector<64x128xf32>
    %21 = vector.broadcast %17 : vector<1x128xf32> to vector<64x128xf32>
    %22 = arith.addf %20, %21 : vector<64x128xf32>
    %c0_11 = arith.constant 0 : index
    %c0_12 = arith.constant 0 : index
    %23 = vector.load %arg6[%c0_11, %c0_12] : memref<64x128xf32, #tpu.memory_space<vmem>>, vector<64x128xf32>
    %24 = arith.addf %22, %23 : vector<64x128xf32>
    %cst_13 = arith.constant 0.000000e+00 : f32
    %25 = vector.broadcast %cst_13 : f32 to vector<64x128xf32>
    %26 = arith.maximumf %24, %25 : vector<64x128xf32>
    %c0_14 = arith.constant 0 : index
    %c0_15 = arith.constant 0 : index
    %27 = vector.load %arg7[%c0_14, %c0_15] : memref<64x128xf32, #tpu.memory_space<vmem>>, vector<64x128xf32>
    tpu.vector_store %arg7[%c0_14, %c0_15], %26 {strides = array<i32>} : memref<64x128xf32, #tpu.memory_space<vmem>>, vector<64x128xf32>,
    return
  }
  func.func @transform_0(%arg0: i32, %arg1: i32) -> (i32, i32) {
    %c0_i32 = arith.constant 0 : i32
    return %arg1, %arg0 : i32, i32
  }
  func.func @transform_1(%arg0: i32, %arg1: i32) -> (i32, i32) {
    %c0_i32 = arith.constant 0 : i32
    %c0_i32_0 = arith.constant 0 : i32
    return %c0_i32, %arg0 : i32, i32
  }
  func.func @transform_2(%arg0: i32, %arg1: i32) -> (i32, i32) {
    %c0_i32 = arith.constant 0 : i32
    %c0_i32_0 = arith.constant 0 : i32
    return %c0_i32, %arg0 : i32, i32
  }
  func.func @transform_3(%arg0: i32, %arg1: i32) -> (i32, i32) {
    %c0_i32 = arith.constant 0 : i32
    %c0_i32_0 = arith.constant 0 : i32
    return %c0_i32, %arg0 : i32, i32
  }
  func.func @transform_4(%arg0: i32, %arg1: i32) -> (i32, i32) {
    %c0_i32 = arith.constant 0 : i32
    return %arg1, %arg0 : i32, i32
  }
  func.func @transform_5(%arg0: i32, %arg1: i32) -> (i32, i32) {
    %c0_i32 = arith.constant 0 : i32
    return %arg1, %arg0 : i32, i32
  }
}

module attributes {stable_mosaic.version = 11 : i64} {
  func.func @_bn_apply_kernel(%arg0: i32, %arg1: i32, %arg2: memref<64x128xf32, #tpu.memory_space<vmem>>, %arg3: memref<2x128xf32, #tpu.memory_space<vmem>>, %arg4: memref<1x128xf32, #tpu.memory_space<vmem>>, %arg5: memref<1x128xf32, #tpu.memory_space<vmem>>, %arg6: memref<64x128xf32, #tpu.memory_space<vmem>>) attributes {dimension_semantics = [#tpu.dimension_semantics<parallel>, #tpu.dimension_semantics<parallel>], iteration_bounds = array<i64: 1, 2>, scalar_prefetch = 0 : i64, scratch_operands = 0 : i64, tpu.core_type = #tpu.core_type<tc>, window_params = [{transform_indices = @transform_0, window_bounds = array<i64: 64, 128>}, {transform_indices = @transform_1, window_bounds = array<i64: 2, 128>}, {transform_indices = @transform_2, window_bounds = array<i64: 1, 128>}, {transform_indices = @transform_3, window_bounds = array<i64: 1, 128>}, {transform_indices = @transform_4, window_bounds = array<i64: 64, 128>}]} {
    %c0 = arith.constant 0 : index
    %c0_0 = arith.constant 0 : index
    %0 = vector.load %arg3[%c0, %c0_0] : memref<2x128xf32, #tpu.memory_space<vmem>>, vector<1x128xf32>
    %cst = arith.constant 7.812500e-03 : f32
    %1 = vector.broadcast %cst : f32 to vector<1x128xf32>
    %2 = arith.mulf %0, %1 : vector<1x128xf32>
    %c1 = arith.constant 1 : index
    %c0_1 = arith.constant 0 : index
    %3 = vector.load %arg3[%c1, %c0_1] : memref<2x128xf32, #tpu.memory_space<vmem>>, vector<1x128xf32>
    %cst_2 = arith.constant 7.812500e-03 : f32
    %4 = vector.broadcast %cst_2 : f32 to vector<1x128xf32>
    %5 = arith.mulf %3, %4 : vector<1x128xf32>
    %6 = arith.mulf %2, %2 : vector<1x128xf32>
    %7 = arith.subf %5, %6 : vector<1x128xf32>
    %cst_3 = arith.constant 0.000000e+00 : f32
    %8 = vector.broadcast %cst_3 : f32 to vector<1x128xf32>
    %9 = arith.maximumf %7, %8 : vector<1x128xf32>
    %c0_4 = arith.constant 0 : index
    %c0_5 = arith.constant 0 : index
    %10 = vector.load %arg4[%c0_4, %c0_5] : memref<1x128xf32, #tpu.memory_space<vmem>>, vector<1x128xf32>
    %cst_6 = arith.constant 9.99999974E-6 : f32
    %11 = vector.broadcast %cst_6 : f32 to vector<1x128xf32>
    %12 = arith.addf %9, %11 : vector<1x128xf32>
    %13 = math.rsqrt %12 : vector<1x128xf32>
    %14 = arith.mulf %10, %13 : vector<1x128xf32>
    %c0_7 = arith.constant 0 : index
    %c0_8 = arith.constant 0 : index
    %15 = vector.load %arg5[%c0_7, %c0_8] : memref<1x128xf32, #tpu.memory_space<vmem>>, vector<1x128xf32>
    %16 = arith.mulf %2, %14 : vector<1x128xf32>
    %17 = arith.subf %15, %16 : vector<1x128xf32>
    %c0_9 = arith.constant 0 : index
    %c0_10 = arith.constant 0 : index
    %18 = vector.load %arg2[%c0_9, %c0_10] : memref<64x128xf32, #tpu.memory_space<vmem>>, vector<64x128xf32>
    %19 = vector.broadcast %14 : vector<1x128xf32> to vector<64x128xf32>
    %20 = arith.mulf %18, %19 : vector<64x128xf32>
    %21 = vector.broadcast %17 : vector<1x128xf32> to vector<64x128xf32>
    %22 = arith.addf %20, %21 : vector<64x128xf32>
    %cst_11 = arith.constant 0.000000e+00 : f32
    %23 = vector.broadcast %cst_11 : f32 to vector<64x128xf32>
    %24 = arith.maximumf %22, %23 : vector<64x128xf32>
    %c0_12 = arith.constant 0 : index
    %c0_13 = arith.constant 0 : index
    %25 = vector.load %arg6[%c0_12, %c0_13] : memref<64x128xf32, #tpu.memory_space<vmem>>, vector<64x128xf32>
    tpu.vector_store %arg6[%c0_12, %c0_13], %24 {strides = array<i32>} : memref<64x128xf32, #tpu.memory_space<vmem>>, vector<64x128xf32>,
    return
  }
  func.func @transform_0(%arg0: i32, %arg1: i32) -> (i32, i32) {
    %c0_i32 = arith.constant 0 : i32
    return %arg1, %arg0 : i32, i32
  }
  func.func @transform_1(%arg0: i32, %arg1: i32) -> (i32, i32) {
    %c0_i32 = arith.constant 0 : i32
    %c0_i32_0 = arith.constant 0 : i32
    return %c0_i32, %arg0 : i32, i32
  }
  func.func @transform_2(%arg0: i32, %arg1: i32) -> (i32, i32) {
    %c0_i32 = arith.constant 0 : i32
    %c0_i32_0 = arith.constant 0 : i32
    return %c0_i32, %arg0 : i32, i32
  }
  func.func @transform_3(%arg0: i32, %arg1: i32) -> (i32, i32) {
    %c0_i32 = arith.constant 0 : i32
    %c0_i32_0 = arith.constant 0 : i32
    return %c0_i32, %arg0 : i32, i32
  }
  func.func @transform_4(%arg0: i32, %arg1: i32) -> (i32, i32) {
    %c0_i32 = arith.constant 0 : i32
    return %arg1, %arg0 : i32, i32
  }
}

module attributes {stable_mosaic.version = 11 : i64} {
  func.func @_conv3x3_stats_kernel(%arg0: i32, %arg1: i32, %arg2: memref<1x6x10x128xf32, #tpu.memory_space<vmem>>, %arg3: memref<1152x128xf32, #tpu.memory_space<vmem>>, %arg4: memref<32x128xf32, #tpu.memory_space<vmem>>, %arg5: memref<2x128xf32, #tpu.memory_space<vmem>>, %arg6: memref<2x128xf32, #tpu.memory_space<vmem>>) attributes {dimension_semantics = [#tpu.dimension_semantics<parallel>, #tpu.dimension_semantics<arbitrary>], iteration_bounds = array<i64: 1, 4>, scalar_prefetch = 0 : i64, scratch_operands = 1 : i64, tpu.core_type = #tpu.core_type<tc>, window_params = [{transform_indices = @transform_0, window_bounds = array<i64: 1, 6, 10, 128>}, {transform_indices = @transform_1, window_bounds = array<i64: 1152, 128>}, {transform_indices = @transform_2, window_bounds = array<i64: 32, 128>}, {transform_indices = @transform_3, window_bounds = array<i64: 2, 128>}]} {
    %c0 = arith.constant 0 : index
    %c0_0 = arith.constant 0 : index
    %c0_1 = arith.constant 0 : index
    %c0_2 = arith.constant 0 : index
    %0 = vector.load %arg2[%c0, %c0_0, %c0_1, %c0_2] : memref<1x6x10x128xf32, #tpu.memory_space<vmem>>, vector<1x4x8x128xf32>
    %1 = vector.shape_cast %0 : vector<1x4x8x128xf32> to vector<4x8x128xf32>
    %2 = vector.shape_cast %1 : vector<4x8x128xf32> to vector<32x128xf32>
    %c0_3 = arith.constant 0 : index
    %c0_4 = arith.constant 0 : index
    %c1 = arith.constant 1 : index
    %c0_5 = arith.constant 0 : index
    %3 = vector.load %arg2[%c0_3, %c0_4, %c1, %c0_5] : memref<1x6x10x128xf32, #tpu.memory_space<vmem>>, vector<1x4x8x128xf32>
    %4 = vector.shape_cast %3 : vector<1x4x8x128xf32> to vector<4x8x128xf32>
    %5 = vector.shape_cast %4 : vector<4x8x128xf32> to vector<32x128xf32>
    %c0_6 = arith.constant 0 : index
    %c0_7 = arith.constant 0 : index
    %c2 = arith.constant 2 : index
    %c0_8 = arith.constant 0 : index
    %6 = vector.load %arg2[%c0_6, %c0_7, %c2, %c0_8] : memref<1x6x10x128xf32, #tpu.memory_space<vmem>>, vector<1x4x8x128xf32>
    %7 = vector.shape_cast %6 : vector<1x4x8x128xf32> to vector<4x8x128xf32>
    %8 = vector.shape_cast %7 : vector<4x8x128xf32> to vector<32x128xf32>
    %c0_9 = arith.constant 0 : index
    %c1_10 = arith.constant 1 : index
    %c0_11 = arith.constant 0 : index
    %c0_12 = arith.constant 0 : index
    %9 = vector.load %arg2[%c0_9, %c1_10, %c0_11, %c0_12] : memref<1x6x10x128xf32, #tpu.memory_space<vmem>>, vector<1x4x8x128xf32>
    %10 = vector.shape_cast %9 : vector<1x4x8x128xf32> to vector<4x8x128xf32>
    %11 = vector.shape_cast %10 : vector<4x8x128xf32> to vector<32x128xf32>
    %c0_13 = arith.constant 0 : index
    %c1_14 = arith.constant 1 : index
    %c1_15 = arith.constant 1 : index
    %c0_16 = arith.constant 0 : index
    %12 = vector.load %arg2[%c0_13, %c1_14, %c1_15, %c0_16] : memref<1x6x10x128xf32, #tpu.memory_space<vmem>>, vector<1x4x8x128xf32>
    %13 = vector.shape_cast %12 : vector<1x4x8x128xf32> to vector<4x8x128xf32>
    %14 = vector.shape_cast %13 : vector<4x8x128xf32> to vector<32x128xf32>
    %c0_17 = arith.constant 0 : index
    %c1_18 = arith.constant 1 : index
    %c2_19 = arith.constant 2 : index
    %c0_20 = arith.constant 0 : index
    %15 = vector.load %arg2[%c0_17, %c1_18, %c2_19, %c0_20] : memref<1x6x10x128xf32, #tpu.memory_space<vmem>>, vector<1x4x8x128xf32>
    %16 = vector.shape_cast %15 : vector<1x4x8x128xf32> to vector<4x8x128xf32>
    %17 = vector.shape_cast %16 : vector<4x8x128xf32> to vector<32x128xf32>
    %c0_21 = arith.constant 0 : index
    %c2_22 = arith.constant 2 : index
    %c0_23 = arith.constant 0 : index
    %c0_24 = arith.constant 0 : index
    %18 = vector.load %arg2[%c0_21, %c2_22, %c0_23, %c0_24] : memref<1x6x10x128xf32, #tpu.memory_space<vmem>>, vector<1x4x8x128xf32>
    %19 = vector.shape_cast %18 : vector<1x4x8x128xf32> to vector<4x8x128xf32>
    %20 = vector.shape_cast %19 : vector<4x8x128xf32> to vector<32x128xf32>
    %c0_25 = arith.constant 0 : index
    %c2_26 = arith.constant 2 : index
    %c1_27 = arith.constant 1 : index
    %c0_28 = arith.constant 0 : index
    %21 = vector.load %arg2[%c0_25, %c2_26, %c1_27, %c0_28] : memref<1x6x10x128xf32, #tpu.memory_space<vmem>>, vector<1x4x8x128xf32>
    %22 = vector.shape_cast %21 : vector<1x4x8x128xf32> to vector<4x8x128xf32>
    %23 = vector.shape_cast %22 : vector<4x8x128xf32> to vector<32x128xf32>
    %c0_29 = arith.constant 0 : index
    %c2_30 = arith.constant 2 : index
    %c2_31 = arith.constant 2 : index
    %c0_32 = arith.constant 0 : index
    %24 = vector.load %arg2[%c0_29, %c2_30, %c2_31, %c0_32] : memref<1x6x10x128xf32, #tpu.memory_space<vmem>>, vector<1x4x8x128xf32>
    %25 = vector.shape_cast %24 : vector<1x4x8x128xf32> to vector<4x8x128xf32>
    %26 = vector.shape_cast %25 : vector<4x8x128xf32> to vector<32x128xf32>
    %27 = tpu.concatenate %2, %5, %8, %11, %14, %17, %20, %23, %26 in 1 : vector<32x128xf32>, vector<32x128xf32>, vector<32x128xf32>, vector<32x128xf32>, vector<32x128xf32>, vector<32x128xf32>, vector<32x128xf32>, vector<32x128xf32>, vector<32x128xf32> -> vector<32x1152xf32>
    %c0_33 = arith.constant 0 : index
    %c0_34 = arith.constant 0 : index
    %28 = vector.load %arg3[%c0_33, %c0_34] : memref<1152x128xf32, #tpu.memory_space<vmem>>, vector<1152x128xf32>
    %cst = arith.constant dense<0.000000e+00> : vector<32x128xf32>
    %29 = tpu.matmul %27, %28, %cst {dimension_numbers = #tpu.dot_dimension_numbers<[1], [0], [0], [1], [0, 0, 1, 1], [], []>} : vector<32x1152xf32>, vector<1152x128xf32>, vector<32x128xf32> -> vector<32x128xf32>
    %c0_35 = arith.constant 0 : index
    %c0_36 = arith.constant 0 : index
    %30 = vector.load %arg4[%c0_35, %c0_36] : memref<32x128xf32, #tpu.memory_space<vmem>>, vector<32x128xf32>
    tpu.vector_store %arg4[%c0_35, %c0_36], %29 {strides = array<i32>} : memref<32x128xf32, #tpu.memory_space<vmem>>, vector<32x128xf32>,
    %cst_37 = arith.constant dense<0.000000e+00> : vector<128xf32>
    %31 = vector.multi_reduction <add>, %29, %cst_37 [0] : vector<32x128xf32> to vector<128xf32>
    %32 = vector.shape_cast %31 : vector<128xf32> to vector<1x128xf32>
    %33 = arith.mulf %29, %29 : vector<32x128xf32>
    %cst_38 = arith.constant dense<0.000000e+00> : vector<128xf32>
    %34 = vector.multi_reduction <add>, %33, %cst_38 [0] : vector<32x128xf32> to vector<128xf32>
    %35 = vector.shape_cast %34 : vector<128xf32> to vector<1x128xf32>
    %36 = tpu.concatenate %32, %35 in 0 : vector<1x128xf32>, vector<1x128xf32> -> vector<2x128xf32>
    %c0_i32 = arith.constant 0 : i32
    %37 = arith.cmpi eq, %arg1, %c0_i32 : i32
    %38 = arith.extui %37 : i1 to i32
    %c0_i32_39 = arith.constant 0 : i32
    %39 = arith.cmpi ne, %38, %c0_i32_39 : i32
    scf.if %39 {
      %cst_45 = arith.constant 0.000000e+00 : f32
      %46 = vector.broadcast %cst_45 : f32 to vector<2x128xf32>
      %c0_46 = arith.constant 0 : index
      %c0_47 = arith.constant 0 : index
      %47 = vector.load %arg6[%c0_46, %c0_47] : memref<2x128xf32, #tpu.memory_space<vmem>>, vector<2x128xf32>
      tpu.vector_store %arg6[%c0_46, %c0_47], %46 {strides = array<i32>} : memref<2x128xf32, #tpu.memory_space<vmem>>, vector<2x128xf32>,
    } else {
    }
    %c0_40 = arith.constant 0 : index
    %c0_41 = arith.constant 0 : index
    %40 = vector.load %arg6[%c0_40, %c0_41] : memref<2x128xf32, #tpu.memory_space<vmem>>, vector<2x128xf32>
    %41 = arith.addf %40, %36 : vector<2x128xf32>
    %c0_42 = arith.constant 0 : index
    %c0_43 = arith.constant 0 : index
    %42 = vector.load %arg6[%c0_42, %c0_43] : memref<2x128xf32, #tpu.memory_space<vmem>>, vector<2x128xf32>
    tpu.vector_store %arg6[%c0_42, %c0_43], %41 {strides = array<i32>} : memref<2x128xf32, #tpu.memory_space<vmem>>, vector<2x128xf32>,
    %c3_i32 = arith.constant 3 : i32
    %43 = arith.cmpi eq, %arg1, %c3_i32 : i32
    %44 = arith.extui %43 : i1 to i32
    %c0_i32_44 = arith.constant 0 : i32
    %45 = arith.cmpi ne, %44, %c0_i32_44 : i32
    scf.if %45 {
      %c0_45 = arith.constant 0 : index
      %c0_46 = arith.constant 0 : index
      %46 = vector.load %arg6[%c0_45, %c0_46] : memref<2x128xf32, #tpu.memory_space<vmem>>, vector<2x128xf32>
      %c0_47 = arith.constant 0 : index
      %c0_48 = arith.constant 0 : index
      %47 = vector.load %arg5[%c0_47, %c0_48] : memref<2x128xf32, #tpu.memory_space<vmem>>, vector<2x128xf32>
      tpu.vector_store %arg5[%c0_47, %c0_48], %46 {strides = array<i32>} : memref<2x128xf32, #tpu.memory_space<vmem>>, vector<2x128xf32>,
    } else {
    }
    return
  }
  func.func @transform_0(%arg0: i32, %arg1: i32) -> (i32, i32, i32, i32) {
    %c0_i32 = arith.constant 0 : i32
    %c0_i32_0 = arith.constant 0 : i32
    %c0_i32_1 = arith.constant 0 : i32
    %c0_i32_2 = arith.constant 0 : i32
    return %arg1, %c0_i32, %c0_i32_0, %c0_i32_1 : i32, i32, i32, i32
  }
  func.func @transform_1(%arg0: i32, %arg1: i32) -> (i32, i32) {
    %c0_i32 = arith.constant 0 : i32
    %c0_i32_0 = arith.constant 0 : i32
    return %c0_i32, %arg0 : i32, i32
  }
  func.func @transform_2(%arg0: i32, %arg1: i32) -> (i32, i32) {
    %c0_i32 = arith.constant 0 : i32
    return %arg1, %arg0 : i32, i32
  }
  func.func @transform_3(%arg0: i32, %arg1: i32) -> (i32, i32) {
    %c0_i32 = arith.constant 0 : i32
    %c0_i32_0 = arith.constant 0 : i32
    return %c0_i32, %arg0 : i32, i32
  }
}

module attributes {stable_mosaic.version = 11 : i64} {
  func.func @_bn_apply_add_relu_kernel(%arg0: i32, %arg1: i32, %arg2: memref<64x128xf32, #tpu.memory_space<vmem>>, %arg3: memref<2x128xf32, #tpu.memory_space<vmem>>, %arg4: memref<1x128xf32, #tpu.memory_space<vmem>>, %arg5: memref<1x128xf32, #tpu.memory_space<vmem>>, %arg6: memref<64x128xf32, #tpu.memory_space<vmem>>, %arg7: memref<64x128xf32, #tpu.memory_space<vmem>>) attributes {dimension_semantics = [#tpu.dimension_semantics<parallel>, #tpu.dimension_semantics<parallel>], iteration_bounds = array<i64: 1, 2>, scalar_prefetch = 0 : i64, scratch_operands = 0 : i64, tpu.core_type = #tpu.core_type<tc>, window_params = [{transform_indices = @transform_0, window_bounds = array<i64: 64, 128>}, {transform_indices = @transform_1, window_bounds = array<i64: 2, 128>}, {transform_indices = @transform_2, window_bounds = array<i64: 1, 128>}, {transform_indices = @transform_3, window_bounds = array<i64: 1, 128>}, {transform_indices = @transform_4, window_bounds = array<i64: 64, 128>}, {transform_indices = @transform_5, window_bounds = array<i64: 64, 128>}]} {
    %c0 = arith.constant 0 : index
    %c0_0 = arith.constant 0 : index
    %0 = vector.load %arg3[%c0, %c0_0] : memref<2x128xf32, #tpu.memory_space<vmem>>, vector<1x128xf32>
    %cst = arith.constant 7.812500e-03 : f32
    %1 = vector.broadcast %cst : f32 to vector<1x128xf32>
    %2 = arith.mulf %0, %1 : vector<1x128xf32>
    %c1 = arith.constant 1 : index
    %c0_1 = arith.constant 0 : index
    %3 = vector.load %arg3[%c1, %c0_1] : memref<2x128xf32, #tpu.memory_space<vmem>>, vector<1x128xf32>
    %cst_2 = arith.constant 7.812500e-03 : f32
    %4 = vector.broadcast %cst_2 : f32 to vector<1x128xf32>
    %5 = arith.mulf %3, %4 : vector<1x128xf32>
    %6 = arith.mulf %2, %2 : vector<1x128xf32>
    %7 = arith.subf %5, %6 : vector<1x128xf32>
    %cst_3 = arith.constant 0.000000e+00 : f32
    %8 = vector.broadcast %cst_3 : f32 to vector<1x128xf32>
    %9 = arith.maximumf %7, %8 : vector<1x128xf32>
    %c0_4 = arith.constant 0 : index
    %c0_5 = arith.constant 0 : index
    %10 = vector.load %arg4[%c0_4, %c0_5] : memref<1x128xf32, #tpu.memory_space<vmem>>, vector<1x128xf32>
    %cst_6 = arith.constant 9.99999974E-6 : f32
    %11 = vector.broadcast %cst_6 : f32 to vector<1x128xf32>
    %12 = arith.addf %9, %11 : vector<1x128xf32>
    %13 = math.rsqrt %12 : vector<1x128xf32>
    %14 = arith.mulf %10, %13 : vector<1x128xf32>
    %c0_7 = arith.constant 0 : index
    %c0_8 = arith.constant 0 : index
    %15 = vector.load %arg5[%c0_7, %c0_8] : memref<1x128xf32, #tpu.memory_space<vmem>>, vector<1x128xf32>
    %16 = arith.mulf %2, %14 : vector<1x128xf32>
    %17 = arith.subf %15, %16 : vector<1x128xf32>
    %c0_9 = arith.constant 0 : index
    %c0_10 = arith.constant 0 : index
    %18 = vector.load %arg2[%c0_9, %c0_10] : memref<64x128xf32, #tpu.memory_space<vmem>>, vector<64x128xf32>
    %19 = vector.broadcast %14 : vector<1x128xf32> to vector<64x128xf32>
    %20 = arith.mulf %18, %19 : vector<64x128xf32>
    %21 = vector.broadcast %17 : vector<1x128xf32> to vector<64x128xf32>
    %22 = arith.addf %20, %21 : vector<64x128xf32>
    %c0_11 = arith.constant 0 : index
    %c0_12 = arith.constant 0 : index
    %23 = vector.load %arg6[%c0_11, %c0_12] : memref<64x128xf32, #tpu.memory_space<vmem>>, vector<64x128xf32>
    %24 = arith.addf %22, %23 : vector<64x128xf32>
    %cst_13 = arith.constant 0.000000e+00 : f32
    %25 = vector.broadcast %cst_13 : f32 to vector<64x128xf32>
    %26 = arith.maximumf %24, %25 : vector<64x128xf32>
    %c0_14 = arith.constant 0 : index
    %c0_15 = arith.constant 0 : index
    %27 = vector.load %arg7[%c0_14, %c0_15] : memref<64x128xf32, #tpu.memory_space<vmem>>, vector<64x128xf32>
    tpu.vector_store %arg7[%c0_14, %c0_15], %26 {strides = array<i32>} : memref<64x128xf32, #tpu.memory_space<vmem>>, vector<64x128xf32>,
    return
  }
  func.func @transform_0(%arg0: i32, %arg1: i32) -> (i32, i32) {
    %c0_i32 = arith.constant 0 : i32
    return %arg1, %arg0 : i32, i32
  }
  func.func @transform_1(%arg0: i32, %arg1: i32) -> (i32, i32) {
    %c0_i32 = arith.constant 0 : i32
    %c0_i32_0 = arith.constant 0 : i32
    return %c0_i32, %arg0 : i32, i32
  }
  func.func @transform_2(%arg0: i32, %arg1: i32) -> (i32, i32) {
    %c0_i32 = arith.constant 0 : i32
    %c0_i32_0 = arith.constant 0 : i32
    return %c0_i32, %arg0 : i32, i32
  }
  func.func @transform_3(%arg0: i32, %arg1: i32) -> (i32, i32) {
    %c0_i32 = arith.constant 0 : i32
    %c0_i32_0 = arith.constant 0 : i32
    return %c0_i32, %arg0 : i32, i32
  }
  func.func @transform_4(%arg0: i32, %arg1: i32) -> (i32, i32) {
    %c0_i32 = arith.constant 0 : i32
    return %arg1, %arg0 : i32, i32
  }
  func.func @transform_5(%arg0: i32, %arg1: i32) -> (i32, i32) {
    %c0_i32 = arith.constant 0 : i32
    return %arg1, %arg0 : i32, i32
  }
}

</mosaic_0001>

<bundles_post_ra>
// kernel: residual_block_psp_pallas.14
= control target key start
LH: loop header
LB: loop body
LE: loop exit
PB: predicated region body
PF: predicated region fallthrough
CT: control target
= control target key end

     0   :  { %s1012_s12 = smov 0   ;;  %s1014_s13 = smov 0   ;;  %s1248_s0 = inlined_call_operand.vmem [shape: f32[512,128], index: 0, kind: input, shape index: {}]   ;;  %s1249_s1 = inlined_call_operand.vmem [shape: f32[128,128], index: 1, kind: input, shape index: {}]   ;;  %s1250_s2 = inlined_call_operand.vmem [shape: f32[512,128], index: 2, kind: output, shape index: {0}]   ;;  %s1251_s3 = inlined_call_operand.vmem [shape: f32[2,128], index: 3, kind: output, shape index: {1}]  }
   0x1   :  { %s1016_s14 = smov 0  }
   0x2 LB: > { %s23_s15 = sadd.s32 1, %s985_s13  ;;  %p772_p0 = scmp.ge.s32.totalorder %s989_s14, 1  ;;  %s989_s14 = sphi %s1016_s14, %s14_s14   ;;  %s985_s13 = sphi %s1014_s13, %s1253_s13   ;;  %s981_s12 = sphi %s1012_s12, %s1252_s12  }
   0x3   : > { %p24_p1 = scmp.ge.s32.totalorder %s23_s15, 2  ;;  %p164_p2 = scmp.lt.s32.totalorder %s989_s14, 3 }
   0x5   : > { %s1255_s15 = smov (%p24_p1, %s23_s15), 0  ;;  %p165_p3 = pnand %p772_p0, %p164_p2 }
   0x6   : > { %s773_s20 = sshll.u32 (!%p165_p3), %s981_s12, 5  ;;  %p777_p5 = scmp.ne.s32.totalorder (!%p165_p3), %s981_s12, 0 }
   0x7   : > { %168 = sbr.rel (%p165_p3) target bundleno = 339 (0x153), region = 28  ;;  %p200_p4 = scmp.lt.s32.totalorder (!%p165_p3), %s773_s20, 63 }
   0xc   : > { %v269_v0 = vld [vmem:[%s1249_s1 + $0x78] sm:$0xff]  ;;  %v268_v1 = vld [vmem:[%s1249_s1 + $0x70] sm:$0xff]  ;;  %v267_v2 = vld [vmem:[%s1249_s1 + $0x68] sm:$0xff]  ;;  %s1257_s20 = smov (!%p200_p4, %s773_s20), 63  ;;  %vm633_vm0 = vcmask 1040384  }
   0xd   : > { %830 = vmatprep.subr.mxu0 %v269_v0  ;;  %910 = vmatprep.subr.mxu1 %v269_v0  ;;  %v266_v3 = vld [vmem:[%s1249_s1 + $0x60] sm:$0xff]  ;;  %s774_s25 = sshll.u32 %s1257_s20, 3  ;;  %v265_v4 = vld [vmem:[%s1249_s1 + $0x58] sm:$0xff]  ;;  %v264_v6 = vld [vmem:[%s1249_s1 + $0x50] sm:$0xff] }
   0xe   : > { %831 = vmatpush3.msra.mxu0 %v269_v0  ;;  %926 = vmatpush3.msra.mxu1 %v269_v0  ;;  %s1056_s30 = scalar_lea.vmem %s1248_s0, %s774_s25  ;;  %v263_v7 = vld [vmem:[%s1249_s1 + $0x48] sm:$0xff]  ;;  %v262_v8 = vld [vmem:[%s1249_s1 + $0x40] sm:$0xff]  ;;  %v261_v9 = vld [vmem:[%s1249_s1 + $0x38] sm:$0xff]  ;;  %s1128_s8 = scalar_lea.vmem %s1250_s2, %s774_s25 }
   0xf   : > { %832 = vmatprep.subr.mxu0 %v268_v1  ;;  %911 = vmatprep.subr.mxu1 %v268_v1  ;;  %v222_v5 = vld [vmem:[%s1056_s30] sm:$0xff]  ;;  %v260_v10 = vld [vmem:[%s1249_s1 + $0x30] sm:$0xff]  ;;  %v259_v11 = vld [vmem:[%s1249_s1 + $0x28] sm:$0xff] }
  0x10   : > { %833 = vmatpush3.msra.mxu0 %v268_v1  ;;  %927 = vmatpush3.msra.mxu1 %v268_v1  ;;  %v258_v12 = vld [vmem:[%s1249_s1 + $0x20] sm:$0xff]  ;;  %v257_v13 = vld [vmem:[%s1249_s1 + $0x18] sm:$0xff]  ;;  %v256_v14 = vld [vmem:[%s1249_s1 + $0x10] sm:$0xff] }
  0x11   : > { %834 = vmatprep.subr.mxu0 %v267_v2  ;;  %912 = vmatprep.subr.mxu1 %v267_v2  ;;  %v255_v15 = vld [vmem:[%s1249_s1 + $0x8] sm:$0xff]  ;;  %v254_v16 = vld [vmem:[%s1249_s1] sm:$0xff]  ;;  %v224_v18 = vld [vmem:[%s1056_s30 + $0x10] sm:$0xff] }
  0x12   : > { %835 = vmatpush3.msra.mxu0 %v267_v2  ;;  %928 = vmatpush3.msra.mxu1 %v267_v2  ;;  %v223_v17 = vld [vmem:[%s1056_s30 + $0x8] sm:$0xff]  ;;  %v238_v19 = vld [vmem:[%s1056_s30 + $0x80] sm:$0xff]  ;;  %v240_v21 = vld [vmem:[%s1056_s30 + $0x90] sm:$0xff] }
  0x13   : > { %836 = vmatprep.subr.mxu0 %v266_v3  ;;  %913 = vmatprep.subr.mxu1 %v266_v3  ;;  %v239_v20 = vld [vmem:[%s1056_s30 + $0x88] sm:$0xff]  ;;  %v225_v22 = vld [vmem:[%s1056_s30 + $0x18] sm:$0xff]  ;;  %v226_v23 = vld [vmem:[%s1056_s30 + $0x20] sm:$0xff] }
  0x14   : > { %837 = vmatpush3.msra.mxu0 %v266_v3  ;;  %862 = vmatprep.mubr.f32.mxu0 %v222_v5  ;;  %v241_v24 = vld [vmem:[%s1056_s30 + $0x98] sm:$0xff]  ;;  %v242_v25 = vld [vmem:[%s1056_s30 + $0xa0] sm:$0xff]  ;;  %v227_v26 = vld [vmem:[%s1056_s30 + $0x28] sm:$0xff] }
  0x15   : > { %838 = vmatprep.subr.mxu0 %v265_v4  ;;  %929 = vmatpush3.msra.mxu1 %v266_v3  ;;  %v228_v27 = vld [vmem:[%s1056_s30 + $0x30] sm:$0xff]  ;;  %v243_v28 = vld [vmem:[%s1056_s30 + $0xa8] sm:$0xff]  ;;  %v229_v30 = vld [vmem:[%s1056_s30 + $0x38] sm:$0xff] }
  0x16   : > { %839 = vmatpush3.msra.mxu0 %v265_v4  ;;  %914 = vmatprep.subr.mxu1 %v265_v4  ;;  %v244_v29 = vld [vmem:[%s1056_s30 + $0xb0] sm:$0xff]  ;;  %v230_v31 = vld [vmem:[%s1056_s30 + $0x40] sm:$0xff]  ;;  %v245_v32 = vld [vmem:[%s1056_s30 + $0xb8] sm:$0xff] }
  0x17   : > { %840 = vmatprep.subr.mxu0 %v264_v6  ;;  %930 = vmatpush3.msra.mxu1 %v265_v4  ;;  %v246_v33 = vld [vmem:[%s1056_s30 + $0xc0] sm:$0xff]  ;;  %v231_v34 = vld [vmem:[%s1056_s30 + $0x48] sm:$0xff]  ;;  %v232_v35 = vld [vmem:[%s1056_s30 + $0x50] sm:$0xff] }
  0x18   : > { %841 = vmatpush3.msra.mxu0 %v264_v6  ;;  %915 = vmatprep.subr.mxu1 %v264_v6  ;;  %v247_v36 = vld [vmem:[%s1056_s30 + $0xc8] sm:$0xff]  ;;  %v248_v37 = vld [vmem:[%s1056_s30 + $0xd0] sm:$0xff]  ;;  %v233_v38 = vld [vmem:[%s1056_s30 + $0x58] sm:$0xff] }
  0x19   : > { %842 = vmatprep.subr.mxu0 %v263_v7  ;;  %931 = vmatpush3.msra.mxu1 %v264_v6  ;;  %v234_v39 = vld [vmem:[%s1056_s30 + $0x60] sm:$0xff]  ;;  %v249_v40 = vld [vmem:[%s1056_s30 + $0xd8] sm:$0xff]  ;;  %v235_v42 = vld [vmem:[%s1056_s30 + $0x68] sm:$0xff] }
  0x1a   : > { %843 = vmatpush3.msra.mxu0 %v263_v7  ;;  %916 = vmatprep.subr.mxu1 %v263_v7  ;;  %v250_v41 = vld [vmem:[%s1056_s30 + $0xe0] sm:$0xff]  ;;  %v236_v43 = vld [vmem:[%s1056_s30 + $0x70] sm:$0xff]  ;;  %v251_v44 = vld [vmem:[%s1056_s30 + $0xe8] sm:$0xff] }
  0x1b   : > { %844 = vmatprep.subr.mxu0 %v262_v8  ;;  %932 = vmatpush3.msra.mxu1 %v263_v7  ;;  %v252_v45 = vld [vmem:[%s1056_s30 + $0xf0] sm:$0xff]  ;;  %v237_v46 = vld [vmem:[%s1056_s30 + $0x78] sm:$0xff] }
  0x1c   : > { %845 = vmatpush3.msra.mxu0 %v262_v8  ;;  %917 = vmatprep.subr.mxu1 %v262_v8  ;;  %v253_v47 = vld [vmem:[%s1056_s30 + $0xf8] sm:$0xff] }
  0x1d   : > { %846 = vmatprep.subr.mxu0 %v261_v9  ;;  %933 = vmatpush3.msra.mxu1 %v262_v8 }
  0x1e   : > { %847 = vmatpush3.msra.mxu0 %v261_v9  ;;  %918 = vmatprep.subr.mxu1 %v261_v9 }
  0x1f   : > { %848 = vmatprep.subr.mxu0 %v260_v10  ;;  %934 = vmatpush3.msra.mxu1 %v261_v9 }
  0x20   : > { %849 = vmatpush3.msra.mxu0 %v260_v10  ;;  %919 = vmatprep.subr.mxu1 %v260_v10 }
  0x21   : > { %850 = vmatprep.subr.mxu0 %v259_v11  ;;  %935 = vmatpush3.msra.mxu1 %v260_v10 }
  0x22   : > { %851 = vmatpush3.msra.mxu0 %v259_v11  ;;  %920 = vmatprep.subr.mxu1 %v259_v11 }
  0x23   : > { %852 = vmatprep.subr.mxu0 %v258_v12  ;;  %936 = vmatpush3.msra.mxu1 %v259_v11 }
  0x24   : > { %853 = vmatpush3.msra.mxu0 %v258_v12  ;;  %921 = vmatprep.subr.mxu1 %v258_v12 }
  0x25   : > { %854 = vmatprep.subr.mxu0 %v257_v13  ;;  %937 = vmatpush3.msra.mxu1 %v258_v12 }
  0x26   : > { %855 = vmatpush3.msra.mxu0 %v257_v13  ;;  %922 = vmatprep.subr.mxu1 %v257_v13 }
  0x27   : > { %856 = vmatprep.subr.mxu0 %v256_v14  ;;  %938 = vmatpush3.msra.mxu1 %v257_v13 }
  0x28   : > { %857 = vmatpush3.msra.mxu0 %v256_v14  ;;  %923 = vmatprep.subr.mxu1 %v256_v14 }
  0x29   : > { %858 = vmatprep.subr.mxu0 %v255_v15  ;;  %939 = vmatpush3.msra.mxu1 %v256_v14 }
  0x2a   : > { %859 = vmatpush3.msra.mxu0 %v255_v15  ;;  %924 = vmatprep.subr.mxu1 %v255_v15 }
  0x2b   : > { %860 = vmatprep.subr.mxu0 %v254_v16  ;;  %940 = vmatpush3.msra.mxu1 %v255_v15 }
  0x2c   : > { %861 = vmatpush3.msra.mxu0 %v254_v16  ;;  %925 = vmatprep.subr.mxu1 %v254_v16 }
  0x2d   : > { %863 = vmatmul.mubr.f32.vlgmr.msra.gmra.mxu0 %v223_v17  ;;  %941 = vmatpush3.msra.mxu1 %v254_v16 }
  0x2e   : > { %865 = vmatprep.mubr.f32.mxu0 %v224_v18  ;;  %886 = vmatprep.mubr.f32.mxu1 %v238_v19 }
  0x2f   : > { %887 = vmatmul.mubr.f32.vlgmr.msra.gmra.mxu1 %v239_v20 }
  0x30   : > { %889 = vmatprep.mubr.f32.mxu1 %v240_v21 }
  0x31   : > { %866 = vmatmul.mubr.f32.gmra.mxu0 %v225_v22 }
  0x32   : > { %868 = vmatprep.mubr.f32.mxu0 %v226_v23 }
  0x33   : > { %890 = vmatmul.mubr.f32.gmra.mxu1 %v241_v24 }
  0x34   : > { %892 = vmatprep.mubr.f32.mxu1 %v242_v25 }
  0x35   : > { %869 = vmatmul.mubr.f32.gmra.mxu0 %v227_v26 }
  0x36   : > { %871 = vmatprep.mubr.f32.mxu0 %v228_v27 }
  0x37   : > { %893 = vmatmul.mubr.f32.gmra.mxu1 %v243_v28 }
  0x38   : > { %895 = vmatprep.mubr.f32.mxu1 %v244_v29 }
  0x39   : > { %872 = vmatmul.mubr.f32.gmra.mxu0 %v229_v30 }
  0x3a   : > { %874 = vmatprep.mubr.f32.mxu0 %v230_v31 }
  0x3b   : > { %896 = vmatmul.mubr.f32.gmra.mxu1 %v245_v32 }
  0x3c   : > { %898 = vmatprep.mubr.f32.mxu1 %v246_v33 }
  0x3d   : > { %875 = vmatmul.mubr.f32.gmra.mxu0 %v231_v34 }
  0x3e   : > { %877 = vmatprep.mubr.f32.mxu0 %v232_v35 }
  0x3f   : > { %899 = vmatmul.mubr.f32.gmra.mxu1 %v247_v36 }
  0x40   : > { %901 = vmatprep.mubr.f32.mxu1 %v248_v37 }
  0x41   : > { %878 = vmatmul.mubr.f32.gmra.mxu0 %v233_v38 }
  0x42   : > { %880 = vmatprep.mubr.f32.mxu0 %v234_v39 }
  0x43   : > { %902 = vmatmul.mubr.f32.gmra.mxu1 %v249_v40 }
  0x44   : > { %904 = vmatprep.mubr.f32.mxu1 %v250_v41 }
  0x45   : > { %881 = vmatmul.mubr.f32.gmra.mxu0 %v235_v42 }
  0x46   : > { %883 = vmatprep.mubr.f32.mxu0 %v236_v43 }
  0x47   : > { %905 = vmatmul.mubr.f32.gmra.mxu1 %v251_v44 }
  0x48   : > { %907 = vmatprep.mubr.f32.mxu1 %v252_v45 }
  0x49   : > { %884 = vmatmul.mubr.f32.gmra.mxu0 %v237_v46 }
  0x4b   : > { %908 = vmatmul.mubr.f32.gmra.mxu1 %v253_v47 }
  0xed   : > { %v864_v48 = vpop.f32.mrf.mxu0 }
  0xee   : > { %496 = vst [vmem:[%s1128_s8 + $0x8] sm:$0xff] %v864_v48  ;;  %v565_v54 = vmul.f32 %v864_v48, %v864_v48 }
  0xef   : > { %v336_v49 = vpop.f32.mrf.mxu0  ;;  %v1131_v50 = vpop.f32.mrf.mxu1 }
  0xf0   : > { %495 = vst [vmem:[%s1128_s8] sm:$0xff] %v336_v49  ;;  %v564_v51 = vmul.f32 %v336_v49, %v336_v49  ;;  %512 = vst [vmem:[%s1128_s8 + $0x88] sm:$0xff] %v1131_v50  ;;  %v527_v55 = vadd.f32 %v864_v48, %v336_v49 }
  0xf1   : > { %v867_v52 = vpop.f32.mrf.mxu0  ;;  %v1136_v53 = vpop.f32.mrf.mxu1 }
  0xf2   : > { %498 = vst [vmem:[%s1128_s8 + $0x18] sm:$0xff] %v867_v52  ;;  %511 = vst [vmem:[%s1128_s8 + $0x80] sm:$0xff] %v1136_v53  ;;  %v596_v58 = vadd.f32 %v565_v54, %v564_v51  ;;  %v567_v63 = vmul.f32 %v867_v52, %v867_v52 }
  0xf3   : > { %v346_v56 = vpop.f32.mrf.mxu0  ;;  %v1141_v57 = vpop.f32.mrf.mxu1 }
  0xf4   : > { %497 = vst [vmem:[%s1128_s8 + $0x10] sm:$0xff] %v346_v56  ;;  %v528_v59 = vadd.f32 %v527_v55, %v346_v56  ;;  %v566_v60 = vmul.f32 %v346_v56, %v346_v56  ;;  %514 = vst [vmem:[%s1128_s8 + $0x98] sm:$0xff] %v1141_v57 }
  0xf5   : > { %v870_v61 = vpop.f32.mrf.mxu0  ;;  %v1146_v62 = vpop.f32.mrf.mxu1 }
  0xf6   : > { %v597_v0 = vadd.f32 %v596_v58, %v566_v60  ;;  %500 = vst [vmem:[%s1128_s8 + $0x28] sm:$0xff] %v870_v61  ;;  %v529_v1 = vadd.f32 %v867_v52, %v528_v59  ;;  %513 = vst [vmem:[%s1128_s8 + $0x90] sm:$0xff] %v1146_v62  ;;  %v569_v9 = vmul.f32 %v870_v61, %v870_v61 }
  0xf7   : > { %v356_v2 = vpop.f32.mrf.mxu0  ;;  %v1151_v3 = vpop.f32.mrf.mxu1 }
  0xf8   : > { %499 = vst [vmem:[%s1128_s8 + $0x20] sm:$0xff] %v356_v2  ;;  %v530_v4 = vadd.f32 %v529_v1, %v356_v2  ;;  %v568_v5 = vmul.f32 %v356_v2, %v356_v2  ;;  %v598_v6 = vadd.f32 %v597_v0, %v567_v63  ;;  %516 = vst [vmem:[%s1128_s8 + $0xa8] sm:$0xff] %v1151_v3 }
  0xf9   : > { %v873_v7 = vpop.f32.mrf.mxu0  ;;  %v1156_v8 = vpop.f32.mrf.mxu1 }
  0xfa   : > { %v599_v10 = vadd.f32 %v598_v6, %v568_v5  ;;  %502 = vst [vmem:[%s1128_s8 + $0x38] sm:$0xff] %v873_v7  ;;  %v531_v11 = vadd.f32 %v870_v61, %v530_v4  ;;  %515 = vst [vmem:[%s1128_s8 + $0xa0] sm:$0xff] %v1156_v8  ;;  %v571_v19 = vmul.f32 %v873_v7, %v873_v7 }
  0xfb   : > { %v366_v12 = vpop.f32.mrf.mxu0  ;;  %v1161_v13 = vpop.f32.mrf.mxu1  ;;  %v580_v4 = vmul.f32 %v1136_v53, %v1136_v53  ;;  %v581_v5 = vmul.f32 %v1131_v50, %v1131_v50 }
  0xfc   : > { %501 = vst [vmem:[%s1128_s8 + $0x30] sm:$0xff] %v366_v12  ;;  %v532_v14 = vadd.f32 %v531_v11, %v366_v12  ;;  %v570_v15 = vmul.f32 %v366_v12, %v366_v12  ;;  %v600_v16 = vadd.f32 %v599_v10, %v569_v9  ;;  %518 = vst [vmem:[%s1128_s8 + $0xb8] sm:$0xff] %v1161_v13 }
  0xfd   : > { %v876_v17 = vpop.f32.mrf.mxu0  ;;  %v1166_v18 = vpop.f32.mrf.mxu1  ;;  %v582_v10 = vmul.f32 %v1146_v62, %v1146_v62  ;;  %v583_v12 = vmul.f32 %v1141_v57, %v1141_v57 }
  0xfe   : > { %v601_v20 = vadd.f32 %v600_v16, %v570_v15  ;;  %504 = vst [vmem:[%s1128_s8 + $0x48] sm:$0xff] %v876_v17  ;;  %v533_v21 = vadd.f32 %v873_v7, %v532_v14  ;;  %517 = vst [vmem:[%s1128_s8 + $0xb0] sm:$0xff] %v1166_v18  ;;  %v573_v29 = vmul.f32 %v876_v17, %v876_v17 }
  0xff   : > { %v376_v22 = vpop.f32.mrf.mxu0  ;;  %v1171_v23 = vpop.f32.mrf.mxu1  ;;  %v584_v16 = vmul.f32 %v1156_v8, %v1156_v8 }
 0x100   : > { %503 = vst [vmem:[%s1128_s8 + $0x40] sm:$0xff] %v376_v22  ;;  %v534_v24 = vadd.f32 %v533_v21, %v376_v22  ;;  %v572_v25 = vmul.f32 %v376_v22, %v376_v22  ;;  %v602_v26 = vadd.f32 %v601_v20, %v571_v19  ;;  %520 = vst [vmem:[%s1128_s8 + $0xc8] sm:$0xff] %v1171_v23 }
 0x101   : > { %v879_v27 = vpop.f32.mrf.mxu0  ;;  %v1176_v28 = vpop.f32.mrf.mxu1  ;;  %v586_v21 = vmul.f32 %v1166_v18, %v1166_v18 }
 0x102   : > { %v603_v30 = vadd.f32 %v602_v26, %v572_v25  ;;  %506 = vst [vmem:[%s1128_s8 + $0x58] sm:$0xff] %v879_v27  ;;  %v535_v31 = vadd.f32 %v876_v17, %v534_v24  ;;  %519 = vst [vmem:[%s1128_s8 + $0xc0] sm:$0xff] %v1176_v28  ;;  %v575_v39 = vmul.f32 %v879_v27, %v879_v27 }
 0x103   : > { %v386_v32 = vpop.f32.mrf.mxu0  ;;  %v1181_v33 = vpop.f32.mrf.mxu1  ;;  %v588_v26 = vmul.f32 %v1176_v28, %v1176_v28 }
 0x104   : > { %505 = vst [vmem:[%s1128_s8 + $0x50] sm:$0xff] %v386_v32  ;;  %v536_v34 = vadd.f32 %v535_v31, %v386_v32  ;;  %v574_v35 = vmul.f32 %v386_v32, %v386_v32  ;;  %v604_v36 = vadd.f32 %v603_v30, %v573_v29  ;;  %522 = vst [vmem:[%s1128_s8 + $0xd8] sm:$0xff] %v1181_v33 }
 0x105   : > { %v882_v37 = vpop.f32.mrf.mxu0  ;;  %v466_v38 = vpop.f32.mrf.mxu1 }
 0x106   : > { %v605_v40 = vadd.f32 %v604_v36, %v574_v35  ;;  %508 = vst [vmem:[%s1128_s8 + $0x68] sm:$0xff] %v882_v37  ;;  %v537_v41 = vadd.f32 %v879_v27, %v536_v34  ;;  %521 = vst [vmem:[%s1128_s8 + $0xd0] sm:$0xff] %v466_v38  ;;  %v577_v49 = vmul.f32 %v882_v37, %v882_v37 }
 0x107   : > { %v396_v42 = vpop.f32.mrf.mxu0  ;;  %v1188_v43 = vpop.f32.mrf.mxu1  ;;  %v590_v31 = vmul.f32 %v466_v38, %v466_v38  ;;  %v591_v34 = vmul.f32 %v1181_v33, %v1181_v33 }
 0x108   : > { %507 = vst [vmem:[%s1128_s8 + $0x60] sm:$0xff] %v396_v42  ;;  %v538_v44 = vadd.f32 %v537_v41, %v396_v42  ;;  %v576_v45 = vmul.f32 %v396_v42, %v396_v42  ;;  %v606_v46 = vadd.f32 %v605_v40, %v575_v39  ;;  %524 = vst [vmem:[%s1128_s8 + $0xe8] sm:$0xff] %v1188_v43 }
 0x109   : > { %v885_v47 = vpop.f32.mrf.mxu0  ;;  %v476_v48 = vpop.f32.mrf.mxu1 }
 0x10a   : > { %v607_v51 = vadd.f32 %v606_v46, %v576_v45  ;;  %510 = vst [vmem:[%s1128_s8 + $0x78] sm:$0xff] %v885_v47  ;;  %v539_v52 = vadd.f32 %v882_v37, %v538_v44  ;;  %523 = vst [vmem:[%s1128_s8 + $0xe0] sm:$0xff] %v476_v48  ;;  %v579_v61 = vmul.f32 %v885_v47, %v885_v47 }
 0x10b   : > { %v406_v54 = vpop.f32.mrf.mxu0  ;;  %v909_v55 = vpop.f32.mrf.mxu1  ;;  %v592_v37 = vmul.f32 %v476_v48, %v476_v48 }
 0x10c   : > { %509 = vst [vmem:[%s1128_s8 + $0x70] sm:$0xff] %v406_v54  ;;  %v540_v56 = vadd.f32 %v539_v52, %v406_v54  ;;  %v578_v58 = vmul.f32 %v406_v54, %v406_v54  ;;  %v608_v59 = vadd.f32 %v607_v51, %v577_v49  ;;  %526 = vst [vmem:[%s1128_s8 + $0xf8] sm:$0xff] %v909_v55 }
 0x10d   : > { %v486_v60 = vpop.f32.mrf.mxu1 }
 0x10e   : > { %v541_v63 = vadd.f32 %v885_v47, %v540_v56  ;;  %v609_v0 = vadd.f32 %v608_v59, %v578_v58  ;;  %525 = vst [vmem:[%s1128_s8 + $0xf0] sm:$0xff] %v486_v60 }
 0x110   : > { %v610_v1 = vadd.f32 %v609_v0, %v579_v61  ;;  %v542_v2 = vadd.f32 %v541_v63, %v1136_v53 }
 0x112   : > { %v611_v6 = vadd.f32 %v610_v1, %v580_v4  ;;  %v543_v7 = vadd.f32 %v1131_v50, %v542_v2  ;;  %v585_v50 = vmul.f32 %v1151_v3, %v1151_v3 }
 0x114   : > { %v544_v9 = vadd.f32 %v543_v7, %v1146_v62  ;;  %v612_v11 = vadd.f32 %v611_v6, %v581_v5 }
 0x116   : > { %v613_v14 = vadd.f32 %v612_v11, %v582_v10  ;;  %v545_v15 = vadd.f32 %v1141_v57, %v544_v9  ;;  %v587_v57 = vmul.f32 %v1161_v13, %v1161_v13 }
 0x118   : > { %v546_v53 = vadd.f32 %v545_v15, %v1156_v8  ;;  %v614_v17 = vadd.f32 %v613_v14, %v583_v12 }
 0x11a   : > { %v615_v19 = vadd.f32 %v614_v17, %v584_v16  ;;  %v547_v20 = vadd.f32 %v1151_v3, %v546_v53  ;;  %v589_v3 = vmul.f32 %v1171_v23, %v1171_v23 }
 0x11c   : > { %v548_v62 = vadd.f32 %v547_v20, %v1166_v18  ;;  %v616_v22 = vadd.f32 %v615_v19, %v585_v50 }
 0x11e   : > { %v617_v24 = vadd.f32 %v616_v22, %v586_v21  ;;  %v549_v25 = vadd.f32 %v1161_v13, %v548_v62 }
 0x120   : > { %v550_v8 = vadd.f32 %v549_v25, %v1176_v28  ;;  %v618_v27 = vadd.f32 %v617_v24, %v587_v57  ;;  %v593_v28 = vmul.f32 %v1188_v43, %v1188_v43 }
 0x122   : > { %v619_v29 = vadd.f32 %v618_v27, %v588_v26  ;;  %v551_v30 = vadd.f32 %v1171_v23, %v550_v8  ;;  %v594_v23 = vmul.f32 %v486_v60, %v486_v60 }
 0x124   : > { %v552_v18 = vadd.f32 %v551_v30, %v466_v38  ;;  %v620_v32 = vadd.f32 %v619_v29, %v589_v3  ;;  %v595_v38 = vmul.f32 %v909_v55, %v909_v55 }
 0x126   : > { %v621_v35 = vadd.f32 %v620_v32, %v590_v31  ;;  %v553_v13 = vadd.f32 %v1181_v33, %v552_v18 }
 0x128   : > { %v554_v36 = vadd.f32 %v553_v13, %v476_v48  ;;  %v622_v39 = vadd.f32 %v621_v35, %v591_v34 }
 0x12a   : > { %v623_v40 = vadd.f32 %v622_v39, %v592_v37  ;;  %v555_v41 = vadd.f32 %v1188_v43, %v554_v36 }
 0x12c   : > { %v556_v42 = vadd.f32 %v555_v41, %v486_v60  ;;  %v624_v44 = vadd.f32 %v623_v40, %v593_v28 }
 0x12e   : > { %v557_v45 = vadd.f32 %v909_v55, %v556_v42  ;;  %v625_v46 = vadd.f32 %v624_v44, %v594_v23 }
 0x130   : > { %v558_v47 = vrot.slane %v557_v45, 4  ;;  %v626_v49 = vadd.f32 %v625_v46, %v595_v38 }
 0x132   : > { %v559_v51 = vadd.f32 %v558_v47, %v557_v45  ;;  %v627_v52 = vrot.slane %v626_v49, 4 }
 0x134   : > { %v560_v33 = vrot.slane %v559_v51, 2  ;;  %v628_v54 = vadd.f32 %v627_v52, %v626_v49 }
 0x136   : > { %v561_v48 = vadd.f32 %v560_v33, %v559_v51  ;;  %v629_v56 = vrot.slane %v628_v54, 2 }
 0x138   : > { %v562_v58 = vrot.slane %v561_v48, 1  ;;  %v630_v59 = vadd.f32 %v629_v56, %v628_v54 }
 0x13a   : > { %v631_v61 = vrot.slane %v630_v59, 1  ;;  %v563_v63 = vadd.f32 %v562_v58, %v561_v48  ;;  %638 = sbr.rel (%p777_p5) target bundleno = 321 (0x141), region = 32 }
 0x13c   : > { %v632_v43 = vadd.f32 %v631_v61, %v630_v59 }
 0x13e   : > { %v634_v0 = vsel %vm633_vm0, %v563_v63, %v632_v43 }
 0x13f   : > { %v991_v55 = vmov 0.0  }
 0x140   : > { %639 = vst [vmem:[#allocation2] sm:$0x3] %v991_v55 }
 0x141 PF: > { %p778_p6 = scmp.ne.s32.totalorder %s981_s12, 1 }
 0x146   : > { %646 = sbr.rel (%p778_p6) target bundleno = 339 (0x153), region = 36 }
 0x147   : > { %v640_v60 = vld [vmem:[#allocation2] sm:$0x3] }
 0x148   : > { %v641_v1 = vadd.f32 %v640_v60, %v634_v0 }
 0x14a   : > { %642 = vst [vmem:[#allocation2] sm:$0x3] %v641_v1 }
 0x151   : > { %v647_v2 = vld [vmem:[#allocation2] sm:$0x3] }
 0x152   : > { %648 = vst [vmem:[%s1251_s3] sm:$0x3] %v647_v2 }
 0x153 PF: > { %s14_s14 = sadd.s32 1, %s989_s14   ;;  %s1252_s12 = smov %s985_s13 }
 0x154   : > { %p11_p7 = scmp.ge.s32.totalorder %s14_s14, 4   ;;  %s1253_s13 = smov %s1255_s15 }
 0x156   :  { %13 = sbr.rel (!%p11_p7) target bundleno = 2 (0x2), region = 81 }

// kernel: residual_block_psp_pallas.15
= control target key start
LH: loop header
LB: loop body
LE: loop exit
PB: predicated region body
PF: predicated region fallthrough
CT: control target
= control target key end

     0   :  { %s669_s15 = smov 0   ;;  %s671_s16 = smov 0   ;;  %s857_s0 = inlined_call_operand.vmem [shape: f32[512,128], index: 0, kind: input, shape index: {}]   ;;  %s858_s1 = inlined_call_operand.vmem [shape: f32[2,128], index: 1, kind: input, shape index: {}]   ;;  %s859_s2 = inlined_call_operand.vmem [shape: f32[1,128], index: 2, kind: input, shape index: {}]   ;;  %s860_s3 = inlined_call_operand.vmem [shape: f32[1,128], index: 3, kind: input, shape index: {}]   ;;  %s861_s4 = inlined_call_operand.vmem [shape: f32[512,128], index: 4, kind: output, shape index: {}]  }
   0x1   :  { %s673_s17 = smov 0  }
   0x2 LB: > { %s23_s18 = sadd.s32 1, %s638_s16  ;;  %p587_p0 = scmp.ge.s32.totalorder %s642_s17, 1  ;;  %s642_s17 = sphi %s673_s17, %s14_s17   ;;  %s638_s16 = sphi %s671_s16, %s863_s16   ;;  %s634_s15 = sphi %s669_s15, %s862_s15  }
   0x3   : > { %p24_p1 = scmp.ge.s32.totalorder %s23_s18, 2  ;;  %p207_p2 = scmp.lt.s32.totalorder %s642_s17, 3 }
   0x5   : > { %s865_s18 = smov (%p24_p1, %s23_s18), 0  ;;  %p208_p3 = pnand %p587_p0, %p207_p2 }
   0x6   : > { %s588_s23 = sshll.u32 (!%p208_p3), %s634_s15, 5 }
   0x7   : > { %211 = sbr.rel (%p208_p3) target bundleno = 71 (0x47), region = 36  ;;  %p250_p4 = scmp.lt.s32.totalorder (!%p208_p3), %s588_s23, 63 }
   0xc   : > { %v277_v0 = vld [vmem:[%s858_s1] sm:$0x1]  ;;  %v279_v1 = vld [vmem:[%s858_s1 + $0x1] sm:$0x1]  ;;  %s867_s23 = smov (!%p250_p4, %s588_s23), 63  ;;  %v324_v8 = vlaneseq }
   0xd   : > { %v278_v2 = vmul.f32 0.001953125, %v277_v0  ;;  %v280_v3 = vmul.f32 0.001953125, %v279_v1  ;;  %s589_s24 = sshll.u32 %s867_s23, 3  ;;  %v284_v10 = vld [vmem:[%s859_s2] sm:$0x1] }
   0xe   : > { %v325_v9 = vshrl.u32 %v324_v8, 7  ;;  %s701_s27 = scalar_lea.vmem %s857_s0, %s589_s24  ;;  %v288_v14 = vld [vmem:[%s860_s3] sm:$0x1]  ;;  %s750_s8 = scalar_lea.vmem %s861_s4, %s589_s24 }
   0xf   : > { %v281_v4 = vmul.f32 %v278_v2, %v278_v2  ;;  %v291_v15 = vld [vmem:[%s701_s27] sm:$0xff]  ;;  %v292_v16 = vld [vmem:[%s701_s27 + $0x8] sm:$0xff]  ;;  %v293_v17 = vld [vmem:[%s701_s27 + $0x10] sm:$0xff] }
  0x10   : > { %v326_v11 = vsub.s32 0, %v325_v9  ;;  %v294_v18 = vld [vmem:[%s701_s27 + $0x18] sm:$0xff]  ;;  %v295_v19 = vld [vmem:[%s701_s27 + $0x20] sm:$0xff]  ;;  %v296_v22 = vld [vmem:[%s701_s27 + $0x28] sm:$0xff] }
  0x11   : > { %v282_v5 = vsub.f32 %v280_v3, %v281_v4  ;;  %v297_v23 = vld [vmem:[%s701_s27 + $0x30] sm:$0xff]  ;;  %v298_v24 = vld [vmem:[%s701_s27 + $0x38] sm:$0xff]  ;;  %v299_v25 = vld [vmem:[%s701_s27 + $0x40] sm:$0xff] }
  0x12   : > { %v300_v26 = vld [vmem:[%s701_s27 + $0x48] sm:$0xff]  ;;  %v301_v27 = vld [vmem:[%s701_s27 + $0x50] sm:$0xff]  ;;  %v302_v32 = vld [vmem:[%s701_s27 + $0x58] sm:$0xff] }
  0x13   : > { %v283_v6 = vmax.f32 %v282_v5, 0.0  ;;  %v303_v33 = vld [vmem:[%s701_s27 + $0x60] sm:$0xff]  ;;  %v304_v34 = vld [vmem:[%s701_s27 + $0x68] sm:$0xff]  ;;  %v305_v59 = vld [vmem:[%s701_s27 + $0x70] sm:$0xff] }
  0x14   : > { %v306_v60 = vld [vmem:[%s701_s27 + $0x78] sm:$0xff]  ;;  %v307_v5 = vld [vmem:[%s701_s27 + $0x80] sm:$0xff] }
  0x15   : > { %v285_v7 = vadd.f32 1e-05, %v283_v6 }
  0x17   : > { %618 = vrsqrt.f32 %v285_v7 }
  0x24   : > { %v619_v12 = vpop.eup %618 }
  0x25   : > { %v287_v13 = vmul.f32 %v619_v12, %v284_v10  ;;  %v308_v10 = vld [vmem:[%s701_s27 + $0x88] sm:$0xff]  ;;  %v310_v12 = vld [vmem:[%s701_s27 + $0x98] sm:$0xff] }
  0x27   : > { %v289_v20 = vmul.f32 %v287_v13, %v278_v2  ;;  %v714_v21 = vrot.slane %v287_v13, %v326_v11 }
  0x29   : > { %v290_v28 = vsub.f32 %v288_v14, %v289_v20  ;;  %v329_v29 = vmul.f32 %v714_v21, %v291_v15  ;;  %v330_v30 = vmul.f32 %v714_v21, %v292_v16  ;;  %v331_v31 = vmul.f32 %v714_v21, %v293_v17  ;;  %v311_v17 = vld [vmem:[%s701_s27 + $0xa0] sm:$0xff] }
  0x2a   : > { %v332_v35 = vmul.f32 %v714_v21, %v294_v18  ;;  %v333_v36 = vmul.f32 %v714_v21, %v295_v19  ;;  %v334_v37 = vmul.f32 %v714_v21, %v296_v22  ;;  %v335_v38 = vmul.f32 %v714_v21, %v297_v23  ;;  %v312_v18 = vld [vmem:[%s701_s27 + $0xa8] sm:$0xff] }
  0x2b   : > { %v732_v39 = vrot.slane %v290_v28, %v326_v11  ;;  %v336_v40 = vmul.f32 %v714_v21, %v298_v24  ;;  %v337_v41 = vmul.f32 %v714_v21, %v299_v25  ;;  %v338_v42 = vmul.f32 %v714_v21, %v300_v26  ;;  %v309_v11 = vld [vmem:[%s701_s27 + $0x90] sm:$0xff] }
  0x2c   : > { %v339_v43 = vmul.f32 %v714_v21, %v301_v27  ;;  %v340_v44 = vmul.f32 %v714_v21, %v302_v32  ;;  %v341_v45 = vmul.f32 %v714_v21, %v303_v33  ;;  %v342_v46 = vmul.f32 %v714_v21, %v304_v34  ;;  %v313_v28 = vld [vmem:[%s701_s27 + $0xb0] sm:$0xff] }
  0x2d   : > { %v367_v47 = vadd.f32 %v732_v39, %v329_v29  ;;  %v368_v48 = vadd.f32 %v732_v39, %v330_v30  ;;  %v369_v49 = vadd.f32 %v732_v39, %v331_v31  ;;  %v370_v50 = vadd.f32 %v732_v39, %v332_v35  ;;  %v314_v29 = vld [vmem:[%s701_s27 + $0xb8] sm:$0xff] }
  0x2e   : > { %v371_v51 = vadd.f32 %v732_v39, %v333_v36  ;;  %v372_v52 = vadd.f32 %v732_v39, %v334_v37  ;;  %v373_v53 = vadd.f32 %v732_v39, %v335_v38  ;;  %v374_v54 = vadd.f32 %v732_v39, %v336_v40  ;;  %v315_v38 = vld [vmem:[%s701_s27 + $0xc0] sm:$0xff] }
  0x2f   : > { %v399_v55 = vmax.f32 %v367_v47, 0.0  ;;  %v400_v56 = vmax.f32 %v368_v48, 0.0  ;;  %v401_v57 = vmax.f32 %v369_v49, 0.0  ;;  %v402_v58 = vmax.f32 %v370_v50, 0.0 }
  0x30   : > { %v403_v61 = vmax.f32 %v371_v51, 0.0  ;;  %v404_v62 = vmax.f32 %v372_v52, 0.0  ;;  %v405_v63 = vmax.f32 %v373_v53, 0.0  ;;  %v406_v0 = vmax.f32 %v374_v54, 0.0  ;;  %v319_v51 = vld [vmem:[%s701_s27 + $0xe0] sm:$0xff]  ;;  %v320_v52 = vld [vmem:[%s701_s27 + $0xe8] sm:$0xff] }
  0x31   : > { %431 = vst [vmem:[%s750_s8] sm:$0xff] %v399_v55  ;;  %432 = vst [vmem:[%s750_s8 + $0x8] sm:$0xff] %v400_v56  ;;  %v375_v1 = vadd.f32 %v732_v39, %v337_v41  ;;  %v376_v2 = vadd.f32 %v732_v39, %v338_v42  ;;  %v377_v3 = vadd.f32 %v732_v39, %v339_v43 }
  0x32   : > { %433 = vst [vmem:[%s750_s8 + $0x10] sm:$0xff] %v401_v57  ;;  %434 = vst [vmem:[%s750_s8 + $0x18] sm:$0xff] %v402_v58  ;;  %v378_v4 = vadd.f32 %v732_v39, %v340_v44  ;;  %v379_v6 = vadd.f32 %v732_v39, %v341_v45  ;;  %v380_v7 = vadd.f32 %v732_v39, %v342_v46  ;;  %v316_v44 = vld [vmem:[%s701_s27 + $0xc8] sm:$0xff]  ;;  %v317_v45 = vld [vmem:[%s701_s27 + $0xd0] sm:$0xff] }
  0x33   : > { %435 = vst [vmem:[%s750_s8 + $0x20] sm:$0xff] %v403_v61  ;;  %436 = vst [vmem:[%s750_s8 + $0x28] sm:$0xff] %v404_v62  ;;  %v343_v8 = vmul.f32 %v714_v21, %v305_v59  ;;  %v344_v9 = vmul.f32 %v714_v21, %v306_v60  ;;  %v407_v13 = vmax.f32 %v375_v1, 0.0  ;;  %v408_v14 = vmax.f32 %v376_v2, 0.0  ;;  %v318_v46 = vld [vmem:[%s701_s27 + $0xd8] sm:$0xff]  ;;  %v321_v61 = vld [vmem:[%s701_s27 + $0xf0] sm:$0xff] }
  0x34   : > { %437 = vst [vmem:[%s750_s8 + $0x30] sm:$0xff] %v405_v63  ;;  %438 = vst [vmem:[%s750_s8 + $0x38] sm:$0xff] %v406_v0  ;;  %v409_v15 = vmax.f32 %v377_v3, 0.0  ;;  %v410_v16 = vmax.f32 %v378_v4, 0.0  ;;  %v411_v19 = vmax.f32 %v379_v6, 0.0  ;;  %v412_v20 = vmax.f32 %v380_v7, 0.0 }
  0x35   : > { %v381_v22 = vadd.f32 %v732_v39, %v343_v8  ;;  %v382_v23 = vadd.f32 %v732_v39, %v344_v9  ;;  %439 = vst [vmem:[%s750_s8 + $0x40] sm:$0xff] %v407_v13  ;;  %440 = vst [vmem:[%s750_s8 + $0x48] sm:$0xff] %v408_v14  ;;  %v345_v24 = vmul.f32 %v714_v21, %v307_v5  ;;  %v322_v62 = vld [vmem:[%s701_s27 + $0xf8] sm:$0xff] }
  0x36   : > { %441 = vst [vmem:[%s750_s8 + $0x50] sm:$0xff] %v409_v15  ;;  %442 = vst [vmem:[%s750_s8 + $0x58] sm:$0xff] %v410_v16  ;;  %v346_v25 = vmul.f32 %v714_v21, %v308_v10  ;;  %v347_v26 = vmul.f32 %v714_v21, %v309_v11  ;;  %v348_v27 = vmul.f32 %v714_v21, %v310_v12 }
  0x37   : > { %443 = vst [vmem:[%s750_s8 + $0x60] sm:$0xff] %v411_v19  ;;  %444 = vst [vmem:[%s750_s8 + $0x68] sm:$0xff] %v412_v20  ;;  %v413_v30 = vmax.f32 %v381_v22, 0.0  ;;  %v414_v31 = vmax.f32 %v382_v23, 0.0  ;;  %v349_v32 = vmul.f32 %v714_v21, %v311_v17  ;;  %v350_v33 = vmul.f32 %v714_v21, %v312_v18 }
  0x38   : > { %v383_v34 = vadd.f32 %v732_v39, %v345_v24  ;;  %v384_v35 = vadd.f32 %v732_v39, %v346_v25  ;;  %v385_v36 = vadd.f32 %v732_v39, %v347_v26  ;;  %v386_v37 = vadd.f32 %v732_v39, %v348_v27 }
  0x39   : > { %445 = vst [vmem:[%s750_s8 + $0x70] sm:$0xff] %v413_v30  ;;  %446 = vst [vmem:[%s750_s8 + $0x78] sm:$0xff] %v414_v31  ;;  %v387_v40 = vadd.f32 %v732_v39, %v349_v32  ;;  %v388_v41 = vadd.f32 %v732_v39, %v350_v33  ;;  %v351_v42 = vmul.f32 %v714_v21, %v313_v28 }
  0x3a   : > { %v352_v43 = vmul.f32 %v714_v21, %v314_v29  ;;  %v415_v47 = vmax.f32 %v383_v34, 0.0  ;;  %v416_v48 = vmax.f32 %v384_v35, 0.0  ;;  %v417_v49 = vmax.f32 %v385_v36, 0.0 }
  0x3b   : > { %v418_v50 = vmax.f32 %v386_v37, 0.0  ;;  %v419_v53 = vmax.f32 %v387_v40, 0.0  ;;  %v420_v54 = vmax.f32 %v388_v41, 0.0  ;;  %v389_v55 = vadd.f32 %v732_v39, %v351_v42 }
  0x3c   : > { %v390_v56 = vadd.f32 %v732_v39, %v352_v43  ;;  %447 = vst [vmem:[%s750_s8 + $0x80] sm:$0xff] %v415_v47  ;;  %448 = vst [vmem:[%s750_s8 + $0x88] sm:$0xff] %v416_v48  ;;  %v353_v57 = vmul.f32 %v714_v21, %v315_v38  ;;  %v354_v58 = vmul.f32 %v714_v21, %v316_v44 }
  0x3d   : > { %449 = vst [vmem:[%s750_s8 + $0x90] sm:$0xff] %v417_v49  ;;  %450 = vst [vmem:[%s750_s8 + $0x98] sm:$0xff] %v418_v50  ;;  %v355_v59 = vmul.f32 %v714_v21, %v317_v45  ;;  %v356_v60 = vmul.f32 %v714_v21, %v318_v46  ;;  %v421_v63 = vmax.f32 %v389_v55, 0.0  ;;  %v357_v1 = vmul.f32 %v714_v21, %v319_v51 }
  0x3e   : > { %451 = vst [vmem:[%s750_s8 + $0xa0] sm:$0xff] %v419_v53  ;;  %452 = vst [vmem:[%s750_s8 + $0xa8] sm:$0xff] %v420_v54  ;;  %v422_v0 = vmax.f32 %v390_v56, 0.0  ;;  %v358_v2 = vmul.f32 %v714_v21, %v320_v52  ;;  %v391_v3 = vadd.f32 %v732_v39, %v353_v57  ;;  %v392_v4 = vadd.f32 %v732_v39, %v354_v58 }
  0x3f   : > { %v393_v5 = vadd.f32 %v732_v39, %v355_v59  ;;  %v394_v6 = vadd.f32 %v732_v39, %v356_v60  ;;  %453 = vst [vmem:[%s750_s8 + $0xb0] sm:$0xff] %v421_v63  ;;  %v395_v7 = vadd.f32 %v732_v39, %v357_v1  ;;  %v359_v9 = vmul.f32 %v714_v21, %v321_v61 }
  0x40   : > { %454 = vst [vmem:[%s750_s8 + $0xb8] sm:$0xff] %v422_v0  ;;  %v396_v8 = vadd.f32 %v732_v39, %v358_v2  ;;  %v360_v10 = vmul.f32 %v714_v21, %v322_v62  ;;  %v423_v11 = vmax.f32 %v391_v3, 0.0  ;;  %v424_v12 = vmax.f32 %v392_v4, 0.0 }
  0x41   : > { %v425_v13 = vmax.f32 %v393_v5, 0.0  ;;  %v426_v14 = vmax.f32 %v394_v6, 0.0  ;;  %v427_v15 = vmax.f32 %v395_v7, 0.0  ;;  %v397_v17 = vadd.f32 %v732_v39, %v359_v9 }
  0x42   : > { %v428_v16 = vmax.f32 %v396_v8, 0.0  ;;  %v398_v18 = vadd.f32 %v732_v39, %v360_v10  ;;  %455 = vst [vmem:[%s750_s8 + $0xc0] sm:$0xff] %v423_v11  ;;  %456 = vst [vmem:[%s750_s8 + $0xc8] sm:$0xff] %v424_v12 }
  0x43   : > { %457 = vst [vmem:[%s750_s8 + $0xd0] sm:$0xff] %v425_v13  ;;  %458 = vst [vmem:[%s750_s8 + $0xd8] sm:$0xff] %v426_v14  ;;  %v429_v19 = vmax.f32 %v397_v17, 0.0 }
  0x44   : > { %459 = vst [vmem:[%s750_s8 + $0xe0] sm:$0xff] %v427_v15  ;;  %460 = vst [vmem:[%s750_s8 + $0xe8] sm:$0xff] %v428_v16  ;;  %v430_v21 = vmax.f32 %v398_v18, 0.0 }
  0x45   : > { %461 = vst [vmem:[%s750_s8 + $0xf0] sm:$0xff] %v429_v19 }
  0x46   : > { %462 = vst [vmem:[%s750_s8 + $0xf8] sm:$0xff] %v430_v21 }
  0x47 PF: > { %s14_s17 = sadd.s32 1, %s642_s17   ;;  %s862_s15 = smov %s638_s16 }
  0x48   : > { %p11_p5 = scmp.ge.s32.totalorder %s14_s17, 4   ;;  %s863_s16 = smov %s865_s18 }
  0x4a   :  { %13 = sbr.rel (!%p11_p5) target bundleno = 2 (0x2), region = 75 }

// kernel: residual_block_psp_pallas.17
= control target key start
LH: loop header
LB: loop body
LE: loop exit
PB: predicated region body
PF: predicated region fallthrough
CT: control target
= control target key end

     0   :  { %s529_s15 = smov 0   ;;  %s531_s16 = smov 0   ;;  %s574_s0 = inlined_call_operand.vmem [shape: f32[128,128], index: 0, kind: input, shape index: {}]   ;;  %s575_s1 = inlined_call_operand.vmem [shape: f32[2,128], index: 1, kind: input, shape index: {}]   ;;  %s576_s2 = inlined_call_operand.vmem [shape: f32[1,128], index: 2, kind: input, shape index: {}]   ;;  %s577_s3 = inlined_call_operand.vmem [shape: f32[1,128], index: 3, kind: input, shape index: {}]   ;;  %s578_s4 = inlined_call_operand.vmem [shape: f32[128,128], index: 4, kind: output, shape index: {}]  }
   0x1   :  { %s533_s17 = smov 0  }
   0x2 LB: > { %s23_s18 = sadd.s32 1, %s498_s16  ;;  %p447_p0 = scmp.ge.s32.totalorder %s502_s17, 1  ;;  %s502_s17 = sphi %s533_s17, %s14_s17   ;;  %s498_s16 = sphi %s531_s16, %s580_s16   ;;  %s494_s15 = sphi %s529_s15, %s579_s15  }
   0x3   : > { %p24_p1 = scmp.ge.s32.totalorder %s23_s18, 4  ;;  %p207_p2 = scmp.lt.s32.totalorder %s502_s17, 5 }
   0x5   : > { %s582_s18 = smov (%p24_p1, %s23_s18), 0  ;;  %p208_p3 = pnand %p447_p0, %p207_p2 }
   0x6   : > { %s448_s23 = sshll.u32 (!%p208_p3), %s494_s15, 2 }
   0x7   : > { %211 = sbr.rel (%p208_p3) target bundleno = 51 (0x33), region = 36  ;;  %p250_p4 = scmp.lt.s32.totalorder (!%p208_p3), %s448_s23, 15 }
   0xc   : > { %v277_v0 = vld [vmem:[%s575_s1] sm:$0x1]  ;;  %v279_v1 = vld [vmem:[%s575_s1 + $0x1] sm:$0x1]  ;;  %v296_v8 = vlaneseq  ;;  %s584_s23 = smov (!%p250_p4, %s448_s23), 15 }
   0xd   : > { %v278_v2 = vmul.f32 0.0078125, %v277_v0  ;;  %v280_v3 = vmul.f32 0.0078125, %v279_v1  ;;  %s449_s24 = sshll.u32 %s584_s23, 3  ;;  %v284_v10 = vld [vmem:[%s576_s2] sm:$0x1] }
   0xe   : > { %v297_v9 = vshrl.u32 %v296_v8, 7  ;;  %s256_s29 = scalar_lea.vmem %s574_s0, %s449_s24  ;;  %v288_v14 = vld [vmem:[%s577_s3] sm:$0x1]  ;;  %s275_s8 = scalar_lea.vmem %s578_s4, %s449_s24 }
   0xf   : > { %v281_v4 = vmul.f32 %v278_v2, %v278_v2  ;;  %v291_v15 = vld [vmem:[%s256_s29] sm:$0xff]  ;;  %v292_v16 = vld [vmem:[%s256_s29 + $0x8] sm:$0xff]  ;;  %v293_v17 = vld [vmem:[%s256_s29 + $0x10] sm:$0xff] }
  0x10   : > { %v298_v11 = vsub.s32 0, %v297_v9  ;;  %v294_v20 = vld [vmem:[%s256_s29 + $0x18] sm:$0xff] }
  0x11   : > { %v282_v5 = vsub.f32 %v280_v3, %v281_v4 }
  0x13   : > { %v283_v6 = vmax.f32 %v282_v5, 0.0 }
  0x15   : > { %v285_v7 = vadd.f32 1e-05, %v283_v6 }
  0x17   : > { %478 = vrsqrt.f32 %v285_v7 }
  0x24   : > { %v479_v12 = vpop.eup %478 }
  0x25   : > { %v287_v13 = vmul.f32 %v479_v12, %v284_v10 }
  0x27   : > { %v289_v18 = vmul.f32 %v287_v13, %v278_v2  ;;  %v299_v19 = vrot.slane %v287_v13, %v298_v11 }
  0x29   : > { %v290_v21 = vsub.f32 %v288_v14, %v289_v18  ;;  %v301_v22 = vmul.f32 %v299_v19, %v291_v15  ;;  %v302_v23 = vmul.f32 %v299_v19, %v292_v16  ;;  %v303_v24 = vmul.f32 %v299_v19, %v293_v17 }
  0x2a   : > { %v304_v25 = vmul.f32 %v299_v19, %v294_v20 }
  0x2b   : > { %v309_v26 = vrot.slane %v290_v21, %v298_v11 }
  0x2d   : > { %v311_v27 = vadd.f32 %v309_v26, %v301_v22  ;;  %v312_v28 = vadd.f32 %v309_v26, %v302_v23  ;;  %v313_v29 = vadd.f32 %v309_v26, %v303_v24  ;;  %v314_v30 = vadd.f32 %v309_v26, %v304_v25 }
  0x2f   : > { %v315_v31 = vmax.f32 %v311_v27, 0.0  ;;  %v316_v32 = vmax.f32 %v312_v28, 0.0  ;;  %v317_v33 = vmax.f32 %v313_v29, 0.0  ;;  %v318_v34 = vmax.f32 %v314_v30, 0.0 }
  0x31   : > { %319 = vst [vmem:[%s275_s8] sm:$0xff] %v315_v31  ;;  %320 = vst [vmem:[%s275_s8 + $0x8] sm:$0xff] %v316_v32 }
  0x32   : > { %321 = vst [vmem:[%s275_s8 + $0x10] sm:$0xff] %v317_v33  ;;  %322 = vst [vmem:[%s275_s8 + $0x18] sm:$0xff] %v318_v34 }
  0x33 PF: > { %s14_s17 = sadd.s32 1, %s502_s17   ;;  %s579_s15 = smov %s498_s16 }
  0x34   : > { %p11_p5 = scmp.ge.s32.totalorder %s14_s17, 6   ;;  %s580_s16 = smov %s582_s18 }
  0x36   :  { %13 = sbr.rel (!%p11_p5) target bundleno = 2 (0x2), region = 75 }

// kernel: residual_block_psp_pallas.20
= control target key start
LH: loop header
LB: loop body
LE: loop exit
PB: predicated region body
PF: predicated region fallthrough
CT: control target
= control target key end

     0   :  { %s712_s12 = smov 0   ;;  %s714_s13 = smov 0   ;;  %s818_s0 = inlined_call_operand.vmem [shape: f32[128,128], index: 0, kind: input, shape index: {}]   ;;  %s819_s1 = inlined_call_operand.vmem [shape: f32[128,128], index: 1, kind: input, shape index: {}]   ;;  %s820_s2 = inlined_call_operand.vmem [shape: f32[128,128], index: 2, kind: output, shape index: {0}]   ;;  %s821_s3 = inlined_call_operand.vmem [shape: f32[2,128], index: 3, kind: output, shape index: {1}]  }
   0x1   :  { %s716_s14 = smov 0  }
   0x2 LB: > { %s23_s15 = sadd.s32 1, %s685_s13  ;;  %p532_p0 = scmp.ge.s32.totalorder %s689_s14, 1  ;;  %s689_s14 = sphi %s716_s14, %s14_s14   ;;  %s685_s13 = sphi %s714_s13, %s823_s13   ;;  %s681_s12 = sphi %s712_s12, %s822_s12  }
   0x3   : > { %p24_p1 = scmp.ge.s32.totalorder %s23_s15, 2  ;;  %p164_p2 = scmp.lt.s32.totalorder %s689_s14, 3 }
   0x5   : > { %s825_s15 = smov (%p24_p1, %s23_s15), 0  ;;  %p165_p3 = pnand %p532_p0, %p164_p2 }
   0x6   : > { %s533_s26 = sshll.u32 (!%p165_p3), %s681_s12, 3  ;;  %p537_p5 = scmp.ne.s32.totalorder (!%p165_p3), %s681_s12, 0 }
   0x7   : > { %168 = sbr.rel (%p165_p3) target bundleno = 291 (0x123), region = 28  ;;  %p200_p4 = scmp.lt.s32.totalorder (!%p165_p3), %s533_s26, 15 }
   0xc   : > { %v245_v0 = vld [vmem:[%s819_s1 + $0x78] sm:$0xff]  ;;  %v244_v1 = vld [vmem:[%s819_s1 + $0x70] sm:$0xff]  ;;  %v243_v2 = vld [vmem:[%s819_s1 + $0x68] sm:$0xff]  ;;  %s827_s26 = smov (!%p200_p4, %s533_s26), 15  ;;  %vm393_vm0 = vcmask 1040384  }
   0xd   : > { %566 = vmatprep.subr.mxu0 %v245_v0  ;;  %610 = vmatprep.subr.mxu1 %v245_v0  ;;  %v242_v3 = vld [vmem:[%s819_s1 + $0x60] sm:$0xff]  ;;  %v241_v4 = vld [vmem:[%s819_s1 + $0x58] sm:$0xff]  ;;  %v240_v5 = vld [vmem:[%s819_s1 + $0x50] sm:$0xff]  ;;  %s534_s16 = sshll.u32 %s827_s26, 3 }
   0xe   : > { %567 = vmatpush3.msra.mxu0 %v245_v0  ;;  %626 = vmatpush3.msra.mxu1 %v245_v0  ;;  %v239_v6 = vld [vmem:[%s819_s1 + $0x48] sm:$0xff]  ;;  %v238_v7 = vld [vmem:[%s819_s1 + $0x40] sm:$0xff]  ;;  %v237_v8 = vld [vmem:[%s819_s1 + $0x38] sm:$0xff]  ;;  %s777_s21 = scalar_lea.vmem %s818_s0, %s534_s16  ;;  %s216_s6 = scalar_lea.vmem %s820_s2, %s534_s16 }
   0xf   : > { %568 = vmatprep.subr.mxu0 %v244_v1  ;;  %611 = vmatprep.subr.mxu1 %v244_v1  ;;  %v236_v9 = vld [vmem:[%s819_s1 + $0x30] sm:$0xff]  ;;  %v235_v10 = vld [vmem:[%s819_s1 + $0x28] sm:$0xff]  ;;  %v234_v11 = vld [vmem:[%s819_s1 + $0x20] sm:$0xff] }
  0x10   : > { %569 = vmatpush3.msra.mxu0 %v244_v1  ;;  %627 = vmatpush3.msra.mxu1 %v244_v1  ;;  %v233_v12 = vld [vmem:[%s819_s1 + $0x18] sm:$0xff]  ;;  %v232_v13 = vld [vmem:[%s819_s1 + $0x10] sm:$0xff]  ;;  %v222_v14 = vld [vmem:[%s777_s21] sm:$0xff] }
  0x11   : > { %570 = vmatprep.subr.mxu0 %v243_v2  ;;  %612 = vmatprep.subr.mxu1 %v243_v2  ;;  %v231_v15 = vld [vmem:[%s819_s1 + $0x8] sm:$0xff]  ;;  %v230_v16 = vld [vmem:[%s819_s1] sm:$0xff]  ;;  %v224_v18 = vld [vmem:[%s777_s21 + $0x10] sm:$0xff] }
  0x12   : > { %571 = vmatpush3.msra.mxu0 %v243_v2  ;;  %628 = vmatpush3.msra.mxu1 %v243_v2  ;;  %v223_v17 = vld [vmem:[%s777_s21 + $0x8] sm:$0xff]  ;;  %v226_v19 = vld [vmem:[%s777_s21 + $0x20] sm:$0xff]  ;;  %v228_v21 = vld [vmem:[%s777_s21 + $0x30] sm:$0xff] }
  0x13   : > { %572 = vmatprep.subr.mxu0 %v242_v3  ;;  %613 = vmatprep.subr.mxu1 %v242_v3  ;;  %v227_v20 = vld [vmem:[%s777_s21 + $0x28] sm:$0xff]  ;;  %v225_v22 = vld [vmem:[%s777_s21 + $0x18] sm:$0xff] }
  0x14   : > { %573 = vmatpush3.msra.mxu0 %v242_v3  ;;  %629 = vmatpush3.msra.mxu1 %v242_v3  ;;  %v229_v23 = vld [vmem:[%s777_s21 + $0x38] sm:$0xff] }
  0x15   : > { %574 = vmatprep.subr.mxu0 %v241_v4  ;;  %614 = vmatprep.subr.mxu1 %v241_v4 }
  0x16   : > { %575 = vmatpush3.msra.mxu0 %v241_v4  ;;  %630 = vmatpush3.msra.mxu1 %v241_v4 }
  0x17   : > { %576 = vmatprep.subr.mxu0 %v240_v5  ;;  %615 = vmatprep.subr.mxu1 %v240_v5 }
  0x18   : > { %577 = vmatpush3.msra.mxu0 %v240_v5  ;;  %631 = vmatpush3.msra.mxu1 %v240_v5 }
  0x19   : > { %578 = vmatprep.subr.mxu0 %v239_v6  ;;  %616 = vmatprep.subr.mxu1 %v239_v6 }
  0x1a   : > { %579 = vmatpush3.msra.mxu0 %v239_v6  ;;  %632 = vmatpush3.msra.mxu1 %v239_v6 }
  0x1b   : > { %580 = vmatprep.subr.mxu0 %v238_v7  ;;  %617 = vmatprep.subr.mxu1 %v238_v7 }
  0x1c   : > { %581 = vmatpush3.msra.mxu0 %v238_v7  ;;  %633 = vmatpush3.msra.mxu1 %v238_v7 }
  0x1d   : > { %582 = vmatprep.subr.mxu0 %v237_v8  ;;  %618 = vmatprep.subr.mxu1 %v237_v8 }
  0x1e   : > { %583 = vmatpush3.msra.mxu0 %v237_v8  ;;  %634 = vmatpush3.msra.mxu1 %v237_v8 }
  0x1f   : > { %584 = vmatprep.subr.mxu0 %v236_v9  ;;  %619 = vmatprep.subr.mxu1 %v236_v9 }
  0x20   : > { %585 = vmatpush3.msra.mxu0 %v236_v9  ;;  %635 = vmatpush3.msra.mxu1 %v236_v9 }
  0x21   : > { %586 = vmatprep.subr.mxu0 %v235_v10  ;;  %620 = vmatprep.subr.mxu1 %v235_v10 }
  0x22   : > { %587 = vmatpush3.msra.mxu0 %v235_v10  ;;  %636 = vmatpush3.msra.mxu1 %v235_v10 }
  0x23   : > { %588 = vmatprep.subr.mxu0 %v234_v11  ;;  %621 = vmatprep.subr.mxu1 %v234_v11 }
  0x24   : > { %589 = vmatpush3.msra.mxu0 %v234_v11  ;;  %637 = vmatpush3.msra.mxu1 %v234_v11 }
  0x25   : > { %590 = vmatprep.subr.mxu0 %v233_v12  ;;  %622 = vmatprep.subr.mxu1 %v233_v12 }
  0x26   : > { %591 = vmatpush3.msra.mxu0 %v233_v12  ;;  %638 = vmatpush3.msra.mxu1 %v233_v12 }
  0x27   : > { %592 = vmatprep.subr.mxu0 %v232_v13  ;;  %598 = vmatprep.mubr.f32.mxu0 %v222_v14 }
  0x28   : > { %593 = vmatpush3.msra.mxu0 %v232_v13  ;;  %623 = vmatprep.subr.mxu1 %v232_v13 }
  0x29   : > { %594 = vmatprep.subr.mxu0 %v231_v15  ;;  %639 = vmatpush3.msra.mxu1 %v232_v13 }
  0x2a   : > { %595 = vmatpush3.msra.mxu0 %v231_v15  ;;  %624 = vmatprep.subr.mxu1 %v231_v15 }
  0x2b   : > { %596 = vmatprep.subr.mxu0 %v230_v16  ;;  %640 = vmatpush3.msra.mxu1 %v231_v15 }
  0x2c   : > { %597 = vmatpush3.msra.mxu0 %v230_v16  ;;  %625 = vmatprep.subr.mxu1 %v230_v16 }
  0x2d   : > { %599 = vmatmul.mubr.f32.vlgmr.msra.gmra.mxu0 %v223_v17  ;;  %641 = vmatpush3.msra.mxu1 %v230_v16 }
  0x2e   : > { %601 = vmatprep.mubr.f32.mxu0 %v224_v18  ;;  %604 = vmatprep.mubr.f32.mxu1 %v226_v19 }
  0x2f   : > { %605 = vmatmul.mubr.f32.vlgmr.msra.gmra.mxu1 %v227_v20 }
  0x30   : > { %607 = vmatprep.mubr.f32.mxu1 %v228_v21 }
  0x31   : > { %602 = vmatmul.mubr.f32.gmra.mxu0 %v225_v22 }
  0x33   : > { %608 = vmatmul.mubr.f32.gmra.mxu1 %v229_v23 }
  0xed   : > { %v600_v24 = vpop.f32.mrf.mxu0 }
  0xee   : > { %352 = vst [vmem:[%s216_s6 + $0x8] sm:$0xff] %v600_v24  ;;  %v373_v30 = vmul.f32 %v600_v24, %v600_v24 }
  0xef   : > { %v312_v25 = vpop.f32.mrf.mxu0  ;;  %v606_v26 = vpop.f32.mrf.mxu1 }
  0xf0   : > { %351 = vst [vmem:[%s216_s6] sm:$0xff] %v312_v25  ;;  %v372_v27 = vmul.f32 %v312_v25, %v312_v25  ;;  %356 = vst [vmem:[%s216_s6 + $0x28] sm:$0xff] %v606_v26  ;;  %v359_v31 = vadd.f32 %v600_v24, %v312_v25  ;;  %v377_v44 = vmul.f32 %v606_v26, %v606_v26 }
  0xf1   : > { %v603_v28 = vpop.f32.mrf.mxu0  ;;  %v332_v29 = vpop.f32.mrf.mxu1 }
  0xf2   : > { %354 = vst [vmem:[%s216_s6 + $0x18] sm:$0xff] %v603_v28  ;;  %355 = vst [vmem:[%s216_s6 + $0x20] sm:$0xff] %v332_v29  ;;  %v380_v34 = vadd.f32 %v373_v30, %v372_v27  ;;  %v375_v38 = vmul.f32 %v603_v28, %v603_v28  ;;  %v376_v43 = vmul.f32 %v332_v29, %v332_v29 }
  0xf3   : > { %v322_v32 = vpop.f32.mrf.mxu0  ;;  %v609_v33 = vpop.f32.mrf.mxu1 }
  0xf4   : > { %353 = vst [vmem:[%s216_s6 + $0x10] sm:$0xff] %v322_v32  ;;  %v360_v35 = vadd.f32 %v359_v31, %v322_v32  ;;  %v374_v36 = vmul.f32 %v322_v32, %v322_v32  ;;  %358 = vst [vmem:[%s216_s6 + $0x38] sm:$0xff] %v609_v33  ;;  %v379_v50 = vmul.f32 %v609_v33, %v609_v33 }
  0xf5   : > { %v342_v37 = vpop.f32.mrf.mxu1 }
  0xf6   : > { %v361_v39 = vadd.f32 %v603_v28, %v360_v35  ;;  %v381_v40 = vadd.f32 %v380_v34, %v374_v36  ;;  %357 = vst [vmem:[%s216_s6 + $0x30] sm:$0xff] %v342_v37  ;;  %v378_v48 = vmul.f32 %v342_v37, %v342_v37 }
  0xf8   : > { %v382_v41 = vadd.f32 %v381_v40, %v375_v38  ;;  %v362_v42 = vadd.f32 %v361_v39, %v332_v29 }
  0xfa   : > { %v383_v45 = vadd.f32 %v382_v41, %v376_v43  ;;  %v363_v46 = vadd.f32 %v606_v26, %v362_v42 }
  0xfc   : > { %v364_v47 = vadd.f32 %v363_v46, %v342_v37  ;;  %v384_v49 = vadd.f32 %v383_v45, %v377_v44 }
  0xfe   : > { %v365_v51 = vadd.f32 %v609_v33, %v364_v47  ;;  %v385_v52 = vadd.f32 %v384_v49, %v378_v48 }
 0x100   : > { %v366_v53 = vrot.slane %v365_v51, 4  ;;  %v386_v54 = vadd.f32 %v385_v52, %v379_v50 }
 0x102   : > { %v367_v55 = vadd.f32 %v366_v53, %v365_v51  ;;  %v387_v56 = vrot.slane %v386_v54, 4 }
 0x104   : > { %v368_v57 = vrot.slane %v367_v55, 2  ;;  %v388_v58 = vadd.f32 %v387_v56, %v386_v54 }
 0x106   : > { %v369_v59 = vadd.f32 %v368_v57, %v367_v55  ;;  %v389_v60 = vrot.slane %v388_v58, 2 }
 0x108   : > { %v370_v61 = vrot.slane %v369_v59, 1  ;;  %v390_v62 = vadd.f32 %v389_v60, %v388_v58 }
 0x10a   : > { %v391_v63 = vrot.slane %v390_v62, 1  ;;  %v371_v0 = vadd.f32 %v370_v61, %v369_v59  ;;  %398 = sbr.rel (%p537_p5) target bundleno = 273 (0x111), region = 32 }
 0x10c   : > { %v392_v1 = vadd.f32 %v391_v63, %v390_v62 }
 0x10e   : > { %v394_v2 = vsel %vm393_vm0, %v371_v0, %v392_v1 }
 0x10f   : > { %v691_v3 = vmov 0.0  }
 0x110   : > { %399 = vst [vmem:[#allocation2] sm:$0x3] %v691_v3 }
 0x111 PF: > { %p538_p6 = scmp.ne.s32.totalorder %s681_s12, 1 }
 0x116   : > { %406 = sbr.rel (%p538_p6) target bundleno = 291 (0x123), region = 36 }
 0x117   : > { %v400_v4 = vld [vmem:[#allocation2] sm:$0x3] }
 0x118   : > { %v401_v5 = vadd.f32 %v400_v4, %v394_v2 }
 0x11a   : > { %402 = vst [vmem:[#allocation2] sm:$0x3] %v401_v5 }
 0x121   : > { %v407_v6 = vld [vmem:[#allocation2] sm:$0x3] }
 0x122   : > { %408 = vst [vmem:[%s821_s3] sm:$0x3] %v407_v6 }
 0x123 PF: > { %s14_s14 = sadd.s32 1, %s689_s14   ;;  %s822_s12 = smov %s685_s13 }
 0x124   : > { %p11_p7 = scmp.ge.s32.totalorder %s14_s14, 4   ;;  %s823_s13 = smov %s825_s15 }
 0x126   :  { %13 = sbr.rel (!%p11_p7) target bundleno = 2 (0x2), region = 81 }

// kernel: residual_block_psp_pallas.16
= control target key start
LH: loop header
LB: loop body
LE: loop exit
PB: predicated region body
PF: predicated region fallthrough
CT: control target
= control target key end

     0   :  { %s1369_s12 = smov 0   ;;  %s1371_s13 = smov 0   ;;  %s1914_s0 = inlined_call_operand.vmem [shape: f32[4,20,9,128], index: 0, kind: input, shape index: {}]   ;;  %s1915_s1 = inlined_call_operand.vmem [shape: f32[1152,128], index: 1, kind: input, shape index: {}]   ;;  %s1916_s2 = inlined_call_operand.vmem [shape: f32[128,128], index: 2, kind: output, shape index: {0}]   ;;  %s1917_s3 = inlined_call_operand.vmem [shape: f32[2,128], index: 3, kind: output, shape index: {1}]  }
   0x1   :  { %s1373_s14 = smov 0  }
   0x2 LB: > { %s23_s15 = sadd.s32 1, %s1342_s13  ;;  %p995_p0 = scmp.ge.s32.totalorder %s1346_s14, 1  ;;  %s1346_s14 = sphi %s1373_s14, %s14_s14   ;;  %s1342_s13 = sphi %s1371_s13, %s1919_s13   ;;  %s1338_s12 = sphi %s1369_s12, %s1918_s12  }
   0x3   : > { %p24_p1 = scmp.ge.s32.totalorder %s23_s15, 4  ;;  %p163_p2 = scmp.lt.s32.totalorder %s1346_s14, 5 }
   0x5   : > { %s1921_s15 = smov (%p24_p1, %s23_s15), 0  ;;  %p164_p3 = pnand %p995_p0, %p163_p2 }
   0x6   : > { %p198_p4 = scmp.lt.s32.totalorder (!%p164_p3), %s1338_s12, 3  ;;  %p1027_p6 = scmp.ne.s32.totalorder (!%p164_p3), %s1338_s12, 0 }
   0x7   : > { %167 = sbr.rel (%p164_p3) target bundleno = 365 (0x16d), region = 28 }
   0xc   : > { %v292_v0 = vld [vmem:[%s1915_s1 + $0xf8] sm:$0xff]  ;;  %v291_v4 = vld [vmem:[%s1915_s1 + $0xf0] sm:$0xff]  ;;  %v290_v8 = vld [vmem:[%s1915_s1 + $0xe8] sm:$0xff]  ;;  %s1519_s4 = scalar_select %p198_p4, %s1338_s12, 3  ;;  %vm856_vm0 = vcmask 1040384  }
   0xd   : > { %v324_v1 = vld [vmem:[%s1915_s1 + $0x1f8] sm:$0xff]  ;;  %1032 = vmatprep.subr.mxu0 %v292_v0  ;;  %v323_v5 = vld [vmem:[%s1915_s1 + $0x1f0] sm:$0xff]  ;;  %v322_v9 = vld [vmem:[%s1915_s1 + $0x1e8] sm:$0xff] }
   0xe   : > { %v276_v2 = vld [vmem:[%s1915_s1 + $0x78] sm:$0xff]  ;;  %1076 = vmatprep.subr.mxu1 %v324_v1  ;;  %v275_v6 = vld [vmem:[%s1915_s1 + $0x70] sm:$0xff]  ;;  %v274_v10 = vld [vmem:[%s1915_s1 + $0x68] sm:$0xff]  ;;  %s1298_s25 = smul.u32 320, %s1519_s4 }
   0xf   : > { %v308_v3 = vld [vmem:[%s1915_s1 + $0x178] sm:$0xff]  ;;  %1033 = vmatpush3.msra.mxu0 %v276_v2  ;;  %v307_v7 = vld [vmem:[%s1915_s1 + $0x170] sm:$0xff]  ;;  %v306_v11 = vld [vmem:[%s1915_s1 + $0x168] sm:$0xff] }
  0x10   : > { %1077 = vmatpush3.msra.mxu1 %v308_v3  ;;  %1034 = vmatprep.subr.mxu0 %v291_v4  ;;  %v289_v12 = vld [vmem:[%s1915_s1 + $0xe0] sm:$0xff]  ;;  %v288_v16 = vld [vmem:[%s1915_s1 + $0xd8] sm:$0xff]  ;;  %v287_v20 = vld [vmem:[%s1915_s1 + $0xd0] sm:$0xff]  ;;  %s1573_s21 = scalar_lea.vmem %s1914_s0, %s1298_s25 }
  0x11   : > { %1078 = vmatprep.subr.mxu1 %v323_v5  ;;  %1035 = vmatpush3.msra.mxu0 %v275_v6  ;;  %v321_v13 = vld [vmem:[%s1915_s1 + $0x1e0] sm:$0xff]  ;;  %v320_v17 = vld [vmem:[%s1915_s1 + $0x1d8] sm:$0xff]  ;;  %v319_v21 = vld [vmem:[%s1915_s1 + $0x1d0] sm:$0xff] }
  0x12   : > { %1079 = vmatpush3.msra.mxu1 %v307_v7  ;;  %1036 = vmatprep.subr.mxu0 %v290_v8  ;;  %v273_v14 = vld [vmem:[%s1915_s1 + $0x60] sm:$0xff]  ;;  %v272_v18 = vld [vmem:[%s1915_s1 + $0x58] sm:$0xff]  ;;  %v271_v22 = vld [vmem:[%s1915_s1 + $0x50] sm:$0xff] }
  0x13   : > { %1080 = vmatprep.subr.mxu1 %v322_v9  ;;  %v305_v15 = vld [vmem:[%s1915_s1 + $0x160] sm:$0xff]  ;;  %1037 = vmatpush3.msra.mxu0 %v274_v10  ;;  %v304_v19 = vld [vmem:[%s1915_s1 + $0x158] sm:$0xff]  ;;  %v303_v23 = vld [vmem:[%s1915_s1 + $0x150] sm:$0xff] }
  0x14   : > { %1081 = vmatpush3.msra.mxu1 %v306_v11  ;;  %1038 = vmatprep.subr.mxu0 %v289_v12  ;;  %v286_v24 = vld [vmem:[%s1915_s1 + $0xc8] sm:$0xff]  ;;  %v285_v28 = vld [vmem:[%s1915_s1 + $0xc0] sm:$0xff]  ;;  %v284_v32 = vld [vmem:[%s1915_s1 + $0xb8] sm:$0xff] }
  0x15   : > { %1082 = vmatprep.subr.mxu1 %v321_v13  ;;  %1039 = vmatpush3.msra.mxu0 %v273_v14  ;;  %v318_v25 = vld [vmem:[%s1915_s1 + $0x1c8] sm:$0xff]  ;;  %v317_v29 = vld [vmem:[%s1915_s1 + $0x1c0] sm:$0xff]  ;;  %v316_v33 = vld [vmem:[%s1915_s1 + $0x1b8] sm:$0xff] }
  0x16   : > { %1083 = vmatpush3.msra.mxu1 %v305_v15  ;;  %1040 = vmatprep.subr.mxu0 %v288_v16  ;;  %v270_v26 = vld [vmem:[%s1915_s1 + $0x48] sm:$0xff]  ;;  %v269_v30 = vld [vmem:[%s1915_s1 + $0x40] sm:$0xff]  ;;  %v268_v34 = vld [vmem:[%s1915_s1 + $0x38] sm:$0xff] }
  0x17   : > { %1084 = vmatprep.subr.mxu1 %v320_v17  ;;  %1041 = vmatpush3.msra.mxu0 %v272_v18  ;;  %v302_v27 = vld [vmem:[%s1915_s1 + $0x148] sm:$0xff]  ;;  %v301_v31 = vld [vmem:[%s1915_s1 + $0x140] sm:$0xff]  ;;  %v300_v35 = vld [vmem:[%s1915_s1 + $0x138] sm:$0xff] }
  0x18   : > { %1085 = vmatpush3.msra.mxu1 %v304_v19  ;;  %1042 = vmatprep.subr.mxu0 %v287_v20  ;;  %v283_v36 = vld [vmem:[%s1915_s1 + $0xb0] sm:$0xff]  ;;  %v282_v40 = vld [vmem:[%s1915_s1 + $0xa8] sm:$0xff]  ;;  %v281_v44 = vld [vmem:[%s1915_s1 + $0xa0] sm:$0xff] }
  0x19   : > { %1086 = vmatprep.subr.mxu1 %v319_v21  ;;  %1043 = vmatpush3.msra.mxu0 %v271_v22  ;;  %v315_v37 = vld [vmem:[%s1915_s1 + $0x1b0] sm:$0xff]  ;;  %v314_v41 = vld [vmem:[%s1915_s1 + $0x1a8] sm:$0xff]  ;;  %v313_v45 = vld [vmem:[%s1915_s1 + $0x1a0] sm:$0xff] }
  0x1a   : > { %1087 = vmatpush3.msra.mxu1 %v303_v23  ;;  %1044 = vmatprep.subr.mxu0 %v286_v24  ;;  %v267_v38 = vld [vmem:[%s1915_s1 + $0x30] sm:$0xff]  ;;  %v266_v42 = vld [vmem:[%s1915_s1 + $0x28] sm:$0xff]  ;;  %v265_v46 = vld [vmem:[%s1915_s1 + $0x20] sm:$0xff] }
  0x1b   : > { %1088 = vmatprep.subr.mxu1 %v318_v25  ;;  %1045 = vmatpush3.msra.mxu0 %v270_v26  ;;  %v299_v39 = vld [vmem:[%s1915_s1 + $0x130] sm:$0xff]  ;;  %v298_v43 = vld [vmem:[%s1915_s1 + $0x128] sm:$0xff]  ;;  %v297_v47 = vld [vmem:[%s1915_s1 + $0x120] sm:$0xff] }
  0x1c   : > { %1089 = vmatpush3.msra.mxu1 %v302_v27  ;;  %1046 = vmatprep.subr.mxu0 %v285_v28  ;;  %v280_v48 = vld [vmem:[%s1915_s1 + $0x98] sm:$0xff]  ;;  %v279_v52 = vld [vmem:[%s1915_s1 + $0x90] sm:$0xff]  ;;  %v278_v56 = vld [vmem:[%s1915_s1 + $0x88] sm:$0xff] }
  0x1d   : > { %1090 = vmatprep.subr.mxu1 %v317_v29  ;;  %1047 = vmatpush3.msra.mxu0 %v269_v30  ;;  %v312_v49 = vld [vmem:[%s1915_s1 + $0x198] sm:$0xff]  ;;  %v311_v53 = vld [vmem:[%s1915_s1 + $0x190] sm:$0xff]  ;;  %v310_v57 = vld [vmem:[%s1915_s1 + $0x188] sm:$0xff] }
  0x1e   : > { %1091 = vmatpush3.msra.mxu1 %v301_v31  ;;  %1048 = vmatprep.subr.mxu0 %v284_v32  ;;  %v264_v50 = vld [vmem:[%s1915_s1 + $0x18] sm:$0xff]  ;;  %v263_v54 = vld [vmem:[%s1915_s1 + $0x10] sm:$0xff]  ;;  %v262_v58 = vld [vmem:[%s1915_s1 + $0x8] sm:$0xff] }
  0x1f   : > { %1092 = vmatprep.subr.mxu1 %v316_v33  ;;  %1049 = vmatpush3.msra.mxu0 %v268_v34  ;;  %v296_v51 = vld [vmem:[%s1915_s1 + $0x118] sm:$0xff]  ;;  %v295_v55 = vld [vmem:[%s1915_s1 + $0x110] sm:$0xff]  ;;  %v294_v59 = vld [vmem:[%s1915_s1 + $0x108] sm:$0xff] }
  0x20   : > { %1093 = vmatpush3.msra.mxu1 %v300_v35  ;;  %1050 = vmatprep.subr.mxu0 %v283_v36  ;;  %v277_v60 = vld [vmem:[%s1915_s1 + $0x80] sm:$0xff]  ;;  %v999_v63 = vld [vmem:[%s1573_s21 + $0x50] sm:$0xff]  ;;  %v356_v4 = vld [vmem:[%s1915_s1 + $0x2f8] sm:$0xff] }
  0x21   : > { %1094 = vmatprep.subr.mxu1 %v315_v37  ;;  %1051 = vmatpush3.msra.mxu0 %v267_v38  ;;  %v309_v61 = vld [vmem:[%s1915_s1 + $0x180] sm:$0xff]  ;;  %v388_v5 = vld [vmem:[%s1915_s1 + $0x3f8] sm:$0xff]  ;;  %v355_v8 = vld [vmem:[%s1915_s1 + $0x2f0] sm:$0xff] }
  0x22   : > { %1095 = vmatpush3.msra.mxu1 %v299_v39  ;;  %1052 = vmatprep.subr.mxu0 %v282_v40  ;;  %v261_v62 = vld [vmem:[%s1915_s1] sm:$0xff]  ;;  %v340_v6 = vld [vmem:[%s1915_s1 + $0x278] sm:$0xff]  ;;  %v387_v9 = vld [vmem:[%s1915_s1 + $0x3f0] sm:$0xff] }
  0x23   : > { %1096 = vmatprep.subr.mxu1 %v314_v41  ;;  %1053 = vmatpush3.msra.mxu0 %v266_v42  ;;  %v293_v0 = vld [vmem:[%s1915_s1 + $0x100] sm:$0xff]  ;;  %v372_v7 = vld [vmem:[%s1915_s1 + $0x378] sm:$0xff]  ;;  %v339_v10 = vld [vmem:[%s1915_s1 + $0x270] sm:$0xff] }
  0x24   : > { %1097 = vmatpush3.msra.mxu1 %v298_v43  ;;  %1054 = vmatprep.subr.mxu0 %v281_v44  ;;  %v1003_v1 = vld [vmem:[%s1573_s21 + $0xa0] sm:$0xff]  ;;  %v371_v11 = vld [vmem:[%s1915_s1 + $0x370] sm:$0xff]  ;;  %v354_v12 = vld [vmem:[%s1915_s1 + $0x2e8] sm:$0xff] }
  0x25   : > { %1098 = vmatprep.subr.mxu1 %v313_v45  ;;  %1055 = vmatpush3.msra.mxu0 %v265_v46  ;;  %v220_v2 = vld [vmem:[%s1573_s21] sm:$0xff]  ;;  %v386_v13 = vld [vmem:[%s1915_s1 + $0x3e8] sm:$0xff]  ;;  %v352_v20 = vld [vmem:[%s1915_s1 + $0x2d8] sm:$0xff] }
  0x26   : > { %1099 = vmatpush3.msra.mxu1 %v297_v47  ;;  %1056 = vmatprep.subr.mxu0 %v280_v48  ;;  %v229_v3 = vld [vmem:[%s1573_s21 + $0x1] sm:$0xff]  ;;  %v384_v21 = vld [vmem:[%s1915_s1 + $0x3d8] sm:$0xff]  ;;  %v351_v24 = vld [vmem:[%s1915_s1 + $0x2d0] sm:$0xff] }
  0x27   : > { %1100 = vmatprep.subr.mxu1 %v312_v49  ;;  %1057 = vmatpush3.msra.mxu0 %v264_v50  ;;  %v338_v14 = vld [vmem:[%s1915_s1 + $0x268] sm:$0xff]  ;;  %v353_v16 = vld [vmem:[%s1915_s1 + $0x2e0] sm:$0xff]  ;;  %v336_v22 = vld [vmem:[%s1915_s1 + $0x258] sm:$0xff] }
  0x28   : > { %1101 = vmatpush3.msra.mxu1 %v296_v51  ;;  %1058 = vmatprep.subr.mxu0 %v279_v52  ;;  %v370_v15 = vld [vmem:[%s1915_s1 + $0x368] sm:$0xff]  ;;  %v385_v17 = vld [vmem:[%s1915_s1 + $0x3e0] sm:$0xff]  ;;  %v368_v23 = vld [vmem:[%s1915_s1 + $0x358] sm:$0xff] }
  0x29   : > { %1102 = vmatprep.subr.mxu1 %v311_v53  ;;  %1059 = vmatpush3.msra.mxu0 %v263_v54  ;;  %v337_v18 = vld [vmem:[%s1915_s1 + $0x260] sm:$0xff]  ;;  %v383_v25 = vld [vmem:[%s1915_s1 + $0x3d0] sm:$0xff]  ;;  %v350_v28 = vld [vmem:[%s1915_s1 + $0x2c8] sm:$0xff] }
  0x2a   : > { %1103 = vmatpush3.msra.mxu1 %v295_v55  ;;  %1060 = vmatprep.subr.mxu0 %v278_v56  ;;  %v369_v19 = vld [vmem:[%s1915_s1 + $0x360] sm:$0xff]  ;;  %v335_v26 = vld [vmem:[%s1915_s1 + $0x250] sm:$0xff]  ;;  %v382_v29 = vld [vmem:[%s1915_s1 + $0x3c8] sm:$0xff] }
  0x2b   : > { %1104 = vmatprep.subr.mxu1 %v310_v57  ;;  %1061 = vmatpush3.msra.mxu0 %v262_v58  ;;  %v367_v27 = vld [vmem:[%s1915_s1 + $0x350] sm:$0xff]  ;;  %v334_v30 = vld [vmem:[%s1915_s1 + $0x248] sm:$0xff]  ;;  %v349_v32 = vld [vmem:[%s1915_s1 + $0x2c0] sm:$0xff] }
  0x2c   : > { %1105 = vmatpush3.msra.mxu1 %v294_v59  ;;  %1062 = vmatprep.subr.mxu0 %v277_v60  ;;  %v366_v31 = vld [vmem:[%s1915_s1 + $0x348] sm:$0xff]  ;;  %v381_v33 = vld [vmem:[%s1915_s1 + $0x3c0] sm:$0xff]  ;;  %v348_v36 = vld [vmem:[%s1915_s1 + $0x2b8] sm:$0xff] }
  0x2d   : > { %1106 = vmatprep.subr.mxu1 %v309_v61  ;;  %1063 = vmatpush3.msra.mxu0 %v261_v62  ;;  %v333_v34 = vld [vmem:[%s1915_s1 + $0x240] sm:$0xff]  ;;  %v380_v37 = vld [vmem:[%s1915_s1 + $0x3b8] sm:$0xff]  ;;  %v1004_v41 = vld [vmem:[%s1573_s21 + $0xb0] sm:$0xff] }
  0x2e   : > { %469 = vmatprep.mubr.f32.mxu0 %v999_v63  ;;  %1107 = vmatpush3.msra.mxu1 %v293_v0  ;;  %v365_v35 = vld [vmem:[%s1915_s1 + $0x340] sm:$0xff]  ;;  %v332_v38 = vld [vmem:[%s1915_s1 + $0x238] sm:$0xff]  ;;  %v347_v42 = vld [vmem:[%s1915_s1 + $0x2b0] sm:$0xff] }
  0x2f   : > { %554 = vmatprep.mubr.f32.mxu1 %v1003_v1  ;;  %470 = vmatmul.mubr.f32.vlgmr.msra.gmra.mxu0 %v220_v2  ;;  %v364_v39 = vld [vmem:[%s1915_s1 + $0x338] sm:$0xff]  ;;  %v1706_v40 = vld [vmem:[%s1573_s21 + $0x60] sm:$0xff]  ;;  %v379_v43 = vld [vmem:[%s1915_s1 + $0x3b0] sm:$0xff] }
  0x30   : > { %555 = vmatmul.mubr.f32.vlgmr.msra.gmra.mxu1 %v229_v3  ;;  %1120 = vmatprep.subr.mxu0 %v356_v4  ;;  %v1716_v44 = vld [vmem:[%s1573_s21 + $0x10] sm:$0xff]  ;;  %v346_v48 = vld [vmem:[%s1915_s1 + $0x2a8] sm:$0xff]  ;;  %v1005_v53 = vld [vmem:[%s1573_s21 + $0xc0] sm:$0xff] }
  0x31   : > { %1164 = vmatprep.subr.mxu1 %v388_v5  ;;  %1121 = vmatpush3.msra.mxu0 %v340_v6  ;;  %v1719_v45 = vld [vmem:[%s1573_s21 + $0x11] sm:$0xff]  ;;  %v378_v49 = vld [vmem:[%s1915_s1 + $0x3a8] sm:$0xff]  ;;  %v345_v54 = vld [vmem:[%s1915_s1 + $0x2a0] sm:$0xff] }
  0x32   : > { %1165 = vmatpush3.msra.mxu1 %v372_v7  ;;  %1122 = vmatprep.subr.mxu0 %v355_v8  ;;  %v331_v46 = vld [vmem:[%s1915_s1 + $0x230] sm:$0xff]  ;;  %v330_v50 = vld [vmem:[%s1915_s1 + $0x228] sm:$0xff]  ;;  %v377_v55 = vld [vmem:[%s1915_s1 + $0x3a0] sm:$0xff] }
  0x33   : > { %1166 = vmatprep.subr.mxu1 %v387_v9  ;;  %1123 = vmatpush3.msra.mxu0 %v339_v10  ;;  %v363_v47 = vld [vmem:[%s1915_s1 + $0x330] sm:$0xff]  ;;  %v362_v51 = vld [vmem:[%s1915_s1 + $0x328] sm:$0xff]  ;;  %v1753_v56 = vld [vmem:[%s1573_s21 + $0x20] sm:$0xff] }
  0x34   : > { %1167 = vmatpush3.msra.mxu1 %v371_v11  ;;  %1124 = vmatprep.subr.mxu0 %v354_v12  ;;  %v1743_v52 = vld [vmem:[%s1573_s21 + $0x70] sm:$0xff]  ;;  %v1756_v57 = vld [vmem:[%s1573_s21 + $0x21] sm:$0xff]  ;;  %v344_v60 = vld [vmem:[%s1915_s1 + $0x298] sm:$0xff] }
  0x35   : > { %1168 = vmatprep.subr.mxu1 %v386_v13  ;;  %1125 = vmatpush3.msra.mxu0 %v338_v14  ;;  %v329_v58 = vld [vmem:[%s1915_s1 + $0x220] sm:$0xff]  ;;  %v376_v61 = vld [vmem:[%s1915_s1 + $0x398] sm:$0xff]  ;;  %v1006_v1 = vld [vmem:[%s1573_s21 + $0xd0] sm:$0xff] }
  0x36   : > { %1169 = vmatpush3.msra.mxu1 %v370_v15  ;;  %1126 = vmatprep.subr.mxu0 %v353_v16  ;;  %v361_v59 = vld [vmem:[%s1915_s1 + $0x320] sm:$0xff]  ;;  %v328_v62 = vld [vmem:[%s1915_s1 + $0x218] sm:$0xff]  ;;  %v343_v2 = vld [vmem:[%s1915_s1 + $0x290] sm:$0xff] }
  0x37   : > { %1170 = vmatprep.subr.mxu1 %v385_v17  ;;  %1127 = vmatpush3.msra.mxu0 %v337_v18  ;;  %v360_v63 = vld [vmem:[%s1915_s1 + $0x318] sm:$0xff]  ;;  %v1780_v0 = vld [vmem:[%s1573_s21 + $0x80] sm:$0xff]  ;;  %v375_v3 = vld [vmem:[%s1915_s1 + $0x390] sm:$0xff] }
  0x38   : > { %1171 = vmatpush3.msra.mxu1 %v369_v19  ;;  %1128 = vmatprep.subr.mxu0 %v352_v20  ;;  %v1790_v4 = vld [vmem:[%s1573_s21 + $0x30] sm:$0xff]  ;;  %v342_v8 = vld [vmem:[%s1915_s1 + $0x288] sm:$0xff]  ;;  %v341_v12 = vld [vmem:[%s1915_s1 + $0x280] sm:$0xff] }
  0x39   : > { %1172 = vmatprep.subr.mxu1 %v384_v21  ;;  %1129 = vmatpush3.msra.mxu0 %v336_v22  ;;  %v1793_v5 = vld [vmem:[%s1573_s21 + $0x31] sm:$0xff]  ;;  %v374_v9 = vld [vmem:[%s1915_s1 + $0x388] sm:$0xff]  ;;  %v373_v13 = vld [vmem:[%s1915_s1 + $0x380] sm:$0xff] }
  0x3a   : > { %1173 = vmatpush3.msra.mxu1 %v368_v23  ;;  %1130 = vmatprep.subr.mxu0 %v351_v24  ;;  %v327_v6 = vld [vmem:[%s1915_s1 + $0x210] sm:$0xff]  ;;  %v326_v10 = vld [vmem:[%s1915_s1 + $0x208] sm:$0xff]  ;;  %v325_v14 = vld [vmem:[%s1915_s1 + $0x200] sm:$0xff] }
  0x3b   : > { %1174 = vmatprep.subr.mxu1 %v383_v25  ;;  %1131 = vmatpush3.msra.mxu0 %v335_v26  ;;  %v359_v7 = vld [vmem:[%s1915_s1 + $0x310] sm:$0xff]  ;;  %v358_v11 = vld [vmem:[%s1915_s1 + $0x308] sm:$0xff]  ;;  %v357_v16 = vld [vmem:[%s1915_s1 + $0x300] sm:$0xff] }
  0x3c   : > { %1175 = vmatpush3.msra.mxu1 %v367_v27  ;;  %1132 = vmatprep.subr.mxu0 %v350_v28  ;;  %v1011_v15 = vld [vmem:[%s1573_s21 + $0xa1] sm:$0xff]  ;;  %v1007_v17 = vld [vmem:[%s1573_s21 + $0xf0] sm:$0xff]  ;;  %v404_v18 = vld [vmem:[%s1915_s1 + $0x478] sm:$0xff] }
  0x3d   : > { %1176 = vmatprep.subr.mxu1 %v382_v29  ;;  %1133 = vmatpush3.msra.mxu0 %v334_v30  ;;  %v403_v19 = vld [vmem:[%s1915_s1 + $0x470] sm:$0xff]  ;;  %v1008_v21 = vld [vmem:[%s1573_s21 + $0x100] sm:$0xff]  ;;  %v402_v22 = vld [vmem:[%s1915_s1 + $0x468] sm:$0xff] }
  0x3e   : > { %1177 = vmatpush3.msra.mxu1 %v366_v31  ;;  %1134 = vmatprep.subr.mxu0 %v349_v32  ;;  %v1012_v20 = vld [vmem:[%s1573_s21 + $0xb1] sm:$0xff]  ;;  %v401_v23 = vld [vmem:[%s1915_s1 + $0x460] sm:$0xff]  ;;  %v398_v30 = vld [vmem:[%s1915_s1 + $0x448] sm:$0xff] }
  0x3f   : > { %1178 = vmatprep.subr.mxu1 %v381_v33  ;;  %1135 = vmatpush3.msra.mxu0 %v333_v34  ;;  %v1013_v24 = vld [vmem:[%s1573_s21 + $0xc1] sm:$0xff]  ;;  %v1009_v25 = vld [vmem:[%s1573_s21 + $0x110] sm:$0xff]  ;;  %v400_v26 = vld [vmem:[%s1915_s1 + $0x458] sm:$0xff] }
  0x40   : > { %1179 = vmatpush3.msra.mxu1 %v365_v35  ;;  %1136 = vmatprep.subr.mxu0 %v348_v36  ;;  %v399_v27 = vld [vmem:[%s1915_s1 + $0x450] sm:$0xff]  ;;  %v1010_v29 = vld [vmem:[%s1573_s21 + $0x120] sm:$0xff]  ;;  %v396_v34 = vld [vmem:[%s1915_s1 + $0x438] sm:$0xff] }
  0x41   : > { %1180 = vmatprep.subr.mxu1 %v380_v37  ;;  %1137 = vmatpush3.msra.mxu0 %v332_v38  ;;  %v1014_v28 = vld [vmem:[%s1573_s21 + $0xd1] sm:$0xff]  ;;  %v397_v32 = vld [vmem:[%s1915_s1 + $0x440] sm:$0xff]  ;;  %v394_v36 = vld [vmem:[%s1915_s1 + $0x428] sm:$0xff] }
  0x42   : > { %1181 = vmatpush3.msra.mxu1 %v364_v39  ;;  %474 = vmatprep.mubr.f32.mxu0 %v1706_v40  ;;  %v1022_v31 = vld [vmem:[%s1573_s21 + $0x90] sm:$0xff]  ;;  %v1018_v33 = vld [vmem:[%s1573_s21 + $0x40] sm:$0xff]  ;;  %v392_v38 = vld [vmem:[%s1915_s1 + $0x418] sm:$0xff] }
  0x43   : > { %559 = vmatprep.mubr.f32.mxu1 %v1004_v41  ;;  %1138 = vmatprep.subr.mxu0 %v347_v42  ;;  %v395_v35 = vld [vmem:[%s1915_s1 + $0x430] sm:$0xff]  ;;  %v393_v37 = vld [vmem:[%s1915_s1 + $0x420] sm:$0xff] }
  0x44   : > { %1182 = vmatprep.subr.mxu1 %v379_v43  ;;  %475 = vmatmul.mubr.f32.gmra.mxu0 %v1716_v44  ;;  %v391_v39 = vld [vmem:[%s1915_s1 + $0x410] sm:$0xff]  ;;  %v389_v41 = vld [vmem:[%s1915_s1 + $0x400] sm:$0xff] }
  0x45   : > { %560 = vmatmul.mubr.f32.gmra.mxu1 %v1719_v45  ;;  %1139 = vmatpush3.msra.mxu0 %v331_v46  ;;  %v1026_v42 = vld [vmem:[%s1573_s21 + $0x41] sm:$0xff]  ;;  %s997_s21 = sshll.u32 %s1338_s12, 2 }
  0x46   : > { %1183 = vmatpush3.msra.mxu1 %v363_v47  ;;  %1140 = vmatprep.subr.mxu0 %v346_v48  ;;  %p208_p5 = scmp.lt.s32.totalorder %s997_s21, 15 }
  0x47   : > { %1184 = vmatprep.subr.mxu1 %v378_v49  ;;  %1141 = vmatpush3.msra.mxu0 %v330_v50 }
  0x48   : > { %1185 = vmatpush3.msra.mxu1 %v362_v51  ;;  %479 = vmatprep.mubr.f32.mxu0 %v1743_v52  ;;  %s1923_s21 = smov (!%p208_p5, %s997_s21), 15 }
  0x49   : > { %564 = vmatprep.mubr.f32.mxu1 %v1005_v53  ;;  %1142 = vmatprep.subr.mxu0 %v345_v54  ;;  %s998_s17 = sshll.u32 %s1923_s21, 3 }
  0x4a   : > { %1186 = vmatprep.subr.mxu1 %v377_v55  ;;  %480 = vmatmul.mubr.f32.gmra.mxu0 %v1753_v56  ;;  %s214_s20 = scalar_lea.vmem %s1916_s2, %s998_s17 }
  0x4b   : > { %565 = vmatmul.mubr.f32.gmra.mxu1 %v1756_v57  ;;  %1143 = vmatpush3.msra.mxu0 %v329_v58 }
  0x4c   : > { %1187 = vmatpush3.msra.mxu1 %v361_v59  ;;  %1144 = vmatprep.subr.mxu0 %v344_v60 }
  0x4d   : > { %1188 = vmatprep.subr.mxu1 %v376_v61  ;;  %1145 = vmatpush3.msra.mxu0 %v328_v62 }
  0x4e   : > { %1189 = vmatpush3.msra.mxu1 %v360_v63  ;;  %484 = vmatprep.mubr.f32.mxu0 %v1780_v0 }
  0x4f   : > { %569 = vmatprep.mubr.f32.mxu1 %v1006_v1  ;;  %1146 = vmatprep.subr.mxu0 %v343_v2 }
  0x50   : > { %1190 = vmatprep.subr.mxu1 %v375_v3  ;;  %485 = vmatmul.mubr.f32.gmra.mxu0 %v1790_v4 }
  0x51   : > { %570 = vmatmul.mubr.f32.gmra.mxu1 %v1793_v5  ;;  %1147 = vmatpush3.msra.mxu0 %v327_v6 }
  0x52   : > { %1191 = vmatpush3.msra.mxu1 %v359_v7  ;;  %1148 = vmatprep.subr.mxu0 %v342_v8 }
  0x53   : > { %1192 = vmatprep.subr.mxu1 %v374_v9  ;;  %1149 = vmatpush3.msra.mxu0 %v326_v10 }
  0x54   : > { %1193 = vmatpush3.msra.mxu1 %v358_v11  ;;  %1150 = vmatprep.subr.mxu0 %v341_v12 }
  0x55   : > { %1194 = vmatprep.subr.mxu1 %v373_v13  ;;  %1151 = vmatpush3.msra.mxu0 %v325_v14 }
  0x56   : > { %639 = vmatprep.mubr.f32.mxu0 %v1011_v15  ;;  %1195 = vmatpush3.msra.mxu1 %v357_v16 }
  0x57   : > { %640 = vmatmul.mubr.f32.vlgmr.msra.gmra.mxu0 %v1007_v17  ;;  %724 = vmatprep.mubr.f32.mxu1 %v1706_v40  ;;  %v390_v40 = vld [vmem:[%s1915_s1 + $0x408] sm:$0xff] }
  0x58   : > { %1228 = vmatprep.subr.mxu0 %v404_v18  ;;  %1266 = vmatprep.subr.mxu1 %v404_v18 }
  0x59   : > { %725 = vmatmul.mubr.f32.vlgmr.msra.gmra.mxu1 %v1716_v44  ;;  %1229 = vmatpush3.msra.mxu0 %v404_v18 }
  0x5a   : > { %1282 = vmatpush3.msra.mxu1 %v404_v18  ;;  %1230 = vmatprep.subr.mxu0 %v403_v19 }
  0x5b   : > { %1267 = vmatprep.subr.mxu1 %v403_v19  ;;  %644 = vmatprep.mubr.f32.mxu0 %v1012_v20 }
  0x5c   : > { %1231 = vmatpush3.msra.mxu0 %v403_v19  ;;  %1283 = vmatpush3.msra.mxu1 %v403_v19 }
  0x5d   : > { %645 = vmatmul.mubr.f32.gmra.mxu0 %v1008_v21  ;;  %1232 = vmatprep.subr.mxu0 %v402_v22 }
  0x5e   : > { %1268 = vmatprep.subr.mxu1 %v402_v22  ;;  %729 = vmatprep.mubr.f32.mxu1 %v1743_v52 }
  0x5f   : > { %1233 = vmatpush3.msra.mxu0 %v402_v22  ;;  %1284 = vmatpush3.msra.mxu1 %v402_v22 }
  0x60   : > { %1234 = vmatprep.subr.mxu0 %v401_v23  ;;  %730 = vmatmul.mubr.f32.gmra.mxu1 %v1753_v56 }
  0x61   : > { %1269 = vmatprep.subr.mxu1 %v401_v23  ;;  %649 = vmatprep.mubr.f32.mxu0 %v1013_v24 }
  0x62   : > { %1235 = vmatpush3.msra.mxu0 %v401_v23  ;;  %1285 = vmatpush3.msra.mxu1 %v401_v23 }
  0x63   : > { %650 = vmatmul.mubr.f32.gmra.mxu0 %v1009_v25  ;;  %1236 = vmatprep.subr.mxu0 %v400_v26 }
  0x64   : > { %1270 = vmatprep.subr.mxu1 %v400_v26  ;;  %734 = vmatprep.mubr.f32.mxu1 %v1780_v0 }
  0x65   : > { %1237 = vmatpush3.msra.mxu0 %v400_v26  ;;  %1286 = vmatpush3.msra.mxu1 %v400_v26 }
  0x66   : > { %1238 = vmatprep.subr.mxu0 %v399_v27  ;;  %735 = vmatmul.mubr.f32.gmra.mxu1 %v1790_v4 }
  0x67   : > { %1271 = vmatprep.subr.mxu1 %v399_v27  ;;  %654 = vmatprep.mubr.f32.mxu0 %v1014_v28 }
  0x68   : > { %1239 = vmatpush3.msra.mxu0 %v399_v27  ;;  %1287 = vmatpush3.msra.mxu1 %v399_v27 }
  0x69   : > { %655 = vmatmul.mubr.f32.gmra.mxu0 %v1010_v29  ;;  %1240 = vmatprep.subr.mxu0 %v398_v30 }
  0x6a   : > { %1272 = vmatprep.subr.mxu1 %v398_v30  ;;  %739 = vmatprep.mubr.f32.mxu1 %v1022_v31 }
  0x6b   : > { %1241 = vmatpush3.msra.mxu0 %v398_v30  ;;  %1288 = vmatpush3.msra.mxu1 %v398_v30 }
  0x6c   : > { %1242 = vmatprep.subr.mxu0 %v397_v32  ;;  %740 = vmatmul.mubr.f32.gmra.mxu1 %v1018_v33 }
  0x6d   : > { %1273 = vmatprep.subr.mxu1 %v397_v32  ;;  %1243 = vmatpush3.msra.mxu0 %v397_v32 }
  0x6e   : > { %1289 = vmatpush3.msra.mxu1 %v397_v32  ;;  %1244 = vmatprep.subr.mxu0 %v396_v34 }
  0x6f   : > { %1274 = vmatprep.subr.mxu1 %v396_v34  ;;  %1245 = vmatpush3.msra.mxu0 %v396_v34 }
  0x70   : > { %1290 = vmatpush3.msra.mxu1 %v396_v34  ;;  %1246 = vmatprep.subr.mxu0 %v395_v35 }
  0x71   : > { %1275 = vmatprep.subr.mxu1 %v395_v35  ;;  %1247 = vmatpush3.msra.mxu0 %v395_v35 }
  0x72   : > { %1291 = vmatpush3.msra.mxu1 %v395_v35  ;;  %1248 = vmatprep.subr.mxu0 %v394_v36 }
  0x73   : > { %1276 = vmatprep.subr.mxu1 %v394_v36  ;;  %1249 = vmatpush3.msra.mxu0 %v394_v36 }
  0x74   : > { %1292 = vmatpush3.msra.mxu1 %v394_v36  ;;  %1250 = vmatprep.subr.mxu0 %v393_v37 }
  0x75   : > { %1277 = vmatprep.subr.mxu1 %v393_v37  ;;  %1251 = vmatpush3.msra.mxu0 %v393_v37 }
  0x76   : > { %1293 = vmatpush3.msra.mxu1 %v393_v37  ;;  %1252 = vmatprep.subr.mxu0 %v392_v38 }
  0x77   : > { %1278 = vmatprep.subr.mxu1 %v392_v38  ;;  %1253 = vmatpush3.msra.mxu0 %v392_v38 }
  0x78   : > { %1294 = vmatpush3.msra.mxu1 %v392_v38  ;;  %1254 = vmatprep.subr.mxu0 %v391_v39 }
  0x79   : > { %1279 = vmatprep.subr.mxu1 %v391_v39  ;;  %1255 = vmatpush3.msra.mxu0 %v391_v39 }
  0x7a   : > { %1295 = vmatpush3.msra.mxu1 %v391_v39  ;;  %1256 = vmatprep.subr.mxu0 %v390_v40 }
  0x7b   : > { %1280 = vmatprep.subr.mxu1 %v390_v40  ;;  %1257 = vmatpush3.msra.mxu0 %v390_v40 }
  0x7c   : > { %1296 = vmatpush3.msra.mxu1 %v390_v40  ;;  %1258 = vmatprep.subr.mxu0 %v389_v41 }
  0x7d   : > { %1281 = vmatprep.subr.mxu1 %v389_v41  ;;  %1259 = vmatpush3.msra.mxu0 %v389_v41 }
  0x7e   : > { %1297 = vmatpush3.msra.mxu1 %v389_v41  ;;  %1260 = vmatprep.mubr.f32.mxu0 %v1719_v45 }
  0x7f   : > { %1263 = vmatprep.mubr.f32.mxu1 %v1793_v5  ;;  %1261 = vmatmul.mubr.f32.vlgmr.msra.gmra.mxu0 %v1756_v57 }
  0x80   : > { %1264 = vmatmul.mubr.f32.vlgmr.msra.gmra.mxu1 %v1026_v42 }
  0xef   : > { %v1064_v43 = vpop.f32.mrf.mxu0 }
  0xf0   : > { %v1108_v44 = vpop.f32.mrf.mxu1 }
  0xf1   : > { %v1065_v46 = vpop.f32.mrf.mxu0 }
  0xf2   : > { %v1109_v47 = vpop.f32.mrf.mxu1  ;;  %v1066_v14 = vadd.f32 %v1065_v46, %v1064_v43 }
  0xf3   : > { %v1110_v15 = vadd.f32 %v1109_v47, %v1108_v44 }
  0xf5   : > { %v557_v25 = vadd.f32 %v1110_v15, %v1066_v14 }
 0x104   : > { %v1067_v48 = vpop.f32.mrf.mxu0 }
 0x105   : > { %v1111_v49 = vpop.f32.mrf.mxu1 }
 0x106   : > { %v1068_v50 = vpop.f32.mrf.mxu0 }
 0x107   : > { %v1112_v51 = vpop.f32.mrf.mxu1  ;;  %v1069_v10 = vadd.f32 %v1068_v50, %v1067_v48 }
 0x108   : > { %v1113_v11 = vadd.f32 %v1112_v51, %v1111_v49 }
 0x10a   : > { %v1070_v52 = vpop.f32.mrf.mxu0  ;;  %v562_v21 = vadd.f32 %v1113_v11, %v1069_v10 }
 0x10b   : > { %v1114_v54 = vpop.f32.mrf.mxu1 }
 0x10c   : > { %v1071_v53 = vpop.f32.mrf.mxu0 }
 0x10d   : > { %v1115_v56 = vpop.f32.mrf.mxu1  ;;  %v1072_v16 = vadd.f32 %v1071_v53, %v1070_v52 }
 0x10e   : > { %v1116_v17 = vadd.f32 %v1115_v56, %v1114_v54 }
 0x110   : > { %v1073_v55 = vpop.f32.mrf.mxu0  ;;  %v567_v26 = vadd.f32 %v1116_v17, %v1072_v16 }
 0x111   : > { %v1117_v45 = vpop.f32.mrf.mxu1 }
 0x112   : > { %v1074_v58 = vpop.f32.mrf.mxu0 }
 0x113   : > { %v1118_v60 = vpop.f32.mrf.mxu1  ;;  %v1075_v12 = vadd.f32 %v1074_v58, %v1073_v55 }
 0x114   : > { %v1119_v13 = vadd.f32 %v1118_v60, %v1117_v45 }
 0x116   : > { %v572_v22 = vadd.f32 %v1119_v13, %v1075_v12 }
 0x117   : > { %v1152_v59 = vpop.f32.mrf.mxu0 }
 0x119   : > { %v1196_v57 = vpop.f32.mrf.mxu1  ;;  %v1153_v61 = vpop.f32.mrf.mxu0 }
 0x11a   : > { %v1154_v23 = vadd.f32 %v1153_v61, %v1152_v59 }
 0x11b   : > { %v1197_v62 = vpop.f32.mrf.mxu1 }
 0x11c   : > { %v642_v31 = vadd.f32 %v1154_v23, %v557_v25  ;;  %v1198_v32 = vadd.f32 %v1197_v62, %v1196_v57 }
 0x11d   : > { %v1155_v63 = vpop.f32.mrf.mxu0 }
 0x11e   : > { %v727_v41 = vadd.f32 %v1198_v32, %v642_v31 }
 0x11f   : > { %v1156_v0 = vpop.f32.mrf.mxu0 }
 0x120   : > { %v1199_v1 = vpop.f32.mrf.mxu1  ;;  %v1157_v18 = vadd.f32 %v1156_v0, %v1155_v63 }
 0x122   : > { %v1200_v3 = vpop.f32.mrf.mxu1  ;;  %v647_v27 = vadd.f32 %v1157_v18, %v562_v21 }
 0x123   : > { %v1158_v2 = vpop.f32.mrf.mxu0  ;;  %v1201_v28 = vadd.f32 %v1200_v3, %v1199_v1 }
 0x125   : > { %v1159_v4 = vpop.f32.mrf.mxu0  ;;  %v732_v35 = vadd.f32 %v1201_v28, %v647_v27 }
 0x126   : > { %v1202_v5 = vpop.f32.mrf.mxu1  ;;  %v1160_v24 = vadd.f32 %v1159_v4, %v1158_v2 }
 0x128   : > { %v1203_v7 = vpop.f32.mrf.mxu1  ;;  %v652_v33 = vadd.f32 %v1160_v24, %v567_v26 }
 0x129   : > { %v1161_v6 = vpop.f32.mrf.mxu0  ;;  %v1204_v34 = vadd.f32 %v1203_v7, %v1202_v5 }
 0x12b   : > { %v1162_v8 = vpop.f32.mrf.mxu0  ;;  %v737_v42 = vadd.f32 %v1204_v34, %v652_v33 }
 0x12c   : > { %v1205_v9 = vpop.f32.mrf.mxu1  ;;  %v1163_v19 = vadd.f32 %v1162_v8, %v1161_v6 }
 0x12e   : > { %v1206_v20 = vpop.f32.mrf.mxu1  ;;  %v657_v29 = vadd.f32 %v1163_v19, %v572_v22 }
 0x12f   : > { %v1207_v30 = vadd.f32 %v1206_v20, %v1205_v9 }
 0x131   : > { %v742_v36 = vadd.f32 %v1207_v30, %v657_v29 }
 0x13f   : > { %v1262_v37 = vpop.f32.mrf.mxu0 }
 0x140   : > { %v1265_v38 = vpop.f32.mrf.mxu1  ;;  %v817_v39 = vadd.f32 %v1262_v37, %v732_v35 }
 0x141   : > { %v827_v40 = vadd.f32 %v1265_v38, %v742_v36  ;;  %v811_v43 = vpop.f32.mrf.mxu0 }
 0x142   : > { %v821_v44 = vpop.f32.mrf.mxu1  ;;  %831 = vst [vmem:[%s214_s20 + $0x8] sm:$0xff] %v817_v39  ;;  %v812_v46 = vadd.f32 %v811_v43, %v727_v41  ;;  %v844_v48 = vmul.f32 %v817_v39, %v817_v39 }
 0x143   : > { %833 = vst [vmem:[%s214_s20 + $0x18] sm:$0xff] %v827_v40  ;;  %v822_v47 = vadd.f32 %v821_v44, %v737_v42  ;;  %v846_v54 = vmul.f32 %v827_v40, %v827_v40 }
 0x144   : > { %830 = vst [vmem:[%s214_s20] sm:$0xff] %v812_v46  ;;  %v834_v49 = vadd.f32 %v817_v39, %v812_v46  ;;  %v843_v50 = vmul.f32 %v812_v46, %v812_v46 }
 0x145   : > { %832 = vst [vmem:[%s214_s20 + $0x10] sm:$0xff] %v822_v47  ;;  %v845_v53 = vmul.f32 %v822_v47, %v822_v47 }
 0x146   : > { %v847_v51 = vadd.f32 %v844_v48, %v843_v50  ;;  %v835_v52 = vadd.f32 %v834_v49, %v822_v47 }
 0x148   : > { %v836_v55 = vadd.f32 %v835_v52, %v827_v40  ;;  %v848_v56 = vadd.f32 %v847_v51, %v845_v53 }
 0x14a   : > { %v837_v58 = vrot.slane %v836_v55, 4  ;;  %v849_v45 = vadd.f32 %v848_v56, %v846_v54 }
 0x14c   : > { %v838_v59 = vadd.f32 %v837_v58, %v836_v55  ;;  %v850_v60 = vrot.slane %v849_v45, 4 }
 0x14e   : > { %v839_v57 = vrot.slane %v838_v59, 2  ;;  %v851_v61 = vadd.f32 %v850_v60, %v849_v45 }
 0x150   : > { %v840_v62 = vadd.f32 %v839_v57, %v838_v59  ;;  %v852_v63 = vrot.slane %v851_v61, 2 }
 0x152   : > { %v841_v0 = vrot.slane %v840_v62, 1  ;;  %v853_v1 = vadd.f32 %v852_v63, %v851_v61 }
 0x154   : > { %v854_v2 = vrot.slane %v853_v1, 1  ;;  %v842_v3 = vadd.f32 %v841_v0, %v840_v62  ;;  %861 = sbr.rel (%p1027_p6) target bundleno = 347 (0x15b), region = 32 }
 0x156   : > { %v855_v4 = vadd.f32 %v854_v2, %v853_v1 }
 0x158   : > { %v857_v5 = vsel %vm856_vm0, %v842_v3, %v855_v4 }
 0x159   : > { %v1348_v6 = vmov 0.0  }
 0x15a   : > { %862 = vst [vmem:[#allocation2] sm:$0x3] %v1348_v6 }
 0x15b PF: > { %p1028_p7 = scmp.ne.s32.totalorder %s1338_s12, 3 }
 0x160   : > { %869 = sbr.rel (%p1028_p7) target bundleno = 365 (0x16d), region = 36 }
 0x161   : > { %v863_v7 = vld [vmem:[#allocation2] sm:$0x3] }
 0x162   : > { %v864_v8 = vadd.f32 %v863_v7, %v857_v5 }
 0x164   : > { %865 = vst [vmem:[#allocation2] sm:$0x3] %v864_v8 }
 0x16b   : > { %v870_v9 = vld [vmem:[#allocation2] sm:$0x3] }
 0x16c   : > { %871 = vst [vmem:[%s1917_s3] sm:$0x3] %v870_v9 }
 0x16d PF: > { %s14_s14 = sadd.s32 1, %s1346_s14   ;;  %s1918_s12 = smov %s1342_s13 }
 0x16e   : > { %p11_p8 = scmp.ge.s32.totalorder %s14_s14, 6   ;;  %s1919_s13 = smov %s1921_s15 }
 0x170   :  { %13 = sbr.rel (!%p11_p8) target bundleno = 2 (0x2), region = 86 }

// kernel: residual_block_psp_pallas.19
= control target key start
LH: loop header
LB: loop body
LE: loop exit
PB: predicated region body
PF: predicated region fallthrough
CT: control target
= control target key end

     0   :  { %s541_s15 = smov 0   ;;  %s543_s16 = smov 0   ;;  %s589_s0 = inlined_call_operand.vmem [shape: f32[128,128], index: 0, kind: input, shape index: {}]   ;;  %s590_s1 = inlined_call_operand.vmem [shape: f32[2,128], index: 1, kind: input, shape index: {}]   ;;  %s591_s2 = inlined_call_operand.vmem [shape: f32[1,128], index: 2, kind: input, shape index: {}]   ;;  %s592_s3 = inlined_call_operand.vmem [shape: f32[1,128], index: 3, kind: input, shape index: {}]   ;;  %s593_s4 = inlined_call_operand.vmem [shape: f32[128,128], index: 4, kind: output, shape index: {}]  }
   0x1   :  { %s545_s17 = smov 0  }
   0x2 LB: > { %s23_s18 = sadd.s32 1, %s510_s16  ;;  %p459_p0 = scmp.ge.s32.totalorder %s514_s17, 1  ;;  %s514_s17 = sphi %s545_s17, %s14_s17   ;;  %s510_s16 = sphi %s543_s16, %s595_s16   ;;  %s506_s15 = sphi %s541_s15, %s594_s15  }
   0x3   : > { %p24_p1 = scmp.ge.s32.totalorder %s23_s18, 2  ;;  %p207_p2 = scmp.lt.s32.totalorder %s514_s17, 3 }
   0x5   : > { %s597_s18 = smov (%p24_p1, %s23_s18), 0  ;;  %p208_p3 = pnand %p459_p0, %p207_p2 }
   0x6   : > { %s460_s23 = sshll.u32 (!%p208_p3), %s506_s15, 3 }
   0x7   : > { %211 = sbr.rel (%p208_p3) target bundleno = 51 (0x33), region = 36  ;;  %p250_p4 = scmp.lt.s32.totalorder (!%p208_p3), %s460_s23, 15 }
   0xc   : > { %v277_v0 = vld [vmem:[%s590_s1] sm:$0x1]  ;;  %v279_v1 = vld [vmem:[%s590_s1 + $0x1] sm:$0x1]  ;;  %s599_s23 = smov (!%p250_p4, %s460_s23), 15  ;;  %v300_v8 = vlaneseq }
   0xd   : > { %v278_v2 = vmul.f32 0.0078125, %v277_v0  ;;  %v280_v3 = vmul.f32 0.0078125, %v279_v1  ;;  %s461_s24 = sshll.u32 %s599_s23, 3  ;;  %v284_v10 = vld [vmem:[%s591_s2] sm:$0x1] }
   0xe   : > { %v301_v9 = vshrl.u32 %v300_v8, 7  ;;  %s256_s27 = scalar_lea.vmem %s589_s0, %s461_s24  ;;  %v288_v14 = vld [vmem:[%s592_s3] sm:$0x1]  ;;  %s275_s8 = scalar_lea.vmem %s593_s4, %s461_s24 }
   0xf   : > { %v281_v4 = vmul.f32 %v278_v2, %v278_v2  ;;  %v291_v15 = vld [vmem:[%s256_s27] sm:$0xff]  ;;  %v292_v16 = vld [vmem:[%s256_s27 + $0x8] sm:$0xff]  ;;  %v293_v17 = vld [vmem:[%s256_s27 + $0x10] sm:$0xff] }
  0x10   : > { %v302_v11 = vsub.s32 0, %v301_v9  ;;  %v294_v18 = vld [vmem:[%s256_s27 + $0x18] sm:$0xff]  ;;  %v295_v21 = vld [vmem:[%s256_s27 + $0x20] sm:$0xff]  ;;  %v296_v22 = vld [vmem:[%s256_s27 + $0x28] sm:$0xff] }
  0x11   : > { %v282_v5 = vsub.f32 %v280_v3, %v281_v4  ;;  %v297_v23 = vld [vmem:[%s256_s27 + $0x30] sm:$0xff]  ;;  %v298_v24 = vld [vmem:[%s256_s27 + $0x38] sm:$0xff] }
  0x13   : > { %v283_v6 = vmax.f32 %v282_v5, 0.0 }
  0x15   : > { %v285_v7 = vadd.f32 1e-05, %v283_v6 }
  0x17   : > { %490 = vrsqrt.f32 %v285_v7 }
  0x24   : > { %v491_v12 = vpop.eup %490 }
  0x25   : > { %v287_v13 = vmul.f32 %v491_v12, %v284_v10 }
  0x27   : > { %v289_v19 = vmul.f32 %v287_v13, %v278_v2  ;;  %v303_v20 = vrot.slane %v287_v13, %v302_v11 }
  0x29   : > { %v290_v25 = vsub.f32 %v288_v14, %v289_v19  ;;  %v305_v26 = vmul.f32 %v303_v20, %v291_v15  ;;  %v306_v27 = vmul.f32 %v303_v20, %v292_v16  ;;  %v307_v28 = vmul.f32 %v303_v20, %v293_v17 }
  0x2a   : > { %v308_v29 = vmul.f32 %v303_v20, %v294_v18  ;;  %v309_v30 = vmul.f32 %v303_v20, %v295_v21  ;;  %v310_v31 = vmul.f32 %v303_v20, %v296_v22  ;;  %v311_v32 = vmul.f32 %v303_v20, %v297_v23 }
  0x2b   : > { %v317_v33 = vrot.slane %v290_v25, %v302_v11  ;;  %v312_v34 = vmul.f32 %v303_v20, %v298_v24 }
  0x2d   : > { %v319_v35 = vadd.f32 %v317_v33, %v305_v26  ;;  %v320_v36 = vadd.f32 %v317_v33, %v306_v27  ;;  %v321_v37 = vadd.f32 %v317_v33, %v307_v28  ;;  %v322_v38 = vadd.f32 %v317_v33, %v308_v29 }
  0x2e   : > { %v323_v39 = vadd.f32 %v317_v33, %v309_v30  ;;  %v324_v40 = vadd.f32 %v317_v33, %v310_v31  ;;  %v325_v41 = vadd.f32 %v317_v33, %v311_v32  ;;  %v326_v42 = vadd.f32 %v317_v33, %v312_v34 }
  0x2f   : > { %327 = vst [vmem:[%s275_s8] sm:$0xff] %v319_v35  ;;  %328 = vst [vmem:[%s275_s8 + $0x8] sm:$0xff] %v320_v36 }
  0x30   : > { %329 = vst [vmem:[%s275_s8 + $0x10] sm:$0xff] %v321_v37  ;;  %330 = vst [vmem:[%s275_s8 + $0x18] sm:$0xff] %v322_v38 }
  0x31   : > { %331 = vst [vmem:[%s275_s8 + $0x20] sm:$0xff] %v323_v39  ;;  %332 = vst [vmem:[%s275_s8 + $0x28] sm:$0xff] %v324_v40 }
  0x32   : > { %333 = vst [vmem:[%s275_s8 + $0x30] sm:$0xff] %v325_v41  ;;  %334 = vst [vmem:[%s275_s8 + $0x38] sm:$0xff] %v326_v42 }
  0x33 PF: > { %s14_s17 = sadd.s32 1, %s514_s17   ;;  %s594_s15 = smov %s510_s16 }
  0x34   : > { %p11_p5 = scmp.ge.s32.totalorder %s14_s17, 4   ;;  %s595_s16 = smov %s597_s18 }
  0x36   :  { %13 = sbr.rel (!%p11_p5) target bundleno = 2 (0x2), region = 75 }

// kernel: residual_block_psp_pallas.21
= control target key start
LH: loop header
LB: loop body
LE: loop exit
PB: predicated region body
PF: predicated region fallthrough
CT: control target
= control target key end

     0   :  { %s647_s18 = smov 0   ;;  %s649_s19 = smov 0   ;;  %s700_s0 = inlined_call_operand.vmem [shape: f32[128,128], index: 0, kind: input, shape index: {}]   ;;  %s701_s1 = inlined_call_operand.vmem [shape: f32[2,128], index: 1, kind: input, shape index: {}]   ;;  %s702_s2 = inlined_call_operand.vmem [shape: f32[1,128], index: 2, kind: input, shape index: {}]   ;;  %s703_s3 = inlined_call_operand.vmem [shape: f32[1,128], index: 3, kind: input, shape index: {}]   ;;  %s704_s4 = inlined_call_operand.vmem [shape: f32[128,128], index: 4, kind: input, shape index: {}]   ;;  %s705_s5 = inlined_call_operand.vmem [shape: f32[128,128], index: 5, kind: output, shape index: {}]  }
   0x1   :  { %s651_s20 = smov 0  }
   0x2 LB: > { %s24_s21 = sadd.s32 1, %s611_s19  ;;  %p558_p0 = scmp.ge.s32.totalorder %s615_s20, 1  ;;  %s615_s20 = sphi %s651_s20, %s15_s20   ;;  %s611_s19 = sphi %s649_s19, %s707_s19   ;;  %s607_s18 = sphi %s647_s18, %s706_s18  }
   0x3   : > { %p25_p1 = scmp.ge.s32.totalorder %s24_s21, 2  ;;  %p248_p2 = scmp.lt.s32.totalorder %s615_s20, 3 }
   0x5   : > { %s709_s21 = smov (%p25_p1, %s24_s21), 0  ;;  %p249_p3 = pnand %p558_p0, %p248_p2 }
   0x6   : > { %s559_s26 = sshll.u32 (!%p249_p3), %s607_s18, 3 }
   0x7   : > { %252 = sbr.rel (%p249_p3) target bundleno = 55 (0x37), region = 40  ;;  %p301_p4 = scmp.lt.s32.totalorder (!%p249_p3), %s559_s26, 15 }
   0xc   : > { %v337_v0 = vld [vmem:[%s701_s1] sm:$0x1]  ;;  %v339_v1 = vld [vmem:[%s701_s1 + $0x1] sm:$0x1]  ;;  %s711_s26 = smov (!%p301_p4, %s559_s26), 15  ;;  %v360_v8 = vlaneseq }
   0xd   : > { %v338_v2 = vmul.f32 0.0078125, %v337_v0  ;;  %v340_v3 = vmul.f32 0.0078125, %v339_v1  ;;  %s671_s27 = sshll.u32 %s711_s26, 3  ;;  %v344_v10 = vld [vmem:[%s702_s2] sm:$0x1] }
   0xe   : > { %v361_v9 = vshrl.u32 %v360_v8, 7  ;;  %s307_s30 = scalar_lea.vmem %s700_s0, %s671_s27  ;;  %v348_v14 = vld [vmem:[%s703_s3] sm:$0x1]  ;;  %s326_s12 = scalar_lea.vmem %s704_s4, %s671_s27 }
   0xf   : > { %v341_v4 = vmul.f32 %v338_v2, %v338_v2  ;;  %v351_v15 = vld [vmem:[%s307_s30] sm:$0xff]  ;;  %v352_v16 = vld [vmem:[%s307_s30 + $0x8] sm:$0xff]  ;;  %v353_v17 = vld [vmem:[%s307_s30 + $0x10] sm:$0xff]  ;;  %s335_s15 = scalar_lea.vmem %s705_s5, %s671_s27 }
  0x10   : > { %v362_v11 = vsub.s32 0, %v361_v9  ;;  %v354_v18 = vld [vmem:[%s307_s30 + $0x18] sm:$0xff]  ;;  %v355_v21 = vld [vmem:[%s307_s30 + $0x20] sm:$0xff]  ;;  %v356_v22 = vld [vmem:[%s307_s30 + $0x28] sm:$0xff] }
  0x11   : > { %v342_v5 = vsub.f32 %v340_v3, %v341_v4  ;;  %v357_v23 = vld [vmem:[%s307_s30 + $0x30] sm:$0xff]  ;;  %v358_v24 = vld [vmem:[%s307_s30 + $0x38] sm:$0xff]  ;;  %v387_v34 = vld [vmem:[%s326_s12] sm:$0xff] }
  0x12   : > { %v388_v35 = vld [vmem:[%s326_s12 + $0x8] sm:$0xff]  ;;  %v389_v37 = vld [vmem:[%s326_s12 + $0x10] sm:$0xff]  ;;  %v390_v38 = vld [vmem:[%s326_s12 + $0x18] sm:$0xff] }
  0x13   : > { %v343_v6 = vmax.f32 %v342_v5, 0.0  ;;  %v391_v39 = vld [vmem:[%s326_s12 + $0x20] sm:$0xff]  ;;  %v392_v44 = vld [vmem:[%s326_s12 + $0x28] sm:$0xff]  ;;  %v393_v45 = vld [vmem:[%s326_s12 + $0x30] sm:$0xff] }
  0x14   : > { %v394_v46 = vld [vmem:[%s326_s12 + $0x38] sm:$0xff] }
  0x15   : > { %v345_v7 = vadd.f32 1e-05, %v343_v6 }
  0x17   : > { %591 = vrsqrt.f32 %v345_v7 }
  0x24   : > { %v592_v12 = vpop.eup %591 }
  0x25   : > { %v347_v13 = vmul.f32 %v592_v12, %v344_v10 }
  0x27   : > { %v349_v19 = vmul.f32 %v347_v13, %v338_v2  ;;  %v363_v20 = vrot.slane %v347_v13, %v362_v11 }
  0x29   : > { %v350_v25 = vsub.f32 %v348_v14, %v349_v19  ;;  %v365_v26 = vmul.f32 %v363_v20, %v351_v15  ;;  %v366_v27 = vmul.f32 %v363_v20, %v352_v16  ;;  %v367_v28 = vmul.f32 %v363_v20, %v353_v17 }
  0x2a   : > { %v368_v29 = vmul.f32 %v363_v20, %v354_v18  ;;  %v369_v30 = vmul.f32 %v363_v20, %v355_v21  ;;  %v370_v31 = vmul.f32 %v363_v20, %v356_v22  ;;  %v371_v32 = vmul.f32 %v363_v20, %v357_v23 }
  0x2b   : > { %v377_v33 = vrot.slane %v350_v25, %v362_v11  ;;  %v372_v36 = vmul.f32 %v363_v20, %v358_v24 }
  0x2d   : > { %v379_v40 = vadd.f32 %v377_v33, %v365_v26  ;;  %v380_v41 = vadd.f32 %v377_v33, %v366_v27  ;;  %v381_v42 = vadd.f32 %v377_v33, %v367_v28  ;;  %v382_v43 = vadd.f32 %v377_v33, %v368_v29 }
  0x2e   : > { %v383_v47 = vadd.f32 %v377_v33, %v369_v30  ;;  %v384_v48 = vadd.f32 %v377_v33, %v370_v31  ;;  %v385_v49 = vadd.f32 %v377_v33, %v371_v32  ;;  %v386_v50 = vadd.f32 %v377_v33, %v372_v36 }
  0x2f   : > { %v395_v51 = vadd.f32 %v387_v34, %v379_v40  ;;  %v396_v52 = vadd.f32 %v388_v35, %v380_v41  ;;  %v397_v53 = vadd.f32 %v389_v37, %v381_v42  ;;  %v398_v54 = vadd.f32 %v390_v38, %v382_v43 }
  0x30   : > { %v399_v55 = vadd.f32 %v391_v39, %v383_v47  ;;  %v400_v56 = vadd.f32 %v392_v44, %v384_v48  ;;  %v401_v57 = vadd.f32 %v393_v45, %v385_v49  ;;  %v402_v58 = vadd.f32 %v394_v46, %v386_v50 }
  0x31   : > { %v403_v59 = vmax.f32 %v395_v51, 0.0  ;;  %v404_v60 = vmax.f32 %v396_v52, 0.0  ;;  %v405_v61 = vmax.f32 %v397_v53, 0.0  ;;  %v406_v62 = vmax.f32 %v398_v54, 0.0 }
  0x32   : > { %v407_v63 = vmax.f32 %v399_v55, 0.0  ;;  %v408_v0 = vmax.f32 %v400_v56, 0.0  ;;  %v409_v1 = vmax.f32 %v401_v57, 0.0  ;;  %v410_v2 = vmax.f32 %v402_v58, 0.0 }
  0x33   : > { %411 = vst [vmem:[%s335_s15] sm:$0xff] %v403_v59  ;;  %412 = vst [vmem:[%s335_s15 + $0x8] sm:$0xff] %v404_v60 }
  0x34   : > { %413 = vst [vmem:[%s335_s15 + $0x10] sm:$0xff] %v405_v61  ;;  %414 = vst [vmem:[%s335_s15 + $0x18] sm:$0xff] %v406_v62 }
  0x35   : > { %415 = vst [vmem:[%s335_s15 + $0x20] sm:$0xff] %v407_v63  ;;  %416 = vst [vmem:[%s335_s15 + $0x28] sm:$0xff] %v408_v0 }
  0x36   : > { %417 = vst [vmem:[%s335_s15 + $0x30] sm:$0xff] %v409_v1  ;;  %418 = vst [vmem:[%s335_s15 + $0x38] sm:$0xff] %v410_v2 }
  0x37 PF: > { %s15_s20 = sadd.s32 1, %s615_s20   ;;  %s706_s18 = smov %s611_s19 }
  0x38   : > { %p12_p5 = scmp.ge.s32.totalorder %s15_s20, 4   ;;  %s707_s19 = smov %s709_s21 }
  0x3a   :  { %14 = sbr.rel (!%p12_p5) target bundleno = 2 (0x2), region = 82 }

// kernel: residual_block_psp_pallas.23
= control target key start
LH: loop header
LB: loop body
LE: loop exit
PB: predicated region body
PF: predicated region fallthrough
CT: control target
= control target key end

     0   :  { %s549_s15 = smov 0   ;;  %s551_s16 = smov 0   ;;  %s601_s0 = inlined_call_operand.vmem [shape: f32[128,128], index: 0, kind: input, shape index: {}]   ;;  %s602_s1 = inlined_call_operand.vmem [shape: f32[2,128], index: 1, kind: input, shape index: {}]   ;;  %s603_s2 = inlined_call_operand.vmem [shape: f32[1,128], index: 2, kind: input, shape index: {}]   ;;  %s604_s3 = inlined_call_operand.vmem [shape: f32[1,128], index: 3, kind: input, shape index: {}]   ;;  %s605_s4 = inlined_call_operand.vmem [shape: f32[128,128], index: 4, kind: output, shape index: {}]  }
   0x1   :  { %s553_s17 = smov 0  }
   0x2 LB: > { %s23_s18 = sadd.s32 1, %s518_s16  ;;  %p467_p0 = scmp.ge.s32.totalorder %s522_s17, 1  ;;  %s522_s17 = sphi %s553_s17, %s14_s17   ;;  %s518_s16 = sphi %s551_s16, %s607_s16   ;;  %s514_s15 = sphi %s549_s15, %s606_s15  }
   0x3   : > { %p24_p1 = scmp.ge.s32.totalorder %s23_s18, 2  ;;  %p207_p2 = scmp.lt.s32.totalorder %s522_s17, 3 }
   0x5   : > { %s609_s18 = smov (%p24_p1, %s23_s18), 0  ;;  %p208_p3 = pnand %p467_p0, %p207_p2 }
   0x6   : > { %s468_s23 = sshll.u32 (!%p208_p3), %s514_s15, 3 }
   0x7   : > { %211 = sbr.rel (%p208_p3) target bundleno = 53 (0x35), region = 36  ;;  %p250_p4 = scmp.lt.s32.totalorder (!%p208_p3), %s468_s23, 15 }
   0xc   : > { %v277_v0 = vld [vmem:[%s602_s1] sm:$0x1]  ;;  %v279_v1 = vld [vmem:[%s602_s1 + $0x1] sm:$0x1]  ;;  %s611_s23 = smov (!%p250_p4, %s468_s23), 15  ;;  %v300_v8 = vlaneseq }
   0xd   : > { %v278_v2 = vmul.f32 0.0078125, %v277_v0  ;;  %v280_v3 = vmul.f32 0.0078125, %v279_v1  ;;  %s469_s24 = sshll.u32 %s611_s23, 3  ;;  %v284_v10 = vld [vmem:[%s603_s2] sm:$0x1] }
   0xe   : > { %v301_v9 = vshrl.u32 %v300_v8, 7  ;;  %s256_s27 = scalar_lea.vmem %s601_s0, %s469_s24  ;;  %v288_v14 = vld [vmem:[%s604_s3] sm:$0x1]  ;;  %s275_s8 = scalar_lea.vmem %s605_s4, %s469_s24 }
   0xf   : > { %v281_v4 = vmul.f32 %v278_v2, %v278_v2  ;;  %v291_v15 = vld [vmem:[%s256_s27] sm:$0xff]  ;;  %v292_v16 = vld [vmem:[%s256_s27 + $0x8] sm:$0xff]  ;;  %v293_v17 = vld [vmem:[%s256_s27 + $0x10] sm:$0xff] }
  0x10   : > { %v302_v11 = vsub.s32 0, %v301_v9  ;;  %v294_v18 = vld [vmem:[%s256_s27 + $0x18] sm:$0xff]  ;;  %v295_v21 = vld [vmem:[%s256_s27 + $0x20] sm:$0xff]  ;;  %v296_v22 = vld [vmem:[%s256_s27 + $0x28] sm:$0xff] }
  0x11   : > { %v282_v5 = vsub.f32 %v280_v3, %v281_v4  ;;  %v297_v23 = vld [vmem:[%s256_s27 + $0x30] sm:$0xff]  ;;  %v298_v24 = vld [vmem:[%s256_s27 + $0x38] sm:$0xff] }
  0x13   : > { %v283_v6 = vmax.f32 %v282_v5, 0.0 }
  0x15   : > { %v285_v7 = vadd.f32 1e-05, %v283_v6 }
  0x17   : > { %498 = vrsqrt.f32 %v285_v7 }
  0x24   : > { %v499_v12 = vpop.eup %498 }
  0x25   : > { %v287_v13 = vmul.f32 %v499_v12, %v284_v10 }
  0x27   : > { %v289_v19 = vmul.f32 %v287_v13, %v278_v2  ;;  %v303_v20 = vrot.slane %v287_v13, %v302_v11 }
  0x29   : > { %v290_v25 = vsub.f32 %v288_v14, %v289_v19  ;;  %v305_v26 = vmul.f32 %v303_v20, %v291_v15  ;;  %v306_v27 = vmul.f32 %v303_v20, %v292_v16  ;;  %v307_v28 = vmul.f32 %v303_v20, %v293_v17 }
  0x2a   : > { %v308_v29 = vmul.f32 %v303_v20, %v294_v18  ;;  %v309_v30 = vmul.f32 %v303_v20, %v295_v21  ;;  %v310_v31 = vmul.f32 %v303_v20, %v296_v22  ;;  %v311_v32 = vmul.f32 %v303_v20, %v297_v23 }
  0x2b   : > { %v317_v33 = vrot.slane %v290_v25, %v302_v11  ;;  %v312_v34 = vmul.f32 %v303_v20, %v298_v24 }
  0x2d   : > { %v319_v35 = vadd.f32 %v317_v33, %v305_v26  ;;  %v320_v36 = vadd.f32 %v317_v33, %v306_v27  ;;  %v321_v37 = vadd.f32 %v317_v33, %v307_v28  ;;  %v322_v38 = vadd.f32 %v317_v33, %v308_v29 }
  0x2e   : > { %v323_v39 = vadd.f32 %v317_v33, %v309_v30  ;;  %v324_v40 = vadd.f32 %v317_v33, %v310_v31  ;;  %v325_v41 = vadd.f32 %v317_v33, %v311_v32  ;;  %v326_v42 = vadd.f32 %v317_v33, %v312_v34 }
  0x2f   : > { %v327_v43 = vmax.f32 %v319_v35, 0.0  ;;  %v328_v44 = vmax.f32 %v320_v36, 0.0  ;;  %v329_v45 = vmax.f32 %v321_v37, 0.0  ;;  %v330_v46 = vmax.f32 %v322_v38, 0.0 }
  0x30   : > { %v331_v47 = vmax.f32 %v323_v39, 0.0  ;;  %v332_v48 = vmax.f32 %v324_v40, 0.0  ;;  %v333_v49 = vmax.f32 %v325_v41, 0.0  ;;  %v334_v50 = vmax.f32 %v326_v42, 0.0 }
  0x31   : > { %335 = vst [vmem:[%s275_s8] sm:$0xff] %v327_v43  ;;  %336 = vst [vmem:[%s275_s8 + $0x8] sm:$0xff] %v328_v44 }
  0x32   : > { %337 = vst [vmem:[%s275_s8 + $0x10] sm:$0xff] %v329_v45  ;;  %338 = vst [vmem:[%s275_s8 + $0x18] sm:$0xff] %v330_v46 }
  0x33   : > { %339 = vst [vmem:[%s275_s8 + $0x20] sm:$0xff] %v331_v47  ;;  %340 = vst [vmem:[%s275_s8 + $0x28] sm:$0xff] %v332_v48 }
  0x34   : > { %341 = vst [vmem:[%s275_s8 + $0x30] sm:$0xff] %v333_v49  ;;  %342 = vst [vmem:[%s275_s8 + $0x38] sm:$0xff] %v334_v50 }
  0x35 PF: > { %s14_s17 = sadd.s32 1, %s522_s17   ;;  %s606_s15 = smov %s518_s16 }
  0x36   : > { %p11_p5 = scmp.ge.s32.totalorder %s14_s17, 4   ;;  %s607_s16 = smov %s609_s18 }
  0x38   :  { %13 = sbr.rel (!%p11_p5) target bundleno = 2 (0x2), region = 75 }

// kernel: residual_block_psp_pallas.27
= control target key start
LH: loop header
LB: loop body
LE: loop exit
PB: predicated region body
PF: predicated region fallthrough
CT: control target
= control target key end

     0   :  { %10 = vsyncpa [#allocation3], 0  ;;  %s887_s0 = inlined_call_operand.vmem [shape: f32[128,128], index: 0, kind: input, shape index: {}]   ;;  %s888_s1 = inlined_call_operand.vmem [shape: f32[2,128], index: 1, kind: input, shape index: {}]   ;;  %s889_s2 = inlined_call_operand.vmem [shape: f32[1,128], index: 2, kind: input, shape index: {}]   ;;  %s890_s3 = inlined_call_operand.vmem [shape: f32[1,128], index: 3, kind: input, shape index: {}]   ;;  %s891_s4 = inlined_call_operand.vmem [shape: f32[128,128], index: 4, kind: input, shape index: {}]   ;;  %s892_s5 = inlined_call_operand.hbm [shape: f32[128,128], index: 5, kind: output, shape index: {}]  }
   0x1   :  { %12 = vsyncpa [#allocation3 + $0x1], 0  ;;  %s744_s18 = smov 0   ;;  %s746_s19 = smov 0  }
   0x2   :  { %s748_s20 = smov 0   ;;  %s750_s21 = smov 0  }
   0x3   :  { %s752_s22 = smov 0   ;;  %s754_s23 = smov 0  }
   0x4 LB: > { %s555_s24 = sadd.s32 4294967295, %s709_s23   ;;  %s556_s25 = sadd.s32 4294967294, %s709_s23   ;;  %s709_s23 = sphi %s754_s23, %s18_s23   ;;  %s705_s22 = sphi %s752_s22, %s899_s22   ;;  %s701_s21 = sphi %s750_s21, %s898_s21   ;;  %s697_s20 = sphi %s748_s20, %s897_s20   ;;  %s693_s19 = sphi %s746_s19, %s896_s19   ;;  %s689_s18 = sphi %s744_s18, %s895_s18  }
   0x5   : > { %s27_s26 = sadd.s32 1, %s705_s22  ;;  %s173_s27 = sadd.s32 1, %s697_s20 }
   0x6   : > { %p28_p0 = scmp.ge.s32.totalorder %s27_s26, 2  ;;  %p183_p1 = scmp.ne.s32.totalorder %s697_s20, %s693_s19 }
   0x7   : > { %p184_p2 = scmp.eq.s32.totalorder %s555_s24, 1  ;;  %p189_p3 = scmp.ne.s32.totalorder %s693_s19, %s689_s18 }
   0x8   : > { %s901_s26 = smov (%p28_p0, %s27_s26), 0  ;;  %p190_p5 = scmp.eq.s32.totalorder %s556_s25, 1 }
   0x9   : > { %p784_p4 = por %p184_p2, %p183_p1  ;;  %s168_s29 = ssub.s32 %s705_s22, %s901_s26 }
   0xa   : > { %p562_p6 = scmp.ge.s32.totalorder %s709_s23, 1  ;;  %p171_p7 = scmp.eq.s32.totalorder %s168_s29, 0 }
   0xb   : > { %p791_p8 = por %p190_p5, %p189_p3  ;;  %p251_p9 = scmp.lt.s32.totalorder %s709_s23, 3 }
   0xc   : > { %s797_s6 = scalar_select %p171_p7, %s697_s20, %s173_s27  }
   0xd   : > { %p252_p10 = pnand %p562_p6, %p251_p9 }
   0xe   : > { %s564_s11 = sshll.u32 (!%p252_p10), %s701_s21, 3  ;;  %s297_s24 = sand.u32 (!%p252_p10), 1, %s693_s19  }
   0xf   : > { %255 = sbr.rel (%p252_p10) target bundleno = 76 (0x4c), region = 40  ;;  %p301_p11 = scmp.lt.s32.totalorder (!%p252_p10), %s564_s11, 15 }
  0x10   : > { %s563_s29 = sshll.u32 (!%p252_p10), %s297_s24, 6  ;;  %s711_s17 = smov (!%p252_p10), [#allocation2]  }
  0x11   : > { %s821_s10 = scalar_lea.vmem (!%p252_p10), [#allocation2], %s563_s29  ;;  %s637_s25 = sshll.u32 (!%p252_p10), %s711_s17, 4  ;;  %s638_s25 = int_to_ptr.vmem [resolvable:$false] %s637_s25 }
  0x12   : > { %s639_s27 = scalar_lea.vmem (!%p252_p10), %s638_s25, 2048 }
  0x14   : > { %v329_v0 = vld [vmem:[%s888_s1] sm:$0x1]  ;;  %v331_v1 = vld [vmem:[%s888_s1 + $0x1] sm:$0x1]  ;;  %s903_s11 = smov (!%p301_p11, %s564_s11), 15  ;;  %v352_v8 = vlaneseq }
  0x15   : > { %v330_v2 = vmul.f32 0.0078125, %v329_v0  ;;  %v332_v3 = vmul.f32 0.0078125, %v331_v1  ;;  %s565_s12 = sshll.u32 %s903_s11, 3  ;;  %v336_v10 = vld [vmem:[%s889_s2] sm:$0x1]  ;;  %s426_s11 = sshll.u32 %s821_s10, 4  ;;  %s825_s11 = int_to_ptr.vmem [resolvable:$true] %s426_s11 }
  0x16   : > { %v353_v9 = vshrl.u32 %v352_v8, 7  ;;  %s307_s15 = scalar_lea.vmem %s887_s0, %s565_s12  ;;  %v340_v14 = vld [vmem:[%s890_s3] sm:$0x1]  ;;  %s326_s9 = scalar_lea.vmem %s891_s4, %s565_s12 }
  0x17   : > { %v333_v4 = vmul.f32 %v330_v2, %v330_v2  ;;  %v343_v15 = vld [vmem:[%s307_s15] sm:$0xff]  ;;  %v344_v16 = vld [vmem:[%s307_s15 + $0x8] sm:$0xff]  ;;  %v345_v17 = vld [vmem:[%s307_s15 + $0x10] sm:$0xff]  ;;  %s573_s12 = sshll.u32 %s701_s21, 10  ;;  %s633_s16 = scalar_lea.vmem %s825_s11, 1024 }
  0x18   : > { %v354_v11 = vsub.s32 0, %v353_v9  ;;  %v346_v18 = vld [vmem:[%s307_s15 + $0x18] sm:$0xff]  ;;  %v347_v21 = vld [vmem:[%s307_s15 + $0x20] sm:$0xff]  ;;  %v348_v22 = vld [vmem:[%s307_s15 + $0x28] sm:$0xff]  ;;  %s830_s14 = scalar_lea.hbm %s892_s5, %s573_s12  ;;  %p634_p12 = scmp.ne.s32.totalorder %s825_s11, %s633_s16 }
  0x19   : > { %v334_v5 = vsub.f32 %v332_v3, %v333_v4  ;;  %v349_v23 = vld [vmem:[%s307_s15 + $0x30] sm:$0xff]  ;;  %v350_v24 = vld [vmem:[%s307_s15 + $0x38] sm:$0xff]  ;;  %v379_v34 = vld [vmem:[%s326_s9] sm:$0xff]  ;;  %s842_s15 = scalar_lea.sflag [#allocation3], %s297_s24  ;;  %p640_p1 = scmp.lt.s32.totalorder %s825_s11, %s638_s25 }
  0x1a   : > { %v380_v35 = vld [vmem:[%s326_s9 + $0x8] sm:$0xff]  ;;  %v381_v37 = vld [vmem:[%s326_s9 + $0x10] sm:$0xff]  ;;  %v382_v38 = vld [vmem:[%s326_s9 + $0x18] sm:$0xff]  ;;  %p635_p13 = pnand %p634_p12, %p784_p4  ;;  %p641_p2 = scmp.lt.s32.totalorder %s639_s27, %s633_s16 }
  0x1b   : > { %v335_v6 = vmax.f32 %v334_v5, 0.0  ;;  %v383_v39 = vld [vmem:[%s326_s9 + $0x20] sm:$0xff]  ;;  %v384_v44 = vld [vmem:[%s326_s9 + $0x28] sm:$0xff]  ;;  %v385_v45 = vld [vmem:[%s326_s9 + $0x30] sm:$0xff] }
  0x1c   : > { %v386_v46 = vld [vmem:[%s326_s9 + $0x38] sm:$0xff]  ;;  %p636_p0 = pneg %p635_p13  ;;  %p642_p3 = por %p641_p2, %p640_p1 }
  0x1d   : > { %v337_v7 = vadd.f32 1e-05, %v335_v6 }
  0x1e   : > { %p643_p5 = pnand %p642_p3, %p636_p0 }
  0x1f   : > { %631 = vrsqrt.f32 %v337_v7 }
  0x2c   : > { %v632_v12 = vpop.eup %631 }
  0x2d   : > { %v339_v13 = vmul.f32 %v632_v12, %v336_v10 }
  0x2f   : > { %v341_v19 = vmul.f32 %v339_v13, %v330_v2  ;;  %v355_v20 = vrot.slane %v339_v13, %v354_v11 }
  0x31   : > { %v342_v25 = vsub.f32 %v340_v14, %v341_v19  ;;  %v357_v26 = vmul.f32 %v355_v20, %v343_v15  ;;  %v358_v27 = vmul.f32 %v355_v20, %v344_v16  ;;  %v359_v28 = vmul.f32 %v355_v20, %v345_v17 }
  0x32   : > { %v360_v29 = vmul.f32 %v355_v20, %v346_v18  ;;  %v361_v30 = vmul.f32 %v355_v20, %v347_v21  ;;  %v362_v31 = vmul.f32 %v355_v20, %v348_v22  ;;  %v363_v32 = vmul.f32 %v355_v20, %v349_v23 }
  0x33   : > { %v369_v33 = vrot.slane %v342_v25, %v354_v11  ;;  %v364_v36 = vmul.f32 %v355_v20, %v350_v24 }
  0x35   : > { %v371_v40 = vadd.f32 %v369_v33, %v357_v26  ;;  %v372_v41 = vadd.f32 %v369_v33, %v358_v27  ;;  %v373_v42 = vadd.f32 %v369_v33, %v359_v28  ;;  %v374_v43 = vadd.f32 %v369_v33, %v360_v29 }
  0x36   : > { %v375_v47 = vadd.f32 %v369_v33, %v361_v30  ;;  %v376_v48 = vadd.f32 %v369_v33, %v362_v31  ;;  %v377_v49 = vadd.f32 %v369_v33, %v363_v32  ;;  %v378_v50 = vadd.f32 %v369_v33, %v364_v36 }
  0x37   : > { %v387_v51 = vadd.f32 %v379_v34, %v371_v40  ;;  %v388_v52 = vadd.f32 %v380_v35, %v372_v41  ;;  %v389_v53 = vadd.f32 %v381_v37, %v373_v42  ;;  %v390_v54 = vadd.f32 %v382_v38, %v374_v43 }
  0x38   : > { %v391_v55 = vadd.f32 %v383_v39, %v375_v47  ;;  %v392_v56 = vadd.f32 %v384_v44, %v376_v48  ;;  %v393_v57 = vadd.f32 %v385_v45, %v377_v49  ;;  %v394_v58 = vadd.f32 %v386_v46, %v378_v50 }
  0x39   : > { %v395_v59 = vmax.f32 %v387_v51, 0.0  ;;  %v396_v60 = vmax.f32 %v388_v52, 0.0  ;;  %v397_v61 = vmax.f32 %v389_v53, 0.0  ;;  %v398_v62 = vmax.f32 %v390_v54, 0.0 }
  0x3a   : > { %v399_v63 = vmax.f32 %v391_v55, 0.0  ;;  %v400_v0 = vmax.f32 %v392_v56, 0.0  ;;  %v401_v1 = vmax.f32 %v393_v57, 0.0  ;;  %v402_v2 = vmax.f32 %v394_v58, 0.0 }
  0x3b   : > { %403 = vst [vmem:[%s821_s10] sm:$0xff] %v395_v59  ;;  %404 = vst [vmem:[%s821_s10 + $0x8] sm:$0xff] %v396_v60 }
  0x3c   : > { %405 = vst [vmem:[%s821_s10 + $0x10] sm:$0xff] %v397_v61  ;;  %406 = vst [vmem:[%s821_s10 + $0x18] sm:$0xff] %v398_v62 }
  0x3d   : > { %407 = vst [vmem:[%s821_s10 + $0x20] sm:$0xff] %v399_v63  ;;  %408 = vst [vmem:[%s821_s10 + $0x28] sm:$0xff] %v400_v0 }
  0x3e   : > { %409 = vst [vmem:[%s821_s10 + $0x30] sm:$0xff] %v401_v1  ;;  %410 = vst [vmem:[%s821_s10 + $0x38] sm:$0xff] %v402_v2 }
  0x3f   : > { %646 = shalt.err (!%p643_p5)
}
  0x40   : > { %s647_s24 = scalar_lea.hbm %s830_s14, 1024  ;;  %s651_s8 = scalar_lea.hbm %s892_s5, 2048 }
  0x41   : > { %p648_p6 = scmp.ne.s32.totalorder %s830_s14, %s647_s24  ;;  %p652_p10 = scmp.lt.s32.totalorder %s830_s14, %s892_s5 }
  0x42   : > { %p653_p11 = scmp.lt.s32.totalorder %s651_s8, %s647_s24 }
  0x43   : > { %p649_p7 = pnand %p648_p6, %p784_p4 }
  0x44   : > { %p654_p12 = por %p653_p11, %p652_p10 }
  0x45   : > { %p650_p9 = pneg %p649_p7 }
  0x47   : > { %p655_p13 = pnand %p654_p12, %p650_p9 }
  0x49   : > { %658 = shalt.err (!%p655_p13)
}
  0x4a   : > { %s712_s12 = smov 128   ;;  %s713_s21 = smov 8  }
  0x4b   : > { %574 = dma.vmem_to_hbm [thread:$0]  (%p784_p4), %s825_s11, 1024, %s830_s14, %s842_s15, %s712_s12, %s712_s12, %s713_s21  }
  0x4c PF: > { %p580_p0 = scmp.ge.s32.totalorder %s709_s23, 2  ;;  %s441_s13 = sand.u32 1, %s689_s18  }
  0x4d   : > { %s442_s16 = scalar_lea.sflag [#allocation3], %s441_s13 }
  0x4e   : > { %p577_p1 = pnand %p580_p0, %p791_p8 }
  0x50   : > { %p578_p2 = pneg %p577_p1 }
  0x52   : > { %684 = dma.done.wait (%p578_p2), %s442_s16, 1024  }
  0x53   : > { %686 = vsyncadd (%p578_p2), %s442_s16, 4294966272  ;;  %s18_s23 = sadd.s32 1, %s709_s23   ;;  %s895_s18 = smov %s693_s19 }
  0x54   : > { %p15_p3 = scmp.ge.s32.totalorder %s18_s23, 4   ;;  %s896_s19 = smov %s697_s20 }
  0x55   : > { %s897_s20 = smov %s797_s6  ;;  %s898_s21 = smov %s705_s22 }
  0x56   : > { %s899_s22 = smov %s901_s26  ;;  %17 = sbr.rel (!%p15_p3) target bundleno = 4 (0x4), region = 87 }
  0x5b   :  { %447 = vsyncpa [#allocation3], 1 }
  0x5c   :  { %449 = vsyncpa [#allocation3 + $0x1], 1 }

// kernel: residual_block_psp_pallas.24
= control target key start
LH: loop header
LB: loop body
LE: loop exit
PB: predicated region body
PF: predicated region fallthrough
CT: control target
= control target key end

     0   :  { %s1362_s12 = smov 0   ;;  %s1364_s13 = smov 0   ;;  %s1912_s0 = inlined_call_operand.vmem [shape: f32[4,6,10,128], index: 0, kind: input, shape index: {}]   ;;  %s1913_s1 = inlined_call_operand.vmem [shape: f32[1152,128], index: 1, kind: input, shape index: {}]   ;;  %s1914_s2 = inlined_call_operand.vmem [shape: f32[128,128], index: 2, kind: output, shape index: {0}]   ;;  %s1915_s3 = inlined_call_operand.vmem [shape: f32[2,128], index: 3, kind: output, shape index: {1}]  }
   0x1   :  { %s1366_s14 = smov 0  }
   0x2 LB: > { %s23_s15 = sadd.s32 1, %s1335_s13  ;;  %p992_p0 = scmp.ge.s32.totalorder %s1339_s14, 1  ;;  %s1339_s14 = sphi %s1366_s14, %s14_s14   ;;  %s1335_s13 = sphi %s1364_s13, %s1917_s13   ;;  %s1331_s12 = sphi %s1362_s12, %s1916_s12  }
   0x3   : > { %p24_p1 = scmp.ge.s32.totalorder %s23_s15, 4  ;;  %p163_p2 = scmp.lt.s32.totalorder %s1339_s14, 5 }
   0x5   : > { %s1919_s15 = smov (%p24_p1, %s23_s15), 0  ;;  %p164_p3 = pnand %p992_p0, %p163_p2 }
   0x6   : > { %p198_p4 = scmp.lt.s32.totalorder (!%p164_p3), %s1331_s12, 3  ;;  %p1020_p6 = scmp.ne.s32.totalorder (!%p164_p3), %s1331_s12, 0 }
   0x7   : > { %167 = sbr.rel (%p164_p3) target bundleno = 365 (0x16d), region = 28 }
   0xc   : > { %v289_v0 = vld [vmem:[%s1913_s1 + $0xf8] sm:$0xff]  ;;  %v288_v4 = vld [vmem:[%s1913_s1 + $0xf0] sm:$0xff]  ;;  %v287_v8 = vld [vmem:[%s1913_s1 + $0xe8] sm:$0xff]  ;;  %s1512_s4 = scalar_select %p198_p4, %s1331_s12, 3  ;;  %vm853_vm0 = vcmask 1040384  }
   0xd   : > { %v321_v1 = vld [vmem:[%s1913_s1 + $0x1f8] sm:$0xff]  ;;  %1025 = vmatprep.subr.mxu0 %v289_v0  ;;  %v320_v5 = vld [vmem:[%s1913_s1 + $0x1f0] sm:$0xff]  ;;  %v319_v9 = vld [vmem:[%s1913_s1 + $0x1e8] sm:$0xff] }
   0xe   : > { %v273_v2 = vld [vmem:[%s1913_s1 + $0x78] sm:$0xff]  ;;  %1069 = vmatprep.subr.mxu1 %v321_v1  ;;  %v272_v6 = vld [vmem:[%s1913_s1 + $0x70] sm:$0xff]  ;;  %v271_v10 = vld [vmem:[%s1913_s1 + $0x68] sm:$0xff]  ;;  %s1291_s25 = smul.u32 96, %s1512_s4 }
   0xf   : > { %v305_v3 = vld [vmem:[%s1913_s1 + $0x178] sm:$0xff]  ;;  %1026 = vmatpush3.msra.mxu0 %v273_v2  ;;  %v304_v7 = vld [vmem:[%s1913_s1 + $0x170] sm:$0xff]  ;;  %v303_v11 = vld [vmem:[%s1913_s1 + $0x168] sm:$0xff] }
  0x10   : > { %1070 = vmatpush3.msra.mxu1 %v305_v3  ;;  %1027 = vmatprep.subr.mxu0 %v288_v4  ;;  %v286_v12 = vld [vmem:[%s1913_s1 + $0xe0] sm:$0xff]  ;;  %v285_v16 = vld [vmem:[%s1913_s1 + $0xd8] sm:$0xff]  ;;  %v284_v20 = vld [vmem:[%s1913_s1 + $0xd0] sm:$0xff]  ;;  %s1566_s21 = scalar_lea.vmem %s1912_s0, %s1291_s25 }
  0x11   : > { %1071 = vmatprep.subr.mxu1 %v320_v5  ;;  %1028 = vmatpush3.msra.mxu0 %v272_v6  ;;  %v318_v13 = vld [vmem:[%s1913_s1 + $0x1e0] sm:$0xff]  ;;  %v317_v17 = vld [vmem:[%s1913_s1 + $0x1d8] sm:$0xff]  ;;  %v316_v21 = vld [vmem:[%s1913_s1 + $0x1d0] sm:$0xff] }
  0x12   : > { %1072 = vmatpush3.msra.mxu1 %v304_v7  ;;  %1029 = vmatprep.subr.mxu0 %v287_v8  ;;  %v270_v14 = vld [vmem:[%s1913_s1 + $0x60] sm:$0xff]  ;;  %v269_v18 = vld [vmem:[%s1913_s1 + $0x58] sm:$0xff]  ;;  %v268_v22 = vld [vmem:[%s1913_s1 + $0x50] sm:$0xff] }
  0x13   : > { %1073 = vmatprep.subr.mxu1 %v319_v9  ;;  %v302_v15 = vld [vmem:[%s1913_s1 + $0x160] sm:$0xff]  ;;  %1030 = vmatpush3.msra.mxu0 %v271_v10  ;;  %v301_v19 = vld [vmem:[%s1913_s1 + $0x158] sm:$0xff]  ;;  %v300_v23 = vld [vmem:[%s1913_s1 + $0x150] sm:$0xff] }
  0x14   : > { %1074 = vmatpush3.msra.mxu1 %v303_v11  ;;  %1031 = vmatprep.subr.mxu0 %v286_v12  ;;  %v283_v24 = vld [vmem:[%s1913_s1 + $0xc8] sm:$0xff]  ;;  %v282_v28 = vld [vmem:[%s1913_s1 + $0xc0] sm:$0xff]  ;;  %v281_v32 = vld [vmem:[%s1913_s1 + $0xb8] sm:$0xff] }
  0x15   : > { %1075 = vmatprep.subr.mxu1 %v318_v13  ;;  %1032 = vmatpush3.msra.mxu0 %v270_v14  ;;  %v315_v25 = vld [vmem:[%s1913_s1 + $0x1c8] sm:$0xff]  ;;  %v314_v29 = vld [vmem:[%s1913_s1 + $0x1c0] sm:$0xff]  ;;  %v313_v33 = vld [vmem:[%s1913_s1 + $0x1b8] sm:$0xff] }
  0x16   : > { %1076 = vmatpush3.msra.mxu1 %v302_v15  ;;  %1033 = vmatprep.subr.mxu0 %v285_v16  ;;  %v267_v26 = vld [vmem:[%s1913_s1 + $0x48] sm:$0xff]  ;;  %v266_v30 = vld [vmem:[%s1913_s1 + $0x40] sm:$0xff]  ;;  %v265_v34 = vld [vmem:[%s1913_s1 + $0x38] sm:$0xff] }
  0x17   : > { %1077 = vmatprep.subr.mxu1 %v317_v17  ;;  %1034 = vmatpush3.msra.mxu0 %v269_v18  ;;  %v299_v27 = vld [vmem:[%s1913_s1 + $0x148] sm:$0xff]  ;;  %v298_v31 = vld [vmem:[%s1913_s1 + $0x140] sm:$0xff]  ;;  %v297_v35 = vld [vmem:[%s1913_s1 + $0x138] sm:$0xff] }
  0x18   : > { %1078 = vmatpush3.msra.mxu1 %v301_v19  ;;  %1035 = vmatprep.subr.mxu0 %v284_v20  ;;  %v280_v36 = vld [vmem:[%s1913_s1 + $0xb0] sm:$0xff]  ;;  %v279_v40 = vld [vmem:[%s1913_s1 + $0xa8] sm:$0xff]  ;;  %v278_v44 = vld [vmem:[%s1913_s1 + $0xa0] sm:$0xff] }
  0x19   : > { %1079 = vmatprep.subr.mxu1 %v316_v21  ;;  %1036 = vmatpush3.msra.mxu0 %v268_v22  ;;  %v312_v37 = vld [vmem:[%s1913_s1 + $0x1b0] sm:$0xff]  ;;  %v311_v41 = vld [vmem:[%s1913_s1 + $0x1a8] sm:$0xff]  ;;  %v310_v45 = vld [vmem:[%s1913_s1 + $0x1a0] sm:$0xff] }
  0x1a   : > { %1080 = vmatpush3.msra.mxu1 %v300_v23  ;;  %1037 = vmatprep.subr.mxu0 %v283_v24  ;;  %v264_v38 = vld [vmem:[%s1913_s1 + $0x30] sm:$0xff]  ;;  %v263_v42 = vld [vmem:[%s1913_s1 + $0x28] sm:$0xff]  ;;  %v262_v46 = vld [vmem:[%s1913_s1 + $0x20] sm:$0xff] }
  0x1b   : > { %1081 = vmatprep.subr.mxu1 %v315_v25  ;;  %1038 = vmatpush3.msra.mxu0 %v267_v26  ;;  %v296_v39 = vld [vmem:[%s1913_s1 + $0x130] sm:$0xff]  ;;  %v295_v43 = vld [vmem:[%s1913_s1 + $0x128] sm:$0xff]  ;;  %v294_v47 = vld [vmem:[%s1913_s1 + $0x120] sm:$0xff] }
  0x1c   : > { %1082 = vmatpush3.msra.mxu1 %v299_v27  ;;  %1039 = vmatprep.subr.mxu0 %v282_v28  ;;  %v277_v48 = vld [vmem:[%s1913_s1 + $0x98] sm:$0xff]  ;;  %v276_v52 = vld [vmem:[%s1913_s1 + $0x90] sm:$0xff]  ;;  %v275_v56 = vld [vmem:[%s1913_s1 + $0x88] sm:$0xff] }
  0x1d   : > { %1083 = vmatprep.subr.mxu1 %v314_v29  ;;  %1040 = vmatpush3.msra.mxu0 %v266_v30  ;;  %v309_v49 = vld [vmem:[%s1913_s1 + $0x198] sm:$0xff]  ;;  %v308_v53 = vld [vmem:[%s1913_s1 + $0x190] sm:$0xff]  ;;  %v307_v57 = vld [vmem:[%s1913_s1 + $0x188] sm:$0xff] }
  0x1e   : > { %1084 = vmatpush3.msra.mxu1 %v298_v31  ;;  %1041 = vmatprep.subr.mxu0 %v281_v32  ;;  %v261_v50 = vld [vmem:[%s1913_s1 + $0x18] sm:$0xff]  ;;  %v260_v54 = vld [vmem:[%s1913_s1 + $0x10] sm:$0xff]  ;;  %v259_v58 = vld [vmem:[%s1913_s1 + $0x8] sm:$0xff] }
  0x1f   : > { %1085 = vmatprep.subr.mxu1 %v313_v33  ;;  %1042 = vmatpush3.msra.mxu0 %v265_v34  ;;  %v293_v51 = vld [vmem:[%s1913_s1 + $0x118] sm:$0xff]  ;;  %v292_v55 = vld [vmem:[%s1913_s1 + $0x110] sm:$0xff]  ;;  %v291_v59 = vld [vmem:[%s1913_s1 + $0x108] sm:$0xff] }
  0x20   : > { %1086 = vmatpush3.msra.mxu1 %v297_v35  ;;  %1043 = vmatprep.subr.mxu0 %v280_v36  ;;  %v274_v60 = vld [vmem:[%s1913_s1 + $0x80] sm:$0xff]  ;;  %v1588_v1 = vld [vmem:[%s1566_s21 + $0x10] sm:$0xff]  ;;  %v353_v4 = vld [vmem:[%s1913_s1 + $0x2f8] sm:$0xff] }
  0x21   : > { %1087 = vmatprep.subr.mxu1 %v312_v37  ;;  %1044 = vmatpush3.msra.mxu0 %v264_v38  ;;  %v306_v61 = vld [vmem:[%s1913_s1 + $0x180] sm:$0xff]  ;;  %v385_v5 = vld [vmem:[%s1913_s1 + $0x3f8] sm:$0xff]  ;;  %v352_v8 = vld [vmem:[%s1913_s1 + $0x2f0] sm:$0xff] }
  0x22   : > { %1088 = vmatpush3.msra.mxu1 %v296_v39  ;;  %1045 = vmatprep.subr.mxu0 %v279_v40  ;;  %v258_v62 = vld [vmem:[%s1913_s1] sm:$0xff]  ;;  %v337_v6 = vld [vmem:[%s1913_s1 + $0x278] sm:$0xff]  ;;  %v384_v9 = vld [vmem:[%s1913_s1 + $0x3f0] sm:$0xff] }
  0x23   : > { %1089 = vmatprep.subr.mxu1 %v311_v41  ;;  %1046 = vmatpush3.msra.mxu0 %v263_v42  ;;  %v224_v63 = vld [vmem:[%s1566_s21 + $0x1] sm:$0xff]  ;;  %v369_v7 = vld [vmem:[%s1913_s1 + $0x378] sm:$0xff]  ;;  %v336_v10 = vld [vmem:[%s1913_s1 + $0x270] sm:$0xff] }
  0x24   : > { %1090 = vmatpush3.msra.mxu1 %v295_v43  ;;  %1047 = vmatprep.subr.mxu0 %v278_v44  ;;  %v290_v0 = vld [vmem:[%s1913_s1 + $0x100] sm:$0xff]  ;;  %v368_v11 = vld [vmem:[%s1913_s1 + $0x370] sm:$0xff]  ;;  %v351_v12 = vld [vmem:[%s1913_s1 + $0x2e8] sm:$0xff] }
  0x25   : > { %1091 = vmatprep.subr.mxu1 %v310_v45  ;;  %1048 = vmatpush3.msra.mxu0 %v262_v46  ;;  %v220_v2 = vld [vmem:[%s1566_s21] sm:$0xff]  ;;  %v383_v13 = vld [vmem:[%s1913_s1 + $0x3e8] sm:$0xff]  ;;  %v349_v20 = vld [vmem:[%s1913_s1 + $0x2d8] sm:$0xff] }
  0x26   : > { %1092 = vmatpush3.msra.mxu1 %v294_v47  ;;  %1049 = vmatprep.subr.mxu0 %v277_v48  ;;  %v228_v3 = vld [vmem:[%s1566_s21 + $0x2] sm:$0xff]  ;;  %v381_v21 = vld [vmem:[%s1913_s1 + $0x3d8] sm:$0xff]  ;;  %v348_v24 = vld [vmem:[%s1913_s1 + $0x2d0] sm:$0xff] }
  0x27   : > { %1093 = vmatprep.subr.mxu1 %v309_v49  ;;  %1050 = vmatpush3.msra.mxu0 %v261_v50  ;;  %v335_v14 = vld [vmem:[%s1913_s1 + $0x268] sm:$0xff]  ;;  %v350_v16 = vld [vmem:[%s1913_s1 + $0x2e0] sm:$0xff]  ;;  %v333_v22 = vld [vmem:[%s1913_s1 + $0x258] sm:$0xff] }
  0x28   : > { %1094 = vmatpush3.msra.mxu1 %v293_v51  ;;  %1051 = vmatprep.subr.mxu0 %v276_v52  ;;  %v367_v15 = vld [vmem:[%s1913_s1 + $0x368] sm:$0xff]  ;;  %v382_v17 = vld [vmem:[%s1913_s1 + $0x3e0] sm:$0xff]  ;;  %v365_v23 = vld [vmem:[%s1913_s1 + $0x358] sm:$0xff] }
  0x29   : > { %1095 = vmatprep.subr.mxu1 %v308_v53  ;;  %1052 = vmatpush3.msra.mxu0 %v260_v54  ;;  %v334_v18 = vld [vmem:[%s1913_s1 + $0x260] sm:$0xff]  ;;  %v380_v25 = vld [vmem:[%s1913_s1 + $0x3d0] sm:$0xff]  ;;  %v347_v28 = vld [vmem:[%s1913_s1 + $0x2c8] sm:$0xff] }
  0x2a   : > { %1096 = vmatpush3.msra.mxu1 %v292_v55  ;;  %1053 = vmatprep.subr.mxu0 %v275_v56  ;;  %v366_v19 = vld [vmem:[%s1913_s1 + $0x360] sm:$0xff]  ;;  %v332_v26 = vld [vmem:[%s1913_s1 + $0x250] sm:$0xff]  ;;  %v379_v29 = vld [vmem:[%s1913_s1 + $0x3c8] sm:$0xff] }
  0x2b   : > { %1097 = vmatprep.subr.mxu1 %v307_v57  ;;  %1054 = vmatpush3.msra.mxu0 %v259_v58  ;;  %v364_v27 = vld [vmem:[%s1913_s1 + $0x350] sm:$0xff]  ;;  %v331_v30 = vld [vmem:[%s1913_s1 + $0x248] sm:$0xff]  ;;  %v346_v32 = vld [vmem:[%s1913_s1 + $0x2c0] sm:$0xff] }
  0x2c   : > { %1098 = vmatpush3.msra.mxu1 %v291_v59  ;;  %1055 = vmatprep.subr.mxu0 %v274_v60  ;;  %v363_v31 = vld [vmem:[%s1913_s1 + $0x348] sm:$0xff]  ;;  %v378_v33 = vld [vmem:[%s1913_s1 + $0x3c0] sm:$0xff]  ;;  %v345_v36 = vld [vmem:[%s1913_s1 + $0x2b8] sm:$0xff] }
  0x2d   : > { %1099 = vmatprep.subr.mxu1 %v306_v61  ;;  %1056 = vmatpush3.msra.mxu0 %v258_v62  ;;  %v330_v34 = vld [vmem:[%s1913_s1 + $0x240] sm:$0xff]  ;;  %v377_v37 = vld [vmem:[%s1913_s1 + $0x3b8] sm:$0xff]  ;;  %v344_v42 = vld [vmem:[%s1913_s1 + $0x2b0] sm:$0xff] }
  0x2e   : > { %466 = vmatprep.mubr.f32.mxu0 %v224_v63  ;;  %1100 = vmatpush3.msra.mxu1 %v290_v0  ;;  %v362_v35 = vld [vmem:[%s1913_s1 + $0x340] sm:$0xff]  ;;  %v329_v38 = vld [vmem:[%s1913_s1 + $0x238] sm:$0xff]  ;;  %v376_v43 = vld [vmem:[%s1913_s1 + $0x3b0] sm:$0xff] }
  0x2f   : > { %551 = vmatprep.mubr.f32.mxu1 %v1588_v1  ;;  %467 = vmatmul.mubr.f32.vlgmr.msra.gmra.mxu0 %v220_v2  ;;  %v361_v39 = vld [vmem:[%s1913_s1 + $0x338] sm:$0xff]  ;;  %v1705_v41 = vld [vmem:[%s1566_s21 + $0x20] sm:$0xff]  ;;  %v328_v45 = vld [vmem:[%s1913_s1 + $0x230] sm:$0xff] }
  0x30   : > { %552 = vmatmul.mubr.f32.vlgmr.msra.gmra.mxu1 %v228_v3  ;;  %1113 = vmatprep.subr.mxu0 %v353_v4  ;;  %v1702_v40 = vld [vmem:[%s1566_s21 + $0x11] sm:$0xff]  ;;  %v343_v47 = vld [vmem:[%s1913_s1 + $0x2a8] sm:$0xff]  ;;  %v342_v53 = vld [vmem:[%s1913_s1 + $0x2a0] sm:$0xff] }
  0x31   : > { %1157 = vmatprep.subr.mxu1 %v385_v5  ;;  %1114 = vmatpush3.msra.mxu0 %v337_v6  ;;  %v1714_v44 = vld [vmem:[%s1566_s21 + $0x12] sm:$0xff]  ;;  %v375_v48 = vld [vmem:[%s1913_s1 + $0x3a8] sm:$0xff]  ;;  %v374_v54 = vld [vmem:[%s1913_s1 + $0x3a0] sm:$0xff] }
  0x32   : > { %1158 = vmatpush3.msra.mxu1 %v369_v7  ;;  %1115 = vmatprep.subr.mxu0 %v352_v8  ;;  %v360_v46 = vld [vmem:[%s1913_s1 + $0x330] sm:$0xff]  ;;  %v327_v49 = vld [vmem:[%s1913_s1 + $0x228] sm:$0xff]  ;;  %v326_v56 = vld [vmem:[%s1913_s1 + $0x220] sm:$0xff] }
  0x33   : > { %1159 = vmatprep.subr.mxu1 %v384_v9  ;;  %1116 = vmatpush3.msra.mxu0 %v336_v10  ;;  %v359_v50 = vld [vmem:[%s1913_s1 + $0x328] sm:$0xff]  ;;  %v1742_v52 = vld [vmem:[%s1566_s21 + $0x30] sm:$0xff]  ;;  %v358_v57 = vld [vmem:[%s1913_s1 + $0x320] sm:$0xff] }
  0x34   : > { %1160 = vmatpush3.msra.mxu1 %v368_v11  ;;  %1117 = vmatprep.subr.mxu0 %v351_v12  ;;  %v1739_v51 = vld [vmem:[%s1566_s21 + $0x21] sm:$0xff]  ;;  %v341_v58 = vld [vmem:[%s1913_s1 + $0x298] sm:$0xff]  ;;  %v340_v0 = vld [vmem:[%s1913_s1 + $0x290] sm:$0xff] }
  0x35   : > { %1161 = vmatprep.subr.mxu1 %v383_v13  ;;  %1118 = vmatpush3.msra.mxu0 %v335_v14  ;;  %v1751_v55 = vld [vmem:[%s1566_s21 + $0x22] sm:$0xff]  ;;  %v373_v59 = vld [vmem:[%s1913_s1 + $0x398] sm:$0xff]  ;;  %v324_v3 = vld [vmem:[%s1913_s1 + $0x210] sm:$0xff] }
  0x36   : > { %1162 = vmatpush3.msra.mxu1 %v367_v15  ;;  %1119 = vmatprep.subr.mxu0 %v350_v16  ;;  %v325_v60 = vld [vmem:[%s1913_s1 + $0x218] sm:$0xff]  ;;  %v1779_v63 = vld [vmem:[%s1566_s21 + $0x40] sm:$0xff]  ;;  %v356_v4 = vld [vmem:[%s1913_s1 + $0x310] sm:$0xff] }
  0x37   : > { %1163 = vmatprep.subr.mxu1 %v382_v17  ;;  %1120 = vmatpush3.msra.mxu0 %v334_v18  ;;  %v357_v61 = vld [vmem:[%s1913_s1 + $0x318] sm:$0xff]  ;;  %v339_v5 = vld [vmem:[%s1913_s1 + $0x288] sm:$0xff]  ;;  %v338_v9 = vld [vmem:[%s1913_s1 + $0x280] sm:$0xff] }
  0x38   : > { %1164 = vmatpush3.msra.mxu1 %v366_v19  ;;  %1121 = vmatprep.subr.mxu0 %v349_v20  ;;  %v1776_v62 = vld [vmem:[%s1566_s21 + $0x31] sm:$0xff]  ;;  %v371_v6 = vld [vmem:[%s1913_s1 + $0x388] sm:$0xff]  ;;  %v370_v10 = vld [vmem:[%s1913_s1 + $0x380] sm:$0xff] }
  0x39   : > { %1165 = vmatprep.subr.mxu1 %v381_v21  ;;  %1122 = vmatpush3.msra.mxu0 %v333_v22  ;;  %v1788_v2 = vld [vmem:[%s1566_s21 + $0x32] sm:$0xff]  ;;  %v323_v7 = vld [vmem:[%s1913_s1 + $0x208] sm:$0xff]  ;;  %v322_v11 = vld [vmem:[%s1913_s1 + $0x200] sm:$0xff] }
  0x3a   : > { %1166 = vmatpush3.msra.mxu1 %v365_v23  ;;  %1123 = vmatprep.subr.mxu0 %v348_v24  ;;  %v355_v8 = vld [vmem:[%s1913_s1 + $0x308] sm:$0xff]  ;;  %v354_v12 = vld [vmem:[%s1913_s1 + $0x300] sm:$0xff]  ;;  %v401_v13 = vld [vmem:[%s1913_s1 + $0x478] sm:$0xff] }
  0x3b   : > { %1167 = vmatprep.subr.mxu1 %v380_v25  ;;  %1124 = vmatpush3.msra.mxu0 %v332_v26  ;;  %v400_v14 = vld [vmem:[%s1913_s1 + $0x470] sm:$0xff]  ;;  %v399_v15 = vld [vmem:[%s1913_s1 + $0x468] sm:$0xff]  ;;  %v398_v16 = vld [vmem:[%s1913_s1 + $0x460] sm:$0xff] }
  0x3c   : > { %1168 = vmatpush3.msra.mxu1 %v364_v27  ;;  %1125 = vmatprep.subr.mxu0 %v347_v28  ;;  %v397_v17 = vld [vmem:[%s1913_s1 + $0x458] sm:$0xff]  ;;  %v1014_v18 = vld [vmem:[%s1566_s21 + $0x41] sm:$0xff]  ;;  %v396_v19 = vld [vmem:[%s1913_s1 + $0x450] sm:$0xff] }
  0x3d   : > { %1169 = vmatprep.subr.mxu1 %v379_v29  ;;  %1126 = vmatpush3.msra.mxu0 %v331_v30  ;;  %v1854_v20 = vld [vmem:[%s1566_s21 + $0x42] sm:$0xff]  ;;  %v1015_v22 = vld [vmem:[%s1566_s21 + $0x51] sm:$0xff] }
  0x3e   : > { %1170 = vmatpush3.msra.mxu1 %v363_v31  ;;  %1127 = vmatprep.subr.mxu0 %v346_v32  ;;  %v395_v21 = vld [vmem:[%s1913_s1 + $0x448] sm:$0xff]  ;;  %v394_v23 = vld [vmem:[%s1913_s1 + $0x440] sm:$0xff]  ;;  %v1011_v24 = vld [vmem:[%s1566_s21 + $0x50] sm:$0xff] }
  0x3f   : > { %1171 = vmatprep.subr.mxu1 %v378_v33  ;;  %1128 = vmatpush3.msra.mxu0 %v330_v34  ;;  %v393_v25 = vld [vmem:[%s1913_s1 + $0x438] sm:$0xff]  ;;  %v392_v26 = vld [vmem:[%s1913_s1 + $0x430] sm:$0xff]  ;;  %v391_v27 = vld [vmem:[%s1913_s1 + $0x428] sm:$0xff] }
  0x40   : > { %1172 = vmatpush3.msra.mxu1 %v362_v35  ;;  %1129 = vmatprep.subr.mxu0 %v345_v36  ;;  %v390_v28 = vld [vmem:[%s1913_s1 + $0x420] sm:$0xff]  ;;  %v389_v29 = vld [vmem:[%s1913_s1 + $0x418] sm:$0xff]  ;;  %v388_v30 = vld [vmem:[%s1913_s1 + $0x410] sm:$0xff] }
  0x41   : > { %1173 = vmatprep.subr.mxu1 %v377_v37  ;;  %1130 = vmatpush3.msra.mxu0 %v329_v38  ;;  %v387_v31 = vld [vmem:[%s1913_s1 + $0x408] sm:$0xff]  ;;  %v386_v32 = vld [vmem:[%s1913_s1 + $0x400] sm:$0xff]  ;;  %v1019_v33 = vld [vmem:[%s1566_s21 + $0x52] sm:$0xff]  ;;  %s994_s21 = sshll.u32 %s1331_s12, 2 }
  0x42   : > { %1174 = vmatpush3.msra.mxu1 %v361_v39  ;;  %471 = vmatprep.mubr.f32.mxu0 %v1702_v40  ;;  %p208_p5 = scmp.lt.s32.totalorder %s994_s21, 15 }
  0x43   : > { %556 = vmatprep.mubr.f32.mxu1 %v1705_v41  ;;  %1131 = vmatprep.subr.mxu0 %v344_v42 }
  0x44   : > { %1175 = vmatprep.subr.mxu1 %v376_v43  ;;  %472 = vmatmul.mubr.f32.gmra.mxu0 %v1588_v1  ;;  %v372_v1 = vld [vmem:[%s1913_s1 + $0x390] sm:$0xff]  ;;  %s1921_s21 = smov (!%p208_p5, %s994_s21), 15 }
  0x45   : > { %557 = vmatmul.mubr.f32.gmra.mxu1 %v1714_v44  ;;  %1132 = vmatpush3.msra.mxu0 %v328_v45  ;;  %s995_s17 = sshll.u32 %s1921_s21, 3 }
  0x46   : > { %1176 = vmatpush3.msra.mxu1 %v360_v46  ;;  %1133 = vmatprep.subr.mxu0 %v343_v47  ;;  %s214_s20 = scalar_lea.vmem %s1914_s2, %s995_s17 }
  0x47   : > { %1177 = vmatprep.subr.mxu1 %v375_v48  ;;  %1134 = vmatpush3.msra.mxu0 %v327_v49 }
  0x48   : > { %1178 = vmatpush3.msra.mxu1 %v359_v50  ;;  %476 = vmatprep.mubr.f32.mxu0 %v1739_v51 }
  0x49   : > { %561 = vmatprep.mubr.f32.mxu1 %v1742_v52  ;;  %1135 = vmatprep.subr.mxu0 %v342_v53 }
  0x4a   : > { %1179 = vmatprep.subr.mxu1 %v374_v54  ;;  %477 = vmatmul.mubr.f32.gmra.mxu0 %v1705_v41 }
  0x4b   : > { %562 = vmatmul.mubr.f32.gmra.mxu1 %v1751_v55  ;;  %1136 = vmatpush3.msra.mxu0 %v326_v56 }
  0x4c   : > { %1180 = vmatpush3.msra.mxu1 %v358_v57  ;;  %1137 = vmatprep.subr.mxu0 %v341_v58 }
  0x4d   : > { %1181 = vmatprep.subr.mxu1 %v373_v59  ;;  %1138 = vmatpush3.msra.mxu0 %v325_v60 }
  0x4e   : > { %1182 = vmatpush3.msra.mxu1 %v357_v61  ;;  %481 = vmatprep.mubr.f32.mxu0 %v1776_v62 }
  0x4f   : > { %566 = vmatprep.mubr.f32.mxu1 %v1779_v63  ;;  %1139 = vmatprep.subr.mxu0 %v340_v0 }
  0x50   : > { %1183 = vmatprep.subr.mxu1 %v372_v1  ;;  %482 = vmatmul.mubr.f32.gmra.mxu0 %v1742_v52 }
  0x51   : > { %567 = vmatmul.mubr.f32.gmra.mxu1 %v1788_v2  ;;  %1140 = vmatpush3.msra.mxu0 %v324_v3 }
  0x52   : > { %1184 = vmatpush3.msra.mxu1 %v356_v4  ;;  %1141 = vmatprep.subr.mxu0 %v339_v5 }
  0x53   : > { %1185 = vmatprep.subr.mxu1 %v371_v6  ;;  %1142 = vmatpush3.msra.mxu0 %v323_v7 }
  0x54   : > { %1186 = vmatpush3.msra.mxu1 %v355_v8  ;;  %1143 = vmatprep.subr.mxu0 %v338_v9 }
  0x55   : > { %1187 = vmatprep.subr.mxu1 %v370_v10  ;;  %1144 = vmatpush3.msra.mxu0 %v322_v11 }
  0x56   : > { %636 = vmatprep.mubr.f32.mxu0 %v1714_v44  ;;  %1188 = vmatpush3.msra.mxu1 %v354_v12 }
  0x57   : > { %637 = vmatmul.mubr.f32.vlgmr.msra.gmra.mxu0 %v1702_v40  ;;  %721 = vmatprep.mubr.f32.mxu1 %v1739_v51 }
  0x58   : > { %1221 = vmatprep.subr.mxu0 %v401_v13  ;;  %1259 = vmatprep.subr.mxu1 %v401_v13 }
  0x59   : > { %722 = vmatmul.mubr.f32.vlgmr.msra.gmra.mxu1 %v1705_v41  ;;  %1222 = vmatpush3.msra.mxu0 %v401_v13 }
  0x5a   : > { %1275 = vmatpush3.msra.mxu1 %v401_v13  ;;  %1223 = vmatprep.subr.mxu0 %v400_v14 }
  0x5b   : > { %1260 = vmatprep.subr.mxu1 %v400_v14  ;;  %641 = vmatprep.mubr.f32.mxu0 %v1751_v55 }
  0x5c   : > { %1224 = vmatpush3.msra.mxu0 %v400_v14  ;;  %1276 = vmatpush3.msra.mxu1 %v400_v14 }
  0x5d   : > { %642 = vmatmul.mubr.f32.gmra.mxu0 %v1739_v51  ;;  %1225 = vmatprep.subr.mxu0 %v399_v15 }
  0x5e   : > { %1261 = vmatprep.subr.mxu1 %v399_v15  ;;  %726 = vmatprep.mubr.f32.mxu1 %v1776_v62 }
  0x5f   : > { %1226 = vmatpush3.msra.mxu0 %v399_v15  ;;  %1277 = vmatpush3.msra.mxu1 %v399_v15 }
  0x60   : > { %1227 = vmatprep.subr.mxu0 %v398_v16  ;;  %727 = vmatmul.mubr.f32.gmra.mxu1 %v1742_v52 }
  0x61   : > { %1262 = vmatprep.subr.mxu1 %v398_v16  ;;  %646 = vmatprep.mubr.f32.mxu0 %v1788_v2 }
  0x62   : > { %1228 = vmatpush3.msra.mxu0 %v398_v16  ;;  %1278 = vmatpush3.msra.mxu1 %v398_v16 }
  0x63   : > { %647 = vmatmul.mubr.f32.gmra.mxu0 %v1776_v62  ;;  %1229 = vmatprep.subr.mxu0 %v397_v17 }
  0x64   : > { %1263 = vmatprep.subr.mxu1 %v397_v17  ;;  %731 = vmatprep.mubr.f32.mxu1 %v1014_v18 }
  0x65   : > { %1230 = vmatpush3.msra.mxu0 %v397_v17  ;;  %1279 = vmatpush3.msra.mxu1 %v397_v17 }
  0x66   : > { %1231 = vmatprep.subr.mxu0 %v396_v19  ;;  %732 = vmatmul.mubr.f32.gmra.mxu1 %v1779_v63 }
  0x67   : > { %1264 = vmatprep.subr.mxu1 %v396_v19  ;;  %651 = vmatprep.mubr.f32.mxu0 %v1854_v20 }
  0x68   : > { %1232 = vmatpush3.msra.mxu0 %v396_v19  ;;  %1280 = vmatpush3.msra.mxu1 %v396_v19 }
  0x69   : > { %652 = vmatmul.mubr.f32.gmra.mxu0 %v1014_v18  ;;  %1233 = vmatprep.subr.mxu0 %v395_v21 }
  0x6a   : > { %1265 = vmatprep.subr.mxu1 %v395_v21  ;;  %736 = vmatprep.mubr.f32.mxu1 %v1015_v22 }
  0x6b   : > { %1234 = vmatpush3.msra.mxu0 %v395_v21  ;;  %1281 = vmatpush3.msra.mxu1 %v395_v21 }
  0x6c   : > { %1235 = vmatprep.subr.mxu0 %v394_v23  ;;  %737 = vmatmul.mubr.f32.gmra.mxu1 %v1011_v24 }
  0x6d   : > { %1266 = vmatprep.subr.mxu1 %v394_v23  ;;  %1236 = vmatpush3.msra.mxu0 %v394_v23 }
  0x6e   : > { %1282 = vmatpush3.msra.mxu1 %v394_v23  ;;  %1237 = vmatprep.subr.mxu0 %v393_v25 }
  0x6f   : > { %1267 = vmatprep.subr.mxu1 %v393_v25  ;;  %1238 = vmatpush3.msra.mxu0 %v393_v25 }
  0x70   : > { %1283 = vmatpush3.msra.mxu1 %v393_v25  ;;  %1239 = vmatprep.subr.mxu0 %v392_v26 }
  0x71   : > { %1268 = vmatprep.subr.mxu1 %v392_v26  ;;  %1240 = vmatpush3.msra.mxu0 %v392_v26 }
  0x72   : > { %1284 = vmatpush3.msra.mxu1 %v392_v26  ;;  %1241 = vmatprep.subr.mxu0 %v391_v27 }
  0x73   : > { %1269 = vmatprep.subr.mxu1 %v391_v27  ;;  %1242 = vmatpush3.msra.mxu0 %v391_v27 }
  0x74   : > { %1285 = vmatpush3.msra.mxu1 %v391_v27  ;;  %1243 = vmatprep.subr.mxu0 %v390_v28 }
  0x75   : > { %1270 = vmatprep.subr.mxu1 %v390_v28  ;;  %1244 = vmatpush3.msra.mxu0 %v390_v28 }
  0x76   : > { %1286 = vmatpush3.msra.mxu1 %v390_v28  ;;  %1245 = vmatprep.subr.mxu0 %v389_v29 }
  0x77   : > { %1271 = vmatprep.subr.mxu1 %v389_v29  ;;  %1246 = vmatpush3.msra.mxu0 %v389_v29 }
  0x78   : > { %1287 = vmatpush3.msra.mxu1 %v389_v29  ;;  %1247 = vmatprep.subr.mxu0 %v388_v30 }
  0x79   : > { %1272 = vmatprep.subr.mxu1 %v388_v30  ;;  %1248 = vmatpush3.msra.mxu0 %v388_v30 }
  0x7a   : > { %1288 = vmatpush3.msra.mxu1 %v388_v30  ;;  %1249 = vmatprep.subr.mxu0 %v387_v31 }
  0x7b   : > { %1273 = vmatprep.subr.mxu1 %v387_v31  ;;  %1250 = vmatpush3.msra.mxu0 %v387_v31 }
  0x7c   : > { %1289 = vmatpush3.msra.mxu1 %v387_v31  ;;  %1251 = vmatprep.subr.mxu0 %v386_v32 }
  0x7d   : > { %1274 = vmatprep.subr.mxu1 %v386_v32  ;;  %1252 = vmatpush3.msra.mxu0 %v386_v32 }
  0x7e   : > { %1290 = vmatpush3.msra.mxu1 %v386_v32  ;;  %1253 = vmatprep.mubr.f32.mxu0 %v1751_v55 }
  0x7f   : > { %1256 = vmatprep.mubr.f32.mxu1 %v1854_v20  ;;  %1254 = vmatmul.mubr.f32.vlgmr.msra.gmra.mxu0 %v1788_v2 }
  0x80   : > { %1257 = vmatmul.mubr.f32.vlgmr.msra.gmra.mxu1 %v1019_v33 }
  0xef   : > { %v1057_v34 = vpop.f32.mrf.mxu0 }
  0xf0   : > { %v1101_v35 = vpop.f32.mrf.mxu1 }
  0xf1   : > { %v1058_v36 = vpop.f32.mrf.mxu0 }
  0xf2   : > { %v1102_v37 = vpop.f32.mrf.mxu1  ;;  %v1059_v5 = vadd.f32 %v1058_v36, %v1057_v34 }
  0xf3   : > { %v1103_v6 = vadd.f32 %v1102_v37, %v1101_v35 }
  0xf5   : > { %v554_v16 = vadd.f32 %v1103_v6, %v1059_v5 }
 0x104   : > { %v1060_v38 = vpop.f32.mrf.mxu0 }
 0x105   : > { %v1104_v39 = vpop.f32.mrf.mxu1 }
 0x106   : > { %v1061_v40 = vpop.f32.mrf.mxu0 }
 0x107   : > { %v1105_v41 = vpop.f32.mrf.mxu1  ;;  %v1062_v1 = vadd.f32 %v1061_v40, %v1060_v38 }
 0x108   : > { %v1106_v2 = vadd.f32 %v1105_v41, %v1104_v39 }
 0x10a   : > { %v1063_v42 = vpop.f32.mrf.mxu0  ;;  %v559_v12 = vadd.f32 %v1106_v2, %v1062_v1 }
 0x10b   : > { %v1107_v44 = vpop.f32.mrf.mxu1 }
 0x10c   : > { %v1064_v43 = vpop.f32.mrf.mxu0 }
 0x10d   : > { %v1108_v46 = vpop.f32.mrf.mxu1  ;;  %v1065_v7 = vadd.f32 %v1064_v43, %v1063_v42 }
 0x10e   : > { %v1109_v8 = vadd.f32 %v1108_v46, %v1107_v44 }
 0x110   : > { %v1066_v45 = vpop.f32.mrf.mxu0  ;;  %v564_v17 = vadd.f32 %v1109_v8, %v1065_v7 }
 0x111   : > { %v1110_v48 = vpop.f32.mrf.mxu1 }
 0x112   : > { %v1067_v47 = vpop.f32.mrf.mxu0 }
 0x113   : > { %v1111_v50 = vpop.f32.mrf.mxu1  ;;  %v1068_v3 = vadd.f32 %v1067_v47, %v1066_v45 }
 0x114   : > { %v1112_v4 = vadd.f32 %v1111_v50, %v1110_v48 }
 0x116   : > { %v569_v13 = vadd.f32 %v1112_v4, %v1068_v3 }
 0x117   : > { %v1145_v49 = vpop.f32.mrf.mxu0 }
 0x119   : > { %v1189_v51 = vpop.f32.mrf.mxu1  ;;  %v1146_v52 = vpop.f32.mrf.mxu0 }
 0x11a   : > { %v1147_v14 = vadd.f32 %v1146_v52, %v1145_v49 }
 0x11b   : > { %v1190_v53 = vpop.f32.mrf.mxu1 }
 0x11c   : > { %v639_v22 = vadd.f32 %v1147_v14, %v554_v16  ;;  %v1191_v23 = vadd.f32 %v1190_v53, %v1189_v51 }
 0x11d   : > { %v1148_v54 = vpop.f32.mrf.mxu0 }
 0x11e   : > { %v724_v32 = vadd.f32 %v1191_v23, %v639_v22 }
 0x11f   : > { %v1149_v55 = vpop.f32.mrf.mxu0 }
 0x120   : > { %v1192_v56 = vpop.f32.mrf.mxu1  ;;  %v1150_v9 = vadd.f32 %v1149_v55, %v1148_v54 }
 0x122   : > { %v1193_v58 = vpop.f32.mrf.mxu1  ;;  %v644_v18 = vadd.f32 %v1150_v9, %v559_v12 }
 0x123   : > { %v1151_v57 = vpop.f32.mrf.mxu0  ;;  %v1194_v19 = vadd.f32 %v1193_v58, %v1192_v56 }
 0x125   : > { %v1152_v59 = vpop.f32.mrf.mxu0  ;;  %v729_v26 = vadd.f32 %v1194_v19, %v644_v18 }
 0x126   : > { %v1195_v60 = vpop.f32.mrf.mxu1  ;;  %v1153_v15 = vadd.f32 %v1152_v59, %v1151_v57 }
 0x128   : > { %v1196_v62 = vpop.f32.mrf.mxu1  ;;  %v649_v24 = vadd.f32 %v1153_v15, %v564_v17 }
 0x129   : > { %v1154_v61 = vpop.f32.mrf.mxu0  ;;  %v1197_v25 = vadd.f32 %v1196_v62, %v1195_v60 }
 0x12b   : > { %v1155_v63 = vpop.f32.mrf.mxu0  ;;  %v734_v33 = vadd.f32 %v1197_v25, %v649_v24 }
 0x12c   : > { %v1198_v0 = vpop.f32.mrf.mxu1  ;;  %v1156_v10 = vadd.f32 %v1155_v63, %v1154_v61 }
 0x12e   : > { %v1199_v11 = vpop.f32.mrf.mxu1  ;;  %v654_v20 = vadd.f32 %v1156_v10, %v569_v13 }
 0x12f   : > { %v1200_v21 = vadd.f32 %v1199_v11, %v1198_v0 }
 0x131   : > { %v739_v27 = vadd.f32 %v1200_v21, %v654_v20 }
 0x13f   : > { %v1255_v28 = vpop.f32.mrf.mxu0 }
 0x140   : > { %v1258_v29 = vpop.f32.mrf.mxu1  ;;  %v814_v30 = vadd.f32 %v1255_v28, %v729_v26 }
 0x141   : > { %v824_v31 = vadd.f32 %v1258_v29, %v739_v27  ;;  %v808_v34 = vpop.f32.mrf.mxu0 }
 0x142   : > { %v818_v35 = vpop.f32.mrf.mxu1  ;;  %828 = vst [vmem:[%s214_s20 + $0x8] sm:$0xff] %v814_v30  ;;  %v809_v36 = vadd.f32 %v808_v34, %v724_v32  ;;  %v841_v38 = vmul.f32 %v814_v30, %v814_v30 }
 0x143   : > { %830 = vst [vmem:[%s214_s20 + $0x18] sm:$0xff] %v824_v31  ;;  %v819_v37 = vadd.f32 %v818_v35, %v734_v33  ;;  %v843_v44 = vmul.f32 %v824_v31, %v824_v31 }
 0x144   : > { %827 = vst [vmem:[%s214_s20] sm:$0xff] %v809_v36  ;;  %v831_v39 = vadd.f32 %v814_v30, %v809_v36  ;;  %v840_v40 = vmul.f32 %v809_v36, %v809_v36 }
 0x145   : > { %829 = vst [vmem:[%s214_s20 + $0x10] sm:$0xff] %v819_v37  ;;  %v842_v43 = vmul.f32 %v819_v37, %v819_v37 }
 0x146   : > { %v844_v41 = vadd.f32 %v841_v38, %v840_v40  ;;  %v832_v42 = vadd.f32 %v831_v39, %v819_v37 }
 0x148   : > { %v833_v45 = vadd.f32 %v832_v42, %v824_v31  ;;  %v845_v46 = vadd.f32 %v844_v41, %v842_v43 }
 0x14a   : > { %v834_v47 = vrot.slane %v833_v45, 4  ;;  %v846_v48 = vadd.f32 %v845_v46, %v843_v44 }
 0x14c   : > { %v835_v49 = vadd.f32 %v834_v47, %v833_v45  ;;  %v847_v50 = vrot.slane %v846_v48, 4 }
 0x14e   : > { %v836_v51 = vrot.slane %v835_v49, 2  ;;  %v848_v52 = vadd.f32 %v847_v50, %v846_v48 }
 0x150   : > { %v837_v53 = vadd.f32 %v836_v51, %v835_v49  ;;  %v849_v54 = vrot.slane %v848_v52, 2 }
 0x152   : > { %v838_v55 = vrot.slane %v837_v53, 1  ;;  %v850_v56 = vadd.f32 %v849_v54, %v848_v52 }
 0x154   : > { %v851_v57 = vrot.slane %v850_v56, 1  ;;  %v839_v58 = vadd.f32 %v838_v55, %v837_v53  ;;  %858 = sbr.rel (%p1020_p6) target bundleno = 347 (0x15b), region = 32 }
 0x156   : > { %v852_v59 = vadd.f32 %v851_v57, %v850_v56 }
 0x158   : > { %v854_v60 = vsel %vm853_vm0, %v839_v58, %v852_v59 }
 0x159   : > { %v1341_v61 = vmov 0.0  }
 0x15a   : > { %859 = vst [vmem:[#allocation2] sm:$0x3] %v1341_v61 }
 0x15b PF: > { %p1021_p7 = scmp.ne.s32.totalorder %s1331_s12, 3 }
 0x160   : > { %866 = sbr.rel (%p1021_p7) target bundleno = 365 (0x16d), region = 36 }
 0x161   : > { %v860_v62 = vld [vmem:[#allocation2] sm:$0x3] }
 0x162   : > { %v861_v63 = vadd.f32 %v860_v62, %v854_v60 }
 0x164   : > { %862 = vst [vmem:[#allocation2] sm:$0x3] %v861_v63 }
 0x16b   : > { %v867_v0 = vld [vmem:[#allocation2] sm:$0x3] }
 0x16c   : > { %868 = vst [vmem:[%s1915_s3] sm:$0x3] %v867_v0 }
 0x16d PF: > { %s14_s14 = sadd.s32 1, %s1339_s14   ;;  %s1916_s12 = smov %s1335_s13 }
 0x16e   : > { %p11_p8 = scmp.ge.s32.totalorder %s14_s14, 6   ;;  %s1917_s13 = smov %s1919_s15 }
 0x170   :  { %13 = sbr.rel (!%p11_p8) target bundleno = 2 (0x2), region = 83 }

</bundles_post_ra>
